<compile_context>
chip_gen: v7x
topology: tpu7x:2x2x1
jax: 0.10.0
libtpu: 0.0.40
codegen_flags: <defaults>
</compile_context>

<pallas_src>
import functools

import numpy as np
import jax
import jax.numpy as jnp
from jax import lax
from jax.experimental import pallas as pl
from jax.experimental.pallas import tpu as pltpu

TEMPERATURE = 2.5
EPS_ENTROPY = 1e-5
NS_ITERS = 20          # Newton–Schulz iterations for trace(sqrt(G))


def _eye(n, dtype=jnp.float32):
    rows = lax.broadcasted_iota(jnp.int32, (n, n), 0)
    cols = lax.broadcasted_iota(jnp.int32, (n, n), 1)
    return (rows == cols).astype(dtype)


def _trace_sqrt(gram, eye, iters):
    """Nuclear norm of P given G = P @ P^T: trace(G^{1/2}) via Newton–Schulz.

    Coupled Newton–Schulz on the trace-normalized Gram (iSQRT-COV style):
    only tiny [n,n] matmuls on the MXU, everything stays in VMEM/vregs.
    Zero eigenvalues (masked-out rows) map to exactly zero through the
    iteration, so zero rows do not change the result.
    """
    tr = jnp.maximum(jnp.sum(gram * eye), 1e-12)
    a = gram / tr                               # eigenvalues in [0, 1]
    y = a
    z = eye
    for _ in range(iters):
        t = 0.5 * (3.0 * eye
                   - jnp.dot(z, y, preferred_element_type=jnp.float32))
        y = jnp.dot(y, t, preferred_element_type=jnp.float32)
        z = jnp.dot(t, z, preferred_element_type=jnp.float32)
    # sqrt(G) ~= sqrt(tr) * y   =>   ||P||_* = trace(sqrt(G))
    return jnp.sqrt(tr) * jnp.sum(y * eye)


# ----------------------------------------------------------------------------
# Fused kernel: MCC loss + mlp_head forward + per-domain nuclear norms (DALN).
# ----------------------------------------------------------------------------
def _fused_kernel(logit_ref, maskt_ref, feat_ref, w1_ref, w2_ref, loss_ref,
                  *, batch_size, num_ctgs, n_t, ns_iters):
    n, c = logit_ref.shape
    d = feat_ref.shape[1]
    h = w1_ref.shape[1]

    m_t = maskt_ref[...]                                     # [N,1], 1.0 on target rows

    # ---------------- MCC loss (on the provided logits) ----------------
    x = logit_ref[...] * (1.0 / TEMPERATURE)
    x = x - jnp.max(x, axis=1, keepdims=True)                # stable softmax
    e = jnp.exp(x)
    s = e * pl.reciprocal(jnp.sum(e, axis=1, keepdims=True), approx=True)
    # per-row entropy (torch: -x*log(x+1e-5), sum over classes)
    ent = jnp.sum(-s * jnp.log(s + EPS_ENTROPY), axis=1, keepdims=True)
    # source rows zeroed EXACTLY (0/1 mask) -> they add exact zeros everywhere
    w = (1.0 + jnp.exp(-ent)) * m_t
    wsum = jnp.sum(w)                                        # exact one-shot norm
    w = w * (batch_size / wsum)
    # cov[i,j] = sum_n w_n s[n,i] s[n,j]  (batch-dim contraction; fine at N=16)
    cov = lax.dot_general(s * w, s, (((0,), (0,)), ((), ())),
                          preferred_element_type=jnp.float32)          # [C,C]
    # torch: cov / cov.sum(dim=1) divides column j by row-sum j.  cov is
    # symmetric (same left/right softmax), so the axis=0 column-sum reproduces
    # the broadcast without an in-kernel transpose.
    cov = cov / jnp.sum(cov, axis=0, keepdims=True)          # exact division
    eye_c = _eye(c)
    mcc = jnp.sum(cov * (1.0 - eye_c)) * (1.0 / num_ctgs)    # sum - trace

    # ------------- mlp_head forward + per-domain nuclear norms -------------
    # WarmStartGradientReverseLayer only scales gradients; forward is identity.
    # Biases live in the last row of the augmented weight matrices.
    feat = feat_ref[...]
    hid = jnp.dot(feat, w1_ref[:d, :],
                  preferred_element_type=jnp.float32) + w1_ref[d:d + 1, :]
    # TODO(synk): PyTorch nn.GELU defaults to exact erf; tanh approximation used.
    hid = jax.nn.gelu(hid, approximate=True)
    y = jnp.dot(hid, w2_ref[:h, :],
                preferred_element_type=jnp.float32) + w2_ref[h:h + 1, :]
    y = y - jnp.max(y, axis=1, keepdims=True)
    ey = jnp.exp(y)
    p = ey * pl.reciprocal(jnp.sum(ey, axis=1, keepdims=True), approx=True)

    # row-mask selection (zero rows only add zero singular values)
    p_t = p * m_t
    p_s = p * (1.0 - m_t)
    eye_n = _eye(n)
    g_s = lax.dot_general(p_s, p_s, (((1,), (1,)), ((), ())),
                          preferred_element_type=jnp.float32)           # [N,N]
    g_t = lax.dot_general(p_t, p_t, (((1,), (1,)), ((), ())),
                          preferred_element_type=jnp.float32)
    nuc_s = _trace_sqrt(g_s, eye_n, ns_iters)
    nuc_t = _trace_sqrt(g_t, eye_n, ns_iters)
    # reference: (-||softmax(y_t)||_* + ||softmax(y_s)||_*) / y_t.shape[0]
    daln = (nuc_s - nuc_t) * (1.0 / n_t)

    loss_ref[0] = mcc - daln                                  # SMEM scalar store


def _fused_forward(logits, mask_t, features, w1_aug, w2_aug,
                   batch_size, num_ctgs, n_t):
    n, c = logits.shape
    d = features.shape[1]
    h = w1_aug.shape[1]
    kern = functools.partial(_fused_kernel,
                             batch_size=float(batch_size),
                             num_ctgs=float(num_ctgs),
                             n_t=float(n_t),
                             ns_iters=NS_ITERS)
    vmem = pl.BlockSpec(memory_space=pltpu.MemorySpace.VMEM)
    flops = (2 * n * (d * h + h * c + c * c + 2 * n * c)
             + 2 * NS_ITERS * 3 * 2 * n ** 3)
    transcendentals = 3 * n * c + n * h + n
    bytes_accessed = 4 * (int(logits.size) + int(mask_t.size)
                          + int(features.size) + int(w1_aug.size)
                          + int(w2_aug.size) + 1)
    return pl.pallas_call(
        kern,
        out_shape=jax.ShapeDtypeStruct((1,), jnp.float32),
        in_specs=[vmem] * 5,
        out_specs=pl.BlockSpec(memory_space=pltpu.MemorySpace.SMEM),
        cost_estimate=pl.CostEstimate(flops=flops,
                                      transcendentals=transcendentals,
                                      bytes_accessed=bytes_accessed),
    )(logits, mask_t, features, w1_aug, w2_aug)


# ----------------------------------------------------------------------------
# Full MCC_DALN forward
# ----------------------------------------------------------------------------
def mcc_daln_forward(features, logits, mask_lab, head_params,
                     batch_size, num_ctgs):
    w1, b1, w2, b2 = head_params
    mask = np.asarray(mask_lab, dtype=bool)          # static per-chunk mask
    b = mask.shape[0]
    unlab = np.nonzero(~mask)[0]
    rows_t = np.concatenate([unlab, unlab + b])      # target rows in [2B] batch
    n_t = int(rows_t.size)
    assert n_t > 0, "need at least one unlabelled (target) sample"

    mask_t = np.zeros((2 * b, 1), np.float32)
    mask_t[rows_t, 0] = 1.0

    # fold biases into the weights: one extra row each
    w1_aug = jnp.concatenate([w1, jnp.reshape(b1, (1, -1))], axis=0)
    w2_aug = jnp.concatenate([w2, jnp.reshape(b2, (1, -1))], axis=0)

    loss = _fused_forward(logits, jnp.asarray(mask_t), features,
                          w1_aug, w2_aug, batch_size, num_ctgs, n_t)
    return loss[0]


# ----------------------------------------------------------------------------
# Pure-JAX reference (exact softmax + SVD nuclear norms), for sanity checking.
# ----------------------------------------------------------------------------
def _reference_loss(features, logits, mask_lab, head_params,
                    batch_size, num_ctgs):
    mask = np.asarray(mask_lab, dtype=bool)
    b = mask.shape[0]
    lab = np.nonzero(mask)[0]
    unlab = np.nonzero(~mask)[0]
    rows_s = np.concatenate([lab, lab + b])
    rows_t = np.concatenate([unlab, unlab + b])

    # MCC
    s = jax.nn.softmax(logits[rows_t] / TEMPERATURE, axis=1)
    ent = jnp.sum(-s * jnp.log(s + EPS_ENTROPY), axis=1)
    w = 1.0 + jnp.exp(-ent)
    w = batch_size * w / jnp.sum(w)
    cov = (s * w[:, None]).T @ s
    cov = cov / jnp.sum(cov, axis=1)
    mcc = (jnp.sum(cov) - jnp.trace(cov)) / num_ctgs

    # DALN
    w1, b1, w2, b2 = head_params
    hid = jax.nn.gelu(features @ w1 + jnp.reshape(b1, (1, -1)),
                      approximate=True)
    y = hid @ w2 + jnp.reshape(b2, (1, -1))
    p_s = jax.nn.softmax(y[rows_s], axis=1)
    p_t = jax.nn.softmax(y[rows_t], axis=1)
    nuc = lambda a: jnp.sum(jnp.linalg.svd(a, compute_uv=False))
    daln = (nuc(p_s) - nuc(p_t)) / p_t.shape[0]
    return mcc - daln


if __name__ == "__main__":
    # Small shapes consistent with the module's forward:
    #   2B = 16 samples total (two chunks of B = 8), D = 32 feature dim,
    #   C = num_ctgs = 16 classes, args.batch_size = 8.
    B = 8
    D = 32
    C = 16
    H = 32
    BATCH_SIZE = 8
    NUM_CTGS = C

    key = jax.random.PRNGKey(0)
    k_f, k_l, k_w1, k_w2 = jax.random.split(key, 4)

    features = jax.random.normal(k_f, (2 * B, D), dtype=jnp.float32)
    logits = jax.random.normal(k_l, (2 * B, C), dtype=jnp.float32)
    # boolean labelled-mask over one chunk (length B), 4 labelled / 4 unlabelled
    mask_lab = np.array([True, True, False, False, True, False, True, False])

    # deterministic synthetic mlp_head params: Linear(D,H) -> GELU -> Linear(H,C)
    w1 = 0.05 * jax.random.normal(k_w1, (D, H), dtype=jnp.float32)
    b1 = jnp.zeros((1, H), dtype=jnp.float32)
    w2 = 0.05 * jax.random.normal(k_w2, (H, C), dtype=jnp.float32)
    b2 = jnp.zeros((1, C), dtype=jnp.float32)
    head_params = (w1, b1, w2, b2)

    loss = mcc_daln_forward(features, logits, mask_lab, head_params,
                            BATCH_SIZE, NUM_CTGS)
    loss = jax.block_until_ready(loss)

    ref = jax.block_until_ready(
        _reference_loss(features, logits, mask_lab, head_params,
                        BATCH_SIZE, NUM_CTGS))

    assert loss.shape == () and jnp.isfinite(loss)
    assert abs(float(loss) - float(ref)) < 3e-2, (float(loss), float(ref))
    print("KERNEL_OK")
</pallas_src>

<mosaic_0001>
module attributes {stable_mosaic.version = 11 : i64} {
  func.func @_fused_kernel(%arg0: memref<16x16xf32, #tpu.memory_space<vmem>>, %arg1: memref<16x1xf32, #tpu.memory_space<vmem>>, %arg2: memref<16x32xf32, #tpu.memory_space<vmem>>, %arg3: memref<33x32xf32, #tpu.memory_space<vmem>>, %arg4: memref<33x16xf32, #tpu.memory_space<vmem>>, %arg5: memref<1xf32, #tpu.memory_space<smem>>) attributes {dimension_semantics = [], scalar_prefetch = 0 : i64, scratch_operands = 0 : i64, tpu.core_type = #tpu.core_type<tc>} {
    %c0 = arith.constant 0 : index
    %c0_0 = arith.constant 0 : index
    %0 = vector.load %arg1[%c0, %c0_0] : memref<16x1xf32, #tpu.memory_space<vmem>>, vector<16x1xf32>
    %c0_1 = arith.constant 0 : index
    %c0_2 = arith.constant 0 : index
    %1 = vector.load %arg0[%c0_1, %c0_2] : memref<16x16xf32, #tpu.memory_space<vmem>>, vector<16x16xf32>
    %cst = arith.constant 4.000000e-01 : f32
    %2 = vector.broadcast %cst : f32 to vector<16x16xf32>
    %3 = arith.mulf %1, %2 : vector<16x16xf32>
    %cst_3 = arith.constant dense<0xFF800000> : vector<16xf32>
    %4 = vector.multi_reduction <maximumf>, %3, %cst_3 [1] : vector<16x16xf32> to vector<16xf32>
    %5 = vector.shape_cast %4 : vector<16xf32> to vector<16x1xf32>
    %6 = vector.broadcast %5 : vector<16x1xf32> to vector<16x16xf32>
    %7 = arith.subf %3, %6 : vector<16x16xf32>
    %8 = math.exp %7 : vector<16x16xf32>
    %cst_4 = arith.constant dense<0.000000e+00> : vector<16xf32>
    %9 = vector.multi_reduction <add>, %8, %cst_4 [1] : vector<16x16xf32> to vector<16xf32>
    %10 = vector.shape_cast %9 : vector<16xf32> to vector<16x1xf32>
    %11 = tpu.reciprocal %10 {approx = true} : vector<16x1xf32> -> vector<16x1xf32>
    %12 = vector.broadcast %11 : vector<16x1xf32> to vector<16x16xf32>
    %13 = arith.mulf %8, %12 : vector<16x16xf32>
    %cst_5 = arith.constant 0.000000e+00 : f32
    %14 = vector.broadcast %cst_5 : f32 to vector<16x16xf32>
    %15 = arith.subf %14, %13 : vector<16x16xf32>
    %cst_6 = arith.constant 9.99999974E-6 : f32
    %16 = vector.broadcast %cst_6 : f32 to vector<16x16xf32>
    %17 = arith.addf %13, %16 : vector<16x16xf32>
    %18 = math.log %17 : vector<16x16xf32>
    %19 = arith.mulf %15, %18 : vector<16x16xf32>
    %cst_7 = arith.constant dense<0.000000e+00> : vector<16xf32>
    %20 = vector.multi_reduction <add>, %19, %cst_7 [1] : vector<16x16xf32> to vector<16xf32>
    %21 = vector.shape_cast %20 : vector<16xf32> to vector<16x1xf32>
    %cst_8 = arith.constant 0.000000e+00 : f32
    %22 = vector.broadcast %cst_8 : f32 to vector<16x1xf32>
    %23 = arith.subf %22, %21 : vector<16x1xf32>
    %24 = math.exp %23 : vector<16x1xf32>
    %cst_9 = arith.constant 1.000000e+00 : f32
    %25 = vector.broadcast %cst_9 : f32 to vector<16x1xf32>
    %26 = arith.addf %25, %24 : vector<16x1xf32>
    %27 = arith.mulf %26, %0 : vector<16x1xf32>
    %28 = vector.shape_cast %27 : vector<16x1xf32> to vector<1x16x1xf32>
    %cst_10 = arith.constant dense<0.000000e+00> : vector<1xf32>
    %29 = vector.multi_reduction <add>, %28, %cst_10 [1, 2] : vector<1x16x1xf32> to vector<1xf32>
    %30 = vector.shape_cast %29 : vector<1xf32> to vector<1x1x1xf32>
    %31 = vector.extract %30[0, 0, 0] : f32 from vector<1x1x1xf32>
    %cst_11 = arith.constant 8.000000e+00 : f32
    %32 = arith.divf %cst_11, %31 : f32
    %33 = vector.broadcast %32 : f32 to vector<16x1xf32>
    %34 = arith.mulf %27, %33 : vector<16x1xf32>
    %35 = vector.broadcast %34 : vector<16x1xf32> to vector<16x16xf32>
    %36 = arith.mulf %13, %35 : vector<16x16xf32>
    %cst_12 = arith.constant dense<0.000000e+00> : vector<16x16xf32>
    %37 = tpu.matmul %36, %13, %cst_12 {dimension_numbers = #tpu.dot_dimension_numbers<[0], [0], [1], [1], [0, 1, 1, 1], [], []>} : vector<16x16xf32>, vector<16x16xf32>, vector<16x16xf32> -> vector<16x16xf32>
    %cst_13 = arith.constant dense<0.000000e+00> : vector<16xf32>
    %38 = vector.multi_reduction <add>, %37, %cst_13 [0] : vector<16x16xf32> to vector<16xf32>
    %39 = vector.shape_cast %38 : vector<16xf32> to vector<1x16xf32>
    %40 = vector.broadcast %39 : vector<1x16xf32> to vector<16x16xf32>
    %41 = arith.divf %37, %40 : vector<16x16xf32>
    %42 = tpu.iota {dimensions = array<i32: 0>} : vector<16x16xi32>
    %43 = tpu.iota {dimensions = array<i32: 1>} : vector<16x16xi32>
    %44 = arith.cmpi eq, %42, %43 : vector<16x16xi32>
    %45 = arith.extui %44 : vector<16x16xi1> to vector<16x16xi32>
    %46 = arith.sitofp %45 : vector<16x16xi32> to vector<16x16xf32>
    %cst_14 = arith.constant 1.000000e+00 : f32
    %47 = vector.broadcast %cst_14 : f32 to vector<16x16xf32>
    %48 = arith.subf %47, %46 : vector<16x16xf32>
    %49 = arith.mulf %41, %48 : vector<16x16xf32>
    %50 = vector.shape_cast %49 : vector<16x16xf32> to vector<1x16x16xf32>
    %cst_15 = arith.constant dense<0.000000e+00> : vector<1xf32>
    %51 = vector.multi_reduction <add>, %50, %cst_15 [1, 2] : vector<1x16x16xf32> to vector<1xf32>
    %52 = vector.shape_cast %51 : vector<1xf32> to vector<1x1x1xf32>
    %53 = vector.extract %52[0, 0, 0] : f32 from vector<1x1x1xf32>
    %cst_16 = arith.constant 6.250000e-02 : f32
    %54 = arith.mulf %53, %cst_16 : f32
    %c0_17 = arith.constant 0 : index
    %c0_18 = arith.constant 0 : index
    %55 = vector.load %arg2[%c0_17, %c0_18] : memref<16x32xf32, #tpu.memory_space<vmem>>, vector<16x32xf32>
    %c0_19 = arith.constant 0 : index
    %c0_20 = arith.constant 0 : index
    %56 = vector.load %arg3[%c0_19, %c0_20] : memref<33x32xf32, #tpu.memory_space<vmem>>, vector<32x32xf32>
    %cst_21 = arith.constant dense<0.000000e+00> : vector<16x32xf32>
    %57 = tpu.matmul %55, %56, %cst_21 {dimension_numbers = #tpu.dot_dimension_numbers<[1], [0], [0], [1], [0, 0, 1, 1], [], []>} : vector<16x32xf32>, vector<32x32xf32>, vector<16x32xf32> -> vector<16x32xf32>
    %c32 = arith.constant 32 : index
    %c0_22 = arith.constant 0 : index
    %58 = vector.load %arg3[%c32, %c0_22] : memref<33x32xf32, #tpu.memory_space<vmem>>, vector<1x32xf32>
    %59 = vector.broadcast %58 : vector<1x32xf32> to vector<16x32xf32>
    %60 = arith.addf %57, %59 : vector<16x32xf32>
    %61 = arith.mulf %60, %60 : vector<16x32xf32>
    %62 = arith.mulf %60, %61 : vector<16x32xf32>
    %cst_23 = arith.constant 4.471500e-02 : f32
    %63 = vector.broadcast %cst_23 : f32 to vector<16x32xf32>
    %64 = arith.mulf %63, %62 : vector<16x32xf32>
    %65 = arith.addf %60, %64 : vector<16x32xf32>
    %cst_24 = arith.constant 0.797884583 : f32
    %66 = vector.broadcast %cst_24 : f32 to vector<16x32xf32>
    %67 = arith.mulf %66, %65 : vector<16x32xf32>
    %68 = math.tanh %67 : vector<16x32xf32>
    %cst_25 = arith.constant 1.000000e+00 : f32
    %69 = vector.broadcast %cst_25 : f32 to vector<16x32xf32>
    %70 = arith.addf %69, %68 : vector<16x32xf32>
    %cst_26 = arith.constant 5.000000e-01 : f32
    %71 = vector.broadcast %cst_26 : f32 to vector<16x32xf32>
    %72 = arith.mulf %71, %70 : vector<16x32xf32>
    %73 = arith.mulf %60, %72 : vector<16x32xf32>
    %c0_27 = arith.constant 0 : index
    %c0_28 = arith.constant 0 : index
    %74 = vector.load %arg4[%c0_27, %c0_28] : memref<33x16xf32, #tpu.memory_space<vmem>>, vector<32x16xf32>
    %cst_29 = arith.constant dense<0.000000e+00> : vector<16x16xf32>
    %75 = tpu.matmul %73, %74, %cst_29 {dimension_numbers = #tpu.dot_dimension_numbers<[1], [0], [0], [1], [0, 0, 1, 1], [], []>} : vector<16x32xf32>, vector<32x16xf32>, vector<16x16xf32> -> vector<16x16xf32>
    %c32_30 = arith.constant 32 : index
    %c0_31 = arith.constant 0 : index
    %76 = vector.load %arg4[%c32_30, %c0_31] : memref<33x16xf32, #tpu.memory_space<vmem>>, vector<1x16xf32>
    %77 = vector.broadcast %76 : vector<1x16xf32> to vector<16x16xf32>
    %78 = arith.addf %75, %77 : vector<16x16xf32>
    %cst_32 = arith.constant dense<0xFF800000> : vector<16xf32>
    %79 = vector.multi_reduction <maximumf>, %78, %cst_32 [1] : vector<16x16xf32> to vector<16xf32>
    %80 = vector.shape_cast %79 : vector<16xf32> to vector<16x1xf32>
    %81 = vector.broadcast %80 : vector<16x1xf32> to vector<16x16xf32>
    %82 = arith.subf %78, %81 : vector<16x16xf32>
    %83 = math.exp %82 : vector<16x16xf32>
    %cst_33 = arith.constant dense<0.000000e+00> : vector<16xf32>
    %84 = vector.multi_reduction <add>, %83, %cst_33 [1] : vector<16x16xf32> to vector<16xf32>
    %85 = vector.shape_cast %84 : vector<16xf32> to vector<16x1xf32>
    %86 = tpu.reciprocal %85 {approx = true} : vector<16x1xf32> -> vector<16x1xf32>
    %87 = vector.broadcast %86 : vector<16x1xf32> to vector<16x16xf32>
    %88 = arith.mulf %83, %87 : vector<16x16xf32>
    %89 = vector.broadcast %0 : vector<16x1xf32> to vector<16x16xf32>
    %90 = arith.mulf %88, %89 : vector<16x16xf32>
    %cst_34 = arith.constant 1.000000e+00 : f32
    %91 = vector.broadcast %cst_34 : f32 to vector<16x1xf32>
    %92 = arith.subf %91, %0 : vector<16x1xf32>
    %93 = vector.broadcast %92 : vector<16x1xf32> to vector<16x16xf32>
    %94 = arith.mulf %88, %93 : vector<16x16xf32>
    %95 = tpu.iota {dimensions = array<i32: 0>} : vector<16x16xi32>
    %96 = tpu.iota {dimensions = array<i32: 1>} : vector<16x16xi32>
    %97 = arith.cmpi eq, %95, %96 : vector<16x16xi32>
    %98 = arith.extui %97 : vector<16x16xi1> to vector<16x16xi32>
    %99 = arith.sitofp %98 : vector<16x16xi32> to vector<16x16xf32>
    %cst_35 = arith.constant dense<0.000000e+00> : vector<16x16xf32>
    %100 = tpu.matmul %94, %94, %cst_35 {dimension_numbers = #tpu.dot_dimension_numbers<[1], [1], [0], [0], [0, 0, 1, 0], [], []>} : vector<16x16xf32>, vector<16x16xf32>, vector<16x16xf32> -> vector<16x16xf32>
    %cst_36 = arith.constant dense<0.000000e+00> : vector<16x16xf32>
    %101 = tpu.matmul %90, %90, %cst_36 {dimension_numbers = #tpu.dot_dimension_numbers<[1], [1], [0], [0], [0, 0, 1, 0], [], []>} : vector<16x16xf32>, vector<16x16xf32>, vector<16x16xf32> -> vector<16x16xf32>
    %102 = arith.mulf %100, %99 : vector<16x16xf32>
    %103 = vector.shape_cast %102 : vector<16x16xf32> to vector<1x16x16xf32>
    %cst_37 = arith.constant dense<0.000000e+00> : vector<1xf32>
    %104 = vector.multi_reduction <add>, %103, %cst_37 [1, 2] : vector<1x16x16xf32> to vector<1xf32>
    %105 = vector.shape_cast %104 : vector<1xf32> to vector<1x1x1xf32>
    %106 = vector.extract %105[0, 0, 0] : f32 from vector<1x1x1xf32>
    %cst_38 = arith.constant 9.99999996E-13 : f32
    %107 = arith.maximumf %106, %cst_38 : f32
    %108 = vector.broadcast %107 : f32 to vector<16x16xf32>
    %109 = arith.divf %100, %108 : vector<16x16xf32>
    %cst_39 = arith.constant 3.000000e+00 : f32
    %110 = vector.broadcast %cst_39 : f32 to vector<16x16xf32>
    %111 = arith.mulf %110, %99 : vector<16x16xf32>
    %cst_40 = arith.constant dense<0.000000e+00> : vector<16x16xf32>
    %112 = tpu.matmul %99, %109, %cst_40 {dimension_numbers = #tpu.dot_dimension_numbers<[1], [0], [0], [1], [0, 0, 1, 1], [], []>} : vector<16x16xf32>, vector<16x16xf32>, vector<16x16xf32> -> vector<16x16xf32>
    %113 = arith.subf %111, %112 : vector<16x16xf32>
    %cst_41 = arith.constant 5.000000e-01 : f32
    %114 = vector.broadcast %cst_41 : f32 to vector<16x16xf32>
    %115 = arith.mulf %114, %113 : vector<16x16xf32>
    %cst_42 = arith.constant dense<0.000000e+00> : vector<16x16xf32>
    %116 = tpu.matmul %109, %115, %cst_42 {dimension_numbers = #tpu.dot_dimension_numbers<[1], [0], [0], [1], [0, 0, 1, 1], [], []>} : vector<16x16xf32>, vector<16x16xf32>, vector<16x16xf32> -> vector<16x16xf32>
    %cst_43 = arith.constant dense<0.000000e+00> : vector<16x16xf32>
    %117 = tpu.matmul %115, %99, %cst_43 {dimension_numbers = #tpu.dot_dimension_numbers<[1], [0], [0], [1], [0, 0, 1, 1], [], []>} : vector<16x16xf32>, vector<16x16xf32>, vector<16x16xf32> -> vector<16x16xf32>
    %cst_44 = arith.constant 3.000000e+00 : f32
    %118 = vector.broadcast %cst_44 : f32 to vector<16x16xf32>
    %119 = arith.mulf %118, %99 : vector<16x16xf32>
    %cst_45 = arith.constant dense<0.000000e+00> : vector<16x16xf32>
    %120 = tpu.matmul %117, %116, %cst_45 {dimension_numbers = #tpu.dot_dimension_numbers<[1], [0], [0], [1], [0, 0, 1, 1], [], []>} : vector<16x16xf32>, vector<16x16xf32>, vector<16x16xf32> -> vector<16x16xf32>
    %121 = arith.subf %119, %120 : vector<16x16xf32>
    %cst_46 = arith.constant 5.000000e-01 : f32
    %122 = vector.broadcast %cst_46 : f32 to vector<16x16xf32>
    %123 = arith.mulf %122, %121 : vector<16x16xf32>
    %cst_47 = arith.constant dense<0.000000e+00> : vector<16x16xf32>
    %124 = tpu.matmul %116, %123, %cst_47 {dimension_numbers = #tpu.dot_dimension_numbers<[1], [0], [0], [1], [0, 0, 1, 1], [], []>} : vector<16x16xf32>, vector<16x16xf32>, vector<16x16xf32> -> vector<16x16xf32>
    %cst_48 = arith.constant dense<0.000000e+00> : vector<16x16xf32>
    %125 = tpu.matmul %123, %117, %cst_48 {dimension_numbers = #tpu.dot_dimension_numbers<[1], [0], [0], [1], [0, 0, 1, 1], [], []>} : vector<16x16xf32>, vector<16x16xf32>, vector<16x16xf32> -> vector<16x16xf32>
    %cst_49 = arith.constant 3.000000e+00 : f32
    %126 = vector.broadcast %cst_49 : f32 to vector<16x16xf32>
    %127 = arith.mulf %126, %99 : vector<16x16xf32>
    %cst_50 = arith.constant dense<0.000000e+00> : vector<16x16xf32>
    %128 = tpu.matmul %125, %124, %cst_50 {dimension_numbers = #tpu.dot_dimension_numbers<[1], [0], [0], [1], [0, 0, 1, 1], [], []>} : vector<16x16xf32>, vector<16x16xf32>, vector<16x16xf32> -> vector<16x16xf32>
    %129 = arith.subf %127, %128 : vector<16x16xf32>
    %cst_51 = arith.constant 5.000000e-01 : f32
    %130 = vector.broadcast %cst_51 : f32 to vector<16x16xf32>
    %131 = arith.mulf %130, %129 : vector<16x16xf32>
    %cst_52 = arith.constant dense<0.000000e+00> : vector<16x16xf32>
    %132 = tpu.matmul %124, %131, %cst_52 {dimension_numbers = #tpu.dot_dimension_numbers<[1], [0], [0], [1], [0, 0, 1, 1], [], []>} : vector<16x16xf32>, vector<16x16xf32>, vector<16x16xf32> -> vector<16x16xf32>
    %cst_53 = arith.constant dense<0.000000e+00> : vector<16x16xf32>
    %133 = tpu.matmul %131, %125, %cst_53 {dimension_numbers = #tpu.dot_dimension_numbers<[1], [0], [0], [1], [0, 0, 1, 1], [], []>} : vector<16x16xf32>, vector<16x16xf32>, vector<16x16xf32> -> vector<16x16xf32>
    %cst_54 = arith.constant 3.000000e+00 : f32
    %134 = vector.broadcast %cst_54 : f32 to vector<16x16xf32>
    %135 = arith.mulf %134, %99 : vector<16x16xf32>
    %cst_55 = arith.constant dense<0.000000e+00> : vector<16x16xf32>
    %136 = tpu.matmul %133, %132, %cst_55 {dimension_numbers = #tpu.dot_dimension_numbers<[1], [0], [0], [1], [0, 0, 1, 1], [], []>} : vector<16x16xf32>, vector<16x16xf32>, vector<16x16xf32> -> vector<16x16xf32>
    %137 = arith.subf %135, %136 : vector<16x16xf32>
    %cst_56 = arith.constant 5.000000e-01 : f32
    %138 = vector.broadcast %cst_56 : f32 to vector<16x16xf32>
    %139 = arith.mulf %138, %137 : vector<16x16xf32>
    %cst_57 = arith.constant dense<0.000000e+00> : vector<16x16xf32>
    %140 = tpu.matmul %132, %139, %cst_57 {dimension_numbers = #tpu.dot_dimension_numbers<[1], [0], [0], [1], [0, 0, 1, 1], [], []>} : vector<16x16xf32>, vector<16x16xf32>, vector<16x16xf32> -> vector<16x16xf32>
    %cst_58 = arith.constant dense<0.000000e+00> : vector<16x16xf32>
    %141 = tpu.matmul %139, %133, %cst_58 {dimension_numbers = #tpu.dot_dimension_numbers<[1], [0], [0], [1], [0, 0, 1, 1], [], []>} : vector<16x16xf32>, vector<16x16xf32>, vector<16x16xf32> -> vector<16x16xf32>
    %cst_59 = arith.constant 3.000000e+00 : f32
    %142 = vector.broadcast %cst_59 : f32 to vector<16x16xf32>
    %143 = arith.mulf %142, %99 : vector<16x16xf32>
    %cst_60 = arith.constant dense<0.000000e+00> : vector<16x16xf32>
    %144 = tpu.matmul %141, %140, %cst_60 {dimension_numbers = #tpu.dot_dimension_numbers<[1], [0], [0], [1], [0, 0, 1, 1], [], []>} : vector<16x16xf32>, vector<16x16xf32>, vector<16x16xf32> -> vector<16x16xf32>
    %145 = arith.subf %143, %144 : vector<16x16xf32>
    %cst_61 = arith.constant 5.000000e-01 : f32
    %146 = vector.broadcast %cst_61 : f32 to vector<16x16xf32>
    %147 = arith.mulf %146, %145 : vector<16x16xf32>
    %cst_62 = arith.constant dense<0.000000e+00> : vector<16x16xf32>
    %148 = tpu.matmul %140, %147, %cst_62 {dimension_numbers = #tpu.dot_dimension_numbers<[1], [0], [0], [1], [0, 0, 1, 1], [], []>} : vector<16x16xf32>, vector<16x16xf32>, vector<16x16xf32> -> vector<16x16xf32>
    %cst_63 = arith.constant dense<0.000000e+00> : vector<16x16xf32>
    %149 = tpu.matmul %147, %141, %cst_63 {dimension_numbers = #tpu.dot_dimension_numbers<[1], [0], [0], [1], [0, 0, 1, 1], [], []>} : vector<16x16xf32>, vector<16x16xf32>, vector<16x16xf32> -> vector<16x16xf32>
    %cst_64 = arith.constant 3.000000e+00 : f32
    %150 = vector.broadcast %cst_64 : f32 to vector<16x16xf32>
    %151 = arith.mulf %150, %99 : vector<16x16xf32>
    %cst_65 = arith.constant dense<0.000000e+00> : vector<16x16xf32>
    %152 = tpu.matmul %149, %148, %cst_65 {dimension_numbers = #tpu.dot_dimension_numbers<[1], [0], [0], [1], [0, 0, 1, 1], [], []>} : vector<16x16xf32>, vector<16x16xf32>, vector<16x16xf32> -> vector<16x16xf32>
    %153 = arith.subf %151, %152 : vector<16x16xf32>
    %cst_66 = arith.constant 5.000000e-01 : f32
    %154 = vector.broadcast %cst_66 : f32 to vector<16x16xf32>
    %155 = arith.mulf %154, %153 : vector<16x16xf32>
    %cst_67 = arith.constant dense<0.000000e+00> : vector<16x16xf32>
    %156 = tpu.matmul %148, %155, %cst_67 {dimension_numbers = #tpu.dot_dimension_numbers<[1], [0], [0], [1], [0, 0, 1, 1], [], []>} : vector<16x16xf32>, vector<16x16xf32>, vector<16x16xf32> -> vector<16x16xf32>
    %cst_68 = arith.constant dense<0.000000e+00> : vector<16x16xf32>
    %157 = tpu.matmul %155, %149, %cst_68 {dimension_numbers = #tpu.dot_dimension_numbers<[1], [0], [0], [1], [0, 0, 1, 1], [], []>} : vector<16x16xf32>, vector<16x16xf32>, vector<16x16xf32> -> vector<16x16xf32>
    %cst_69 = arith.constant 3.000000e+00 : f32
    %158 = vector.broadcast %cst_69 : f32 to vector<16x16xf32>
    %159 = arith.mulf %158, %99 : vector<16x16xf32>
    %cst_70 = arith.constant dense<0.000000e+00> : vector<16x16xf32>
    %160 = tpu.matmul %157, %156, %cst_70 {dimension_numbers = #tpu.dot_dimension_numbers<[1], [0], [0], [1], [0, 0, 1, 1], [], []>} : vector<16x16xf32>, vector<16x16xf32>, vector<16x16xf32> -> vector<16x16xf32>
    %161 = arith.subf %159, %160 : vector<16x16xf32>
    %cst_71 = arith.constant 5.000000e-01 : f32
    %162 = vector.broadcast %cst_71 : f32 to vector<16x16xf32>
    %163 = arith.mulf %162, %161 : vector<16x16xf32>
    %cst_72 = arith.constant dense<0.000000e+00> : vector<16x16xf32>
    %164 = tpu.matmul %156, %163, %cst_72 {dimension_numbers = #tpu.dot_dimension_numbers<[1], [0], [0], [1], [0, 0, 1, 1], [], []>} : vector<16x16xf32>, vector<16x16xf32>, vector<16x16xf32> -> vector<16x16xf32>
    %cst_73 = arith.constant dense<0.000000e+00> : vector<16x16xf32>
    %165 = tpu.matmul %163, %157, %cst_73 {dimension_numbers = #tpu.dot_dimension_numbers<[1], [0], [0], [1], [0, 0, 1, 1], [], []>} : vector<16x16xf32>, vector<16x16xf32>, vector<16x16xf32> -> vector<16x16xf32>
    %cst_74 = arith.constant 3.000000e+00 : f32
    %166 = vector.broadcast %cst_74 : f32 to vector<16x16xf32>
    %167 = arith.mulf %166, %99 : vector<16x16xf32>
    %cst_75 = arith.constant dense<0.000000e+00> : vector<16x16xf32>
    %168 = tpu.matmul %165, %164, %cst_75 {dimension_numbers = #tpu.dot_dimension_numbers<[1], [0], [0], [1], [0, 0, 1, 1], [], []>} : vector<16x16xf32>, vector<16x16xf32>, vector<16x16xf32> -> vector<16x16xf32>
    %169 = arith.subf %167, %168 : vector<16x16xf32>
    %cst_76 = arith.constant 5.000000e-01 : f32
    %170 = vector.broadcast %cst_76 : f32 to vector<16x16xf32>
    %171 = arith.mulf %170, %169 : vector<16x16xf32>
    %cst_77 = arith.constant dense<0.000000e+00> : vector<16x16xf32>
    %172 = tpu.matmul %164, %171, %cst_77 {dimension_numbers = #tpu.dot_dimension_numbers<[1], [0], [0], [1], [0, 0, 1, 1], [], []>} : vector<16x16xf32>, vector<16x16xf32>, vector<16x16xf32> -> vector<16x16xf32>
    %cst_78 = arith.constant dense<0.000000e+00> : vector<16x16xf32>
    %173 = tpu.matmul %171, %165, %cst_78 {dimension_numbers = #tpu.dot_dimension_numbers<[1], [0], [0], [1], [0, 0, 1, 1], [], []>} : vector<16x16xf32>, vector<16x16xf32>, vector<16x16xf32> -> vector<16x16xf32>
    %cst_79 = arith.constant 3.000000e+00 : f32
    %174 = vector.broadcast %cst_79 : f32 to vector<16x16xf32>
    %175 = arith.mulf %174, %99 : vector<16x16xf32>
    %cst_80 = arith.constant dense<0.000000e+00> : vector<16x16xf32>
    %176 = tpu.matmul %173, %172, %cst_80 {dimension_numbers = #tpu.dot_dimension_numbers<[1], [0], [0], [1], [0, 0, 1, 1], [], []>} : vector<16x16xf32>, vector<16x16xf32>, vector<16x16xf32> -> vector<16x16xf32>
    %177 = arith.subf %175, %176 : vector<16x16xf32>
    %cst_81 = arith.constant 5.000000e-01 : f32
    %178 = vector.broadcast %cst_81 : f32 to vector<16x16xf32>
    %179 = arith.mulf %178, %177 : vector<16x16xf32>
    %cst_82 = arith.constant dense<0.000000e+00> : vector<16x16xf32>
    %180 = tpu.matmul %172, %179, %cst_82 {dimension_numbers = #tpu.dot_dimension_numbers<[1], [0], [0], [1], [0, 0, 1, 1], [], []>} : vector<16x16xf32>, vector<16x16xf32>, vector<16x16xf32> -> vector<16x16xf32>
    %cst_83 = arith.constant dense<0.000000e+00> : vector<16x16xf32>
    %181 = tpu.matmul %179, %173, %cst_83 {dimension_numbers = #tpu.dot_dimension_numbers<[1], [0], [0], [1], [0, 0, 1, 1], [], []>} : vector<16x16xf32>, vector<16x16xf32>, vector<16x16xf32> -> vector<16x16xf32>
    %cst_84 = arith.constant 3.000000e+00 : f32
    %182 = vector.broadcast %cst_84 : f32 to vector<16x16xf32>
    %183 = arith.mulf %182, %99 : vector<16x16xf32>
    %cst_85 = arith.constant dense<0.000000e+00> : vector<16x16xf32>
    %184 = tpu.matmul %181, %180, %cst_85 {dimension_numbers = #tpu.dot_dimension_numbers<[1], [0], [0], [1], [0, 0, 1, 1], [], []>} : vector<16x16xf32>, vector<16x16xf32>, vector<16x16xf32> -> vector<16x16xf32>
    %185 = arith.subf %183, %184 : vector<16x16xf32>
    %cst_86 = arith.constant 5.000000e-01 : f32
    %186 = vector.broadcast %cst_86 : f32 to vector<16x16xf32>
    %187 = arith.mulf %186, %185 : vector<16x16xf32>
    %cst_87 = arith.constant dense<0.000000e+00> : vector<16x16xf32>
    %188 = tpu.matmul %180, %187, %cst_87 {dimension_numbers = #tpu.dot_dimension_numbers<[1], [0], [0], [1], [0, 0, 1, 1], [], []>} : vector<16x16xf32>, vector<16x16xf32>, vector<16x16xf32> -> vector<16x16xf32>
    %cst_88 = arith.constant dense<0.000000e+00> : vector<16x16xf32>
    %189 = tpu.matmul %187, %181, %cst_88 {dimension_numbers = #tpu.dot_dimension_numbers<[1], [0], [0], [1], [0, 0, 1, 1], [], []>} : vector<16x16xf32>, vector<16x16xf32>, vector<16x16xf32> -> vector<16x16xf32>
    %cst_89 = arith.constant 3.000000e+00 : f32
    %190 = vector.broadcast %cst_89 : f32 to vector<16x16xf32>
    %191 = arith.mulf %190, %99 : vector<16x16xf32>
    %cst_90 = arith.constant dense<0.000000e+00> : vector<16x16xf32>
    %192 = tpu.matmul %189, %188, %cst_90 {dimension_numbers = #tpu.dot_dimension_numbers<[1], [0], [0], [1], [0, 0, 1, 1], [], []>} : vector<16x16xf32>, vector<16x16xf32>, vector<16x16xf32> -> vector<16x16xf32>
    %193 = arith.subf %191, %192 : vector<16x16xf32>
    %cst_91 = arith.constant 5.000000e-01 : f32
    %194 = vector.broadcast %cst_91 : f32 to vector<16x16xf32>
    %195 = arith.mulf %194, %193 : vector<16x16xf32>
    %cst_92 = arith.constant dense<0.000000e+00> : vector<16x16xf32>
    %196 = tpu.matmul %188, %195, %cst_92 {dimension_numbers = #tpu.dot_dimension_numbers<[1], [0], [0], [1], [0, 0, 1, 1], [], []>} : vector<16x16xf32>, vector<16x16xf32>, vector<16x16xf32> -> vector<16x16xf32>
    %cst_93 = arith.constant dense<0.000000e+00> : vector<16x16xf32>
    %197 = tpu.matmul %195, %189, %cst_93 {dimension_numbers = #tpu.dot_dimension_numbers<[1], [0], [0], [1], [0, 0, 1, 1], [], []>} : vector<16x16xf32>, vector<16x16xf32>, vector<16x16xf32> -> vector<16x16xf32>
    %cst_94 = arith.constant 3.000000e+00 : f32
    %198 = vector.broadcast %cst_94 : f32 to vector<16x16xf32>
    %199 = arith.mulf %198, %99 : vector<16x16xf32>
    %cst_95 = arith.constant dense<0.000000e+00> : vector<16x16xf32>
    %200 = tpu.matmul %197, %196, %cst_95 {dimension_numbers = #tpu.dot_dimension_numbers<[1], [0], [0], [1], [0, 0, 1, 1], [], []>} : vector<16x16xf32>, vector<16x16xf32>, vector<16x16xf32> -> vector<16x16xf32>
    %201 = arith.subf %199, %200 : vector<16x16xf32>
    %cst_96 = arith.constant 5.000000e-01 : f32
    %202 = vector.broadcast %cst_96 : f32 to vector<16x16xf32>
    %203 = arith.mulf %202, %201 : vector<16x16xf32>
    %cst_97 = arith.constant dense<0.000000e+00> : vector<16x16xf32>
    %204 = tpu.matmul %196, %203, %cst_97 {dimension_numbers = #tpu.dot_dimension_numbers<[1], [0], [0], [1], [0, 0, 1, 1], [], []>} : vector<16x16xf32>, vector<16x16xf32>, vector<16x16xf32> -> vector<16x16xf32>
    %cst_98 = arith.constant dense<0.000000e+00> : vector<16x16xf32>
    %205 = tpu.matmul %203, %197, %cst_98 {dimension_numbers = #tpu.dot_dimension_numbers<[1], [0], [0], [1], [0, 0, 1, 1], [], []>} : vector<16x16xf32>, vector<16x16xf32>, vector<16x16xf32> -> vector<16x16xf32>
    %cst_99 = arith.constant 3.000000e+00 : f32
    %206 = vector.broadcast %cst_99 : f32 to vector<16x16xf32>
    %207 = arith.mulf %206, %99 : vector<16x16xf32>
    %cst_100 = arith.constant dense<0.000000e+00> : vector<16x16xf32>
    %208 = tpu.matmul %205, %204, %cst_100 {dimension_numbers = #tpu.dot_dimension_numbers<[1], [0], [0], [1], [0, 0, 1, 1], [], []>} : vector<16x16xf32>, vector<16x16xf32>, vector<16x16xf32> -> vector<16x16xf32>
    %209 = arith.subf %207, %208 : vector<16x16xf32>
    %cst_101 = arith.constant 5.000000e-01 : f32
    %210 = vector.broadcast %cst_101 : f32 to vector<16x16xf32>
    %211 = arith.mulf %210, %209 : vector<16x16xf32>
    %cst_102 = arith.constant dense<0.000000e+00> : vector<16x16xf32>
    %212 = tpu.matmul %204, %211, %cst_102 {dimension_numbers = #tpu.dot_dimension_numbers<[1], [0], [0], [1], [0, 0, 1, 1], [], []>} : vector<16x16xf32>, vector<16x16xf32>, vector<16x16xf32> -> vector<16x16xf32>
    %cst_103 = arith.constant dense<0.000000e+00> : vector<16x16xf32>
    %213 = tpu.matmul %211, %205, %cst_103 {dimension_numbers = #tpu.dot_dimension_numbers<[1], [0], [0], [1], [0, 0, 1, 1], [], []>} : vector<16x16xf32>, vector<16x16xf32>, vector<16x16xf32> -> vector<16x16xf32>
    %cst_104 = arith.constant 3.000000e+00 : f32
    %214 = vector.broadcast %cst_104 : f32 to vector<16x16xf32>
    %215 = arith.mulf %214, %99 : vector<16x16xf32>
    %cst_105 = arith.constant dense<0.000000e+00> : vector<16x16xf32>
    %216 = tpu.matmul %213, %212, %cst_105 {dimension_numbers = #tpu.dot_dimension_numbers<[1], [0], [0], [1], [0, 0, 1, 1], [], []>} : vector<16x16xf32>, vector<16x16xf32>, vector<16x16xf32> -> vector<16x16xf32>
    %217 = arith.subf %215, %216 : vector<16x16xf32>
    %cst_106 = arith.constant 5.000000e-01 : f32
    %218 = vector.broadcast %cst_106 : f32 to vector<16x16xf32>
    %219 = arith.mulf %218, %217 : vector<16x16xf32>
    %cst_107 = arith.constant dense<0.000000e+00> : vector<16x16xf32>
    %220 = tpu.matmul %212, %219, %cst_107 {dimension_numbers = #tpu.dot_dimension_numbers<[1], [0], [0], [1], [0, 0, 1, 1], [], []>} : vector<16x16xf32>, vector<16x16xf32>, vector<16x16xf32> -> vector<16x16xf32>
    %cst_108 = arith.constant dense<0.000000e+00> : vector<16x16xf32>
    %221 = tpu.matmul %219, %213, %cst_108 {dimension_numbers = #tpu.dot_dimension_numbers<[1], [0], [0], [1], [0, 0, 1, 1], [], []>} : vector<16x16xf32>, vector<16x16xf32>, vector<16x16xf32> -> vector<16x16xf32>
    %cst_109 = arith.constant 3.000000e+00 : f32
    %222 = vector.broadcast %cst_109 : f32 to vector<16x16xf32>
    %223 = arith.mulf %222, %99 : vector<16x16xf32>
    %cst_110 = arith.constant dense<0.000000e+00> : vector<16x16xf32>
    %224 = tpu.matmul %221, %220, %cst_110 {dimension_numbers = #tpu.dot_dimension_numbers<[1], [0], [0], [1], [0, 0, 1, 1], [], []>} : vector<16x16xf32>, vector<16x16xf32>, vector<16x16xf32> -> vector<16x16xf32>
    %225 = arith.subf %223, %224 : vector<16x16xf32>
    %cst_111 = arith.constant 5.000000e-01 : f32
    %226 = vector.broadcast %cst_111 : f32 to vector<16x16xf32>
    %227 = arith.mulf %226, %225 : vector<16x16xf32>
    %cst_112 = arith.constant dense<0.000000e+00> : vector<16x16xf32>
    %228 = tpu.matmul %220, %227, %cst_112 {dimension_numbers = #tpu.dot_dimension_numbers<[1], [0], [0], [1], [0, 0, 1, 1], [], []>} : vector<16x16xf32>, vector<16x16xf32>, vector<16x16xf32> -> vector<16x16xf32>
    %cst_113 = arith.constant dense<0.000000e+00> : vector<16x16xf32>
    %229 = tpu.matmul %227, %221, %cst_113 {dimension_numbers = #tpu.dot_dimension_numbers<[1], [0], [0], [1], [0, 0, 1, 1], [], []>} : vector<16x16xf32>, vector<16x16xf32>, vector<16x16xf32> -> vector<16x16xf32>
    %cst_114 = arith.constant 3.000000e+00 : f32
    %230 = vector.broadcast %cst_114 : f32 to vector<16x16xf32>
    %231 = arith.mulf %230, %99 : vector<16x16xf32>
    %cst_115 = arith.constant dense<0.000000e+00> : vector<16x16xf32>
    %232 = tpu.matmul %229, %228, %cst_115 {dimension_numbers = #tpu.dot_dimension_numbers<[1], [0], [0], [1], [0, 0, 1, 1], [], []>} : vector<16x16xf32>, vector<16x16xf32>, vector<16x16xf32> -> vector<16x16xf32>
    %233 = arith.subf %231, %232 : vector<16x16xf32>
    %cst_116 = arith.constant 5.000000e-01 : f32
    %234 = vector.broadcast %cst_116 : f32 to vector<16x16xf32>
    %235 = arith.mulf %234, %233 : vector<16x16xf32>
    %cst_117 = arith.constant dense<0.000000e+00> : vector<16x16xf32>
    %236 = tpu.matmul %228, %235, %cst_117 {dimension_numbers = #tpu.dot_dimension_numbers<[1], [0], [0], [1], [0, 0, 1, 1], [], []>} : vector<16x16xf32>, vector<16x16xf32>, vector<16x16xf32> -> vector<16x16xf32>
    %cst_118 = arith.constant dense<0.000000e+00> : vector<16x16xf32>
    %237 = tpu.matmul %235, %229, %cst_118 {dimension_numbers = #tpu.dot_dimension_numbers<[1], [0], [0], [1], [0, 0, 1, 1], [], []>} : vector<16x16xf32>, vector<16x16xf32>, vector<16x16xf32> -> vector<16x16xf32>
    %cst_119 = arith.constant 3.000000e+00 : f32
    %238 = vector.broadcast %cst_119 : f32 to vector<16x16xf32>
    %239 = arith.mulf %238, %99 : vector<16x16xf32>
    %cst_120 = arith.constant dense<0.000000e+00> : vector<16x16xf32>
    %240 = tpu.matmul %237, %236, %cst_120 {dimension_numbers = #tpu.dot_dimension_numbers<[1], [0], [0], [1], [0, 0, 1, 1], [], []>} : vector<16x16xf32>, vector<16x16xf32>, vector<16x16xf32> -> vector<16x16xf32>
    %241 = arith.subf %239, %240 : vector<16x16xf32>
    %cst_121 = arith.constant 5.000000e-01 : f32
    %242 = vector.broadcast %cst_121 : f32 to vector<16x16xf32>
    %243 = arith.mulf %242, %241 : vector<16x16xf32>
    %cst_122 = arith.constant dense<0.000000e+00> : vector<16x16xf32>
    %244 = tpu.matmul %236, %243, %cst_122 {dimension_numbers = #tpu.dot_dimension_numbers<[1], [0], [0], [1], [0, 0, 1, 1], [], []>} : vector<16x16xf32>, vector<16x16xf32>, vector<16x16xf32> -> vector<16x16xf32>
    %cst_123 = arith.constant dense<0.000000e+00> : vector<16x16xf32>
    %245 = tpu.matmul %243, %237, %cst_123 {dimension_numbers = #tpu.dot_dimension_numbers<[1], [0], [0], [1], [0, 0, 1, 1], [], []>} : vector<16x16xf32>, vector<16x16xf32>, vector<16x16xf32> -> vector<16x16xf32>
    %cst_124 = arith.constant 3.000000e+00 : f32
    %246 = vector.broadcast %cst_124 : f32 to vector<16x16xf32>
    %247 = arith.mulf %246, %99 : vector<16x16xf32>
    %cst_125 = arith.constant dense<0.000000e+00> : vector<16x16xf32>
    %248 = tpu.matmul %245, %244, %cst_125 {dimension_numbers = #tpu.dot_dimension_numbers<[1], [0], [0], [1], [0, 0, 1, 1], [], []>} : vector<16x16xf32>, vector<16x16xf32>, vector<16x16xf32> -> vector<16x16xf32>
    %249 = arith.subf %247, %248 : vector<16x16xf32>
    %cst_126 = arith.constant 5.000000e-01 : f32
    %250 = vector.broadcast %cst_126 : f32 to vector<16x16xf32>
    %251 = arith.mulf %250, %249 : vector<16x16xf32>
    %cst_127 = arith.constant dense<0.000000e+00> : vector<16x16xf32>
    %252 = tpu.matmul %244, %251, %cst_127 {dimension_numbers = #tpu.dot_dimension_numbers<[1], [0], [0], [1], [0, 0, 1, 1], [], []>} : vector<16x16xf32>, vector<16x16xf32>, vector<16x16xf32> -> vector<16x16xf32>
    %cst_128 = arith.constant dense<0.000000e+00> : vector<16x16xf32>
    %253 = tpu.matmul %251, %245, %cst_128 {dimension_numbers = #tpu.dot_dimension_numbers<[1], [0], [0], [1], [0, 0, 1, 1], [], []>} : vector<16x16xf32>, vector<16x16xf32>, vector<16x16xf32> -> vector<16x16xf32>
    %cst_129 = arith.constant 3.000000e+00 : f32
    %254 = vector.broadcast %cst_129 : f32 to vector<16x16xf32>
    %255 = arith.mulf %254, %99 : vector<16x16xf32>
    %cst_130 = arith.constant dense<0.000000e+00> : vector<16x16xf32>
    %256 = tpu.matmul %253, %252, %cst_130 {dimension_numbers = #tpu.dot_dimension_numbers<[1], [0], [0], [1], [0, 0, 1, 1], [], []>} : vector<16x16xf32>, vector<16x16xf32>, vector<16x16xf32> -> vector<16x16xf32>
    %257 = arith.subf %255, %256 : vector<16x16xf32>
    %cst_131 = arith.constant 5.000000e-01 : f32
    %258 = vector.broadcast %cst_131 : f32 to vector<16x16xf32>
    %259 = arith.mulf %258, %257 : vector<16x16xf32>
    %cst_132 = arith.constant dense<0.000000e+00> : vector<16x16xf32>
    %260 = tpu.matmul %252, %259, %cst_132 {dimension_numbers = #tpu.dot_dimension_numbers<[1], [0], [0], [1], [0, 0, 1, 1], [], []>} : vector<16x16xf32>, vector<16x16xf32>, vector<16x16xf32> -> vector<16x16xf32>
    %cst_133 = arith.constant dense<0.000000e+00> : vector<16x16xf32>
    %261 = tpu.matmul %259, %253, %cst_133 {dimension_numbers = #tpu.dot_dimension_numbers<[1], [0], [0], [1], [0, 0, 1, 1], [], []>} : vector<16x16xf32>, vector<16x16xf32>, vector<16x16xf32> -> vector<16x16xf32>
    %cst_134 = arith.constant 3.000000e+00 : f32
    %262 = vector.broadcast %cst_134 : f32 to vector<16x16xf32>
    %263 = arith.mulf %262, %99 : vector<16x16xf32>
    %cst_135 = arith.constant dense<0.000000e+00> : vector<16x16xf32>
    %264 = tpu.matmul %261, %260, %cst_135 {dimension_numbers = #tpu.dot_dimension_numbers<[1], [0], [0], [1], [0, 0, 1, 1], [], []>} : vector<16x16xf32>, vector<16x16xf32>, vector<16x16xf32> -> vector<16x16xf32>
    %265 = arith.subf %263, %264 : vector<16x16xf32>
    %cst_136 = arith.constant 5.000000e-01 : f32
    %266 = vector.broadcast %cst_136 : f32 to vector<16x16xf32>
    %267 = arith.mulf %266, %265 : vector<16x16xf32>
    %cst_137 = arith.constant dense<0.000000e+00> : vector<16x16xf32>
    %268 = tpu.matmul %260, %267, %cst_137 {dimension_numbers = #tpu.dot_dimension_numbers<[1], [0], [0], [1], [0, 0, 1, 1], [], []>} : vector<16x16xf32>, vector<16x16xf32>, vector<16x16xf32> -> vector<16x16xf32>
    %269 = math.sqrt %107 : f32
    %270 = arith.mulf %268, %99 : vector<16x16xf32>
    %271 = vector.shape_cast %270 : vector<16x16xf32> to vector<1x16x16xf32>
    %cst_138 = arith.constant dense<0.000000e+00> : vector<1xf32>
    %272 = vector.multi_reduction <add>, %271, %cst_138 [1, 2] : vector<1x16x16xf32> to vector<1xf32>
    %273 = vector.shape_cast %272 : vector<1xf32> to vector<1x1x1xf32>
    %274 = vector.extract %273[0, 0, 0] : f32 from vector<1x1x1xf32>
    %275 = arith.mulf %269, %274 : f32
    %276 = arith.mulf %101, %99 : vector<16x16xf32>
    %277 = vector.shape_cast %276 : vector<16x16xf32> to vector<1x16x16xf32>
    %cst_139 = arith.constant dense<0.000000e+00> : vector<1xf32>
    %278 = vector.multi_reduction <add>, %277, %cst_139 [1, 2] : vector<1x16x16xf32> to vector<1xf32>
    %279 = vector.shape_cast %278 : vector<1xf32> to vector<1x1x1xf32>
    %280 = vector.extract %279[0, 0, 0] : f32 from vector<1x1x1xf32>
    %cst_140 = arith.constant 9.99999996E-13 : f32
    %281 = arith.maximumf %280, %cst_140 : f32
    %282 = vector.broadcast %281 : f32 to vector<16x16xf32>
    %283 = arith.divf %101, %282 : vector<16x16xf32>
    %cst_141 = arith.constant 3.000000e+00 : f32
    %284 = vector.broadcast %cst_141 : f32 to vector<16x16xf32>
    %285 = arith.mulf %284, %99 : vector<16x16xf32>
    %cst_142 = arith.constant dense<0.000000e+00> : vector<16x16xf32>
    %286 = tpu.matmul %99, %283, %cst_142 {dimension_numbers = #tpu.dot_dimension_numbers<[1], [0], [0], [1], [0, 0, 1, 1], [], []>} : vector<16x16xf32>, vector<16x16xf32>, vector<16x16xf32> -> vector<16x16xf32>
    %287 = arith.subf %285, %286 : vector<16x16xf32>
    %cst_143 = arith.constant 5.000000e-01 : f32
    %288 = vector.broadcast %cst_143 : f32 to vector<16x16xf32>
    %289 = arith.mulf %288, %287 : vector<16x16xf32>
    %cst_144 = arith.constant dense<0.000000e+00> : vector<16x16xf32>
    %290 = tpu.matmul %283, %289, %cst_144 {dimension_numbers = #tpu.dot_dimension_numbers<[1], [0], [0], [1], [0, 0, 1, 1], [], []>} : vector<16x16xf32>, vector<16x16xf32>, vector<16x16xf32> -> vector<16x16xf32>
    %cst_145 = arith.constant dense<0.000000e+00> : vector<16x16xf32>
    %291 = tpu.matmul %289, %99, %cst_145 {dimension_numbers = #tpu.dot_dimension_numbers<[1], [0], [0], [1], [0, 0, 1, 1], [], []>} : vector<16x16xf32>, vector<16x16xf32>, vector<16x16xf32> -> vector<16x16xf32>
    %cst_146 = arith.constant 3.000000e+00 : f32
    %292 = vector.broadcast %cst_146 : f32 to vector<16x16xf32>
    %293 = arith.mulf %292, %99 : vector<16x16xf32>
    %cst_147 = arith.constant dense<0.000000e+00> : vector<16x16xf32>
    %294 = tpu.matmul %291, %290, %cst_147 {dimension_numbers = #tpu.dot_dimension_numbers<[1], [0], [0], [1], [0, 0, 1, 1], [], []>} : vector<16x16xf32>, vector<16x16xf32>, vector<16x16xf32> -> vector<16x16xf32>
    %295 = arith.subf %293, %294 : vector<16x16xf32>
    %cst_148 = arith.constant 5.000000e-01 : f32
    %296 = vector.broadcast %cst_148 : f32 to vector<16x16xf32>
    %297 = arith.mulf %296, %295 : vector<16x16xf32>
    %cst_149 = arith.constant dense<0.000000e+00> : vector<16x16xf32>
    %298 = tpu.matmul %290, %297, %cst_149 {dimension_numbers = #tpu.dot_dimension_numbers<[1], [0], [0], [1], [0, 0, 1, 1], [], []>} : vector<16x16xf32>, vector<16x16xf32>, vector<16x16xf32> -> vector<16x16xf32>
    %cst_150 = arith.constant dense<0.000000e+00> : vector<16x16xf32>
    %299 = tpu.matmul %297, %291, %cst_150 {dimension_numbers = #tpu.dot_dimension_numbers<[1], [0], [0], [1], [0, 0, 1, 1], [], []>} : vector<16x16xf32>, vector<16x16xf32>, vector<16x16xf32> -> vector<16x16xf32>
    %cst_151 = arith.constant 3.000000e+00 : f32
    %300 = vector.broadcast %cst_151 : f32 to vector<16x16xf32>
    %301 = arith.mulf %300, %99 : vector<16x16xf32>
    %cst_152 = arith.constant dense<0.000000e+00> : vector<16x16xf32>
    %302 = tpu.matmul %299, %298, %cst_152 {dimension_numbers = #tpu.dot_dimension_numbers<[1], [0], [0], [1], [0, 0, 1, 1], [], []>} : vector<16x16xf32>, vector<16x16xf32>, vector<16x16xf32> -> vector<16x16xf32>
    %303 = arith.subf %301, %302 : vector<16x16xf32>
    %cst_153 = arith.constant 5.000000e-01 : f32
    %304 = vector.broadcast %cst_153 : f32 to vector<16x16xf32>
    %305 = arith.mulf %304, %303 : vector<16x16xf32>
    %cst_154 = arith.constant dense<0.000000e+00> : vector<16x16xf32>
    %306 = tpu.matmul %298, %305, %cst_154 {dimension_numbers = #tpu.dot_dimension_numbers<[1], [0], [0], [1], [0, 0, 1, 1], [], []>} : vector<16x16xf32>, vector<16x16xf32>, vector<16x16xf32> -> vector<16x16xf32>
    %cst_155 = arith.constant dense<0.000000e+00> : vector<16x16xf32>
    %307 = tpu.matmul %305, %299, %cst_155 {dimension_numbers = #tpu.dot_dimension_numbers<[1], [0], [0], [1], [0, 0, 1, 1], [], []>} : vector<16x16xf32>, vector<16x16xf32>, vector<16x16xf32> -> vector<16x16xf32>
    %cst_156 = arith.constant 3.000000e+00 : f32
    %308 = vector.broadcast %cst_156 : f32 to vector<16x16xf32>
    %309 = arith.mulf %308, %99 : vector<16x16xf32>
    %cst_157 = arith.constant dense<0.000000e+00> : vector<16x16xf32>
    %310 = tpu.matmul %307, %306, %cst_157 {dimension_numbers = #tpu.dot_dimension_numbers<[1], [0], [0], [1], [0, 0, 1, 1], [], []>} : vector<16x16xf32>, vector<16x16xf32>, vector<16x16xf32> -> vector<16x16xf32>
    %311 = arith.subf %309, %310 : vector<16x16xf32>
    %cst_158 = arith.constant 5.000000e-01 : f32
    %312 = vector.broadcast %cst_158 : f32 to vector<16x16xf32>
    %313 = arith.mulf %312, %311 : vector<16x16xf32>
    %cst_159 = arith.constant dense<0.000000e+00> : vector<16x16xf32>
    %314 = tpu.matmul %306, %313, %cst_159 {dimension_numbers = #tpu.dot_dimension_numbers<[1], [0], [0], [1], [0, 0, 1, 1], [], []>} : vector<16x16xf32>, vector<16x16xf32>, vector<16x16xf32> -> vector<16x16xf32>
    %cst_160 = arith.constant dense<0.000000e+00> : vector<16x16xf32>
    %315 = tpu.matmul %313, %307, %cst_160 {dimension_numbers = #tpu.dot_dimension_numbers<[1], [0], [0], [1], [0, 0, 1, 1], [], []>} : vector<16x16xf32>, vector<16x16xf32>, vector<16x16xf32> -> vector<16x16xf32>
    %cst_161 = arith.constant 3.000000e+00 : f32
    %316 = vector.broadcast %cst_161 : f32 to vector<16x16xf32>
    %317 = arith.mulf %316, %99 : vector<16x16xf32>
    %cst_162 = arith.constant dense<0.000000e+00> : vector<16x16xf32>
    %318 = tpu.matmul %315, %314, %cst_162 {dimension_numbers = #tpu.dot_dimension_numbers<[1], [0], [0], [1], [0, 0, 1, 1], [], []>} : vector<16x16xf32>, vector<16x16xf32>, vector<16x16xf32> -> vector<16x16xf32>
    %319 = arith.subf %317, %318 : vector<16x16xf32>
    %cst_163 = arith.constant 5.000000e-01 : f32
    %320 = vector.broadcast %cst_163 : f32 to vector<16x16xf32>
    %321 = arith.mulf %320, %319 : vector<16x16xf32>
    %cst_164 = arith.constant dense<0.000000e+00> : vector<16x16xf32>
    %322 = tpu.matmul %314, %321, %cst_164 {dimension_numbers = #tpu.dot_dimension_numbers<[1], [0], [0], [1], [0, 0, 1, 1], [], []>} : vector<16x16xf32>, vector<16x16xf32>, vector<16x16xf32> -> vector<16x16xf32>
    %cst_165 = arith.constant dense<0.000000e+00> : vector<16x16xf32>
    %323 = tpu.matmul %321, %315, %cst_165 {dimension_numbers = #tpu.dot_dimension_numbers<[1], [0], [0], [1], [0, 0, 1, 1], [], []>} : vector<16x16xf32>, vector<16x16xf32>, vector<16x16xf32> -> vector<16x16xf32>
    %cst_166 = arith.constant 3.000000e+00 : f32
    %324 = vector.broadcast %cst_166 : f32 to vector<16x16xf32>
    %325 = arith.mulf %324, %99 : vector<16x16xf32>
    %cst_167 = arith.constant dense<0.000000e+00> : vector<16x16xf32>
    %326 = tpu.matmul %323, %322, %cst_167 {dimension_numbers = #tpu.dot_dimension_numbers<[1], [0], [0], [1], [0, 0, 1, 1], [], []>} : vector<16x16xf32>, vector<16x16xf32>, vector<16x16xf32> -> vector<16x16xf32>
    %327 = arith.subf %325, %326 : vector<16x16xf32>
    %cst_168 = arith.constant 5.000000e-01 : f32
    %328 = vector.broadcast %cst_168 : f32 to vector<16x16xf32>
    %329 = arith.mulf %328, %327 : vector<16x16xf32>
    %cst_169 = arith.constant dense<0.000000e+00> : vector<16x16xf32>
    %330 = tpu.matmul %322, %329, %cst_169 {dimension_numbers = #tpu.dot_dimension_numbers<[1], [0], [0], [1], [0, 0, 1, 1], [], []>} : vector<16x16xf32>, vector<16x16xf32>, vector<16x16xf32> -> vector<16x16xf32>
    %cst_170 = arith.constant dense<0.000000e+00> : vector<16x16xf32>
    %331 = tpu.matmul %329, %323, %cst_170 {dimension_numbers = #tpu.dot_dimension_numbers<[1], [0], [0], [1], [0, 0, 1, 1], [], []>} : vector<16x16xf32>, vector<16x16xf32>, vector<16x16xf32> -> vector<16x16xf32>
    %cst_171 = arith.constant 3.000000e+00 : f32
    %332 = vector.broadcast %cst_171 : f32 to vector<16x16xf32>
    %333 = arith.mulf %332, %99 : vector<16x16xf32>
    %cst_172 = arith.constant dense<0.000000e+00> : vector<16x16xf32>
    %334 = tpu.matmul %331, %330, %cst_172 {dimension_numbers = #tpu.dot_dimension_numbers<[1], [0], [0], [1], [0, 0, 1, 1], [], []>} : vector<16x16xf32>, vector<16x16xf32>, vector<16x16xf32> -> vector<16x16xf32>
    %335 = arith.subf %333, %334 : vector<16x16xf32>
    %cst_173 = arith.constant 5.000000e-01 : f32
    %336 = vector.broadcast %cst_173 : f32 to vector<16x16xf32>
    %337 = arith.mulf %336, %335 : vector<16x16xf32>
    %cst_174 = arith.constant dense<0.000000e+00> : vector<16x16xf32>
    %338 = tpu.matmul %330, %337, %cst_174 {dimension_numbers = #tpu.dot_dimension_numbers<[1], [0], [0], [1], [0, 0, 1, 1], [], []>} : vector<16x16xf32>, vector<16x16xf32>, vector<16x16xf32> -> vector<16x16xf32>
    %cst_175 = arith.constant dense<0.000000e+00> : vector<16x16xf32>
    %339 = tpu.matmul %337, %331, %cst_175 {dimension_numbers = #tpu.dot_dimension_numbers<[1], [0], [0], [1], [0, 0, 1, 1], [], []>} : vector<16x16xf32>, vector<16x16xf32>, vector<16x16xf32> -> vector<16x16xf32>
    %cst_176 = arith.constant 3.000000e+00 : f32
    %340 = vector.broadcast %cst_176 : f32 to vector<16x16xf32>
    %341 = arith.mulf %340, %99 : vector<16x16xf32>
    %cst_177 = arith.constant dense<0.000000e+00> : vector<16x16xf32>
    %342 = tpu.matmul %339, %338, %cst_177 {dimension_numbers = #tpu.dot_dimension_numbers<[1], [0], [0], [1], [0, 0, 1, 1], [], []>} : vector<16x16xf32>, vector<16x16xf32>, vector<16x16xf32> -> vector<16x16xf32>
    %343 = arith.subf %341, %342 : vector<16x16xf32>
    %cst_178 = arith.constant 5.000000e-01 : f32
    %344 = vector.broadcast %cst_178 : f32 to vector<16x16xf32>
    %345 = arith.mulf %344, %343 : vector<16x16xf32>
    %cst_179 = arith.constant dense<0.000000e+00> : vector<16x16xf32>
    %346 = tpu.matmul %338, %345, %cst_179 {dimension_numbers = #tpu.dot_dimension_numbers<[1], [0], [0], [1], [0, 0, 1, 1], [], []>} : vector<16x16xf32>, vector<16x16xf32>, vector<16x16xf32> -> vector<16x16xf32>
    %cst_180 = arith.constant dense<0.000000e+00> : vector<16x16xf32>
    %347 = tpu.matmul %345, %339, %cst_180 {dimension_numbers = #tpu.dot_dimension_numbers<[1], [0], [0], [1], [0, 0, 1, 1], [], []>} : vector<16x16xf32>, vector<16x16xf32>, vector<16x16xf32> -> vector<16x16xf32>
    %cst_181 = arith.constant 3.000000e+00 : f32
    %348 = vector.broadcast %cst_181 : f32 to vector<16x16xf32>
    %349 = arith.mulf %348, %99 : vector<16x16xf32>
    %cst_182 = arith.constant dense<0.000000e+00> : vector<16x16xf32>
    %350 = tpu.matmul %347, %346, %cst_182 {dimension_numbers = #tpu.dot_dimension_numbers<[1], [0], [0], [1], [0, 0, 1, 1], [], []>} : vector<16x16xf32>, vector<16x16xf32>, vector<16x16xf32> -> vector<16x16xf32>
    %351 = arith.subf %349, %350 : vector<16x16xf32>
    %cst_183 = arith.constant 5.000000e-01 : f32
    %352 = vector.broadcast %cst_183 : f32 to vector<16x16xf32>
    %353 = arith.mulf %352, %351 : vector<16x16xf32>
    %cst_184 = arith.constant dense<0.000000e+00> : vector<16x16xf32>
    %354 = tpu.matmul %346, %353, %cst_184 {dimension_numbers = #tpu.dot_dimension_numbers<[1], [0], [0], [1], [0, 0, 1, 1], [], []>} : vector<16x16xf32>, vector<16x16xf32>, vector<16x16xf32> -> vector<16x16xf32>
    %cst_185 = arith.constant dense<0.000000e+00> : vector<16x16xf32>
    %355 = tpu.matmul %353, %347, %cst_185 {dimension_numbers = #tpu.dot_dimension_numbers<[1], [0], [0], [1], [0, 0, 1, 1], [], []>} : vector<16x16xf32>, vector<16x16xf32>, vector<16x16xf32> -> vector<16x16xf32>
    %cst_186 = arith.constant 3.000000e+00 : f32
    %356 = vector.broadcast %cst_186 : f32 to vector<16x16xf32>
    %357 = arith.mulf %356, %99 : vector<16x16xf32>
    %cst_187 = arith.constant dense<0.000000e+00> : vector<16x16xf32>
    %358 = tpu.matmul %355, %354, %cst_187 {dimension_numbers = #tpu.dot_dimension_numbers<[1], [0], [0], [1], [0, 0, 1, 1], [], []>} : vector<16x16xf32>, vector<16x16xf32>, vector<16x16xf32> -> vector<16x16xf32>
    %359 = arith.subf %357, %358 : vector<16x16xf32>
    %cst_188 = arith.constant 5.000000e-01 : f32
    %360 = vector.broadcast %cst_188 : f32 to vector<16x16xf32>
    %361 = arith.mulf %360, %359 : vector<16x16xf32>
    %cst_189 = arith.constant dense<0.000000e+00> : vector<16x16xf32>
    %362 = tpu.matmul %354, %361, %cst_189 {dimension_numbers = #tpu.dot_dimension_numbers<[1], [0], [0], [1], [0, 0, 1, 1], [], []>} : vector<16x16xf32>, vector<16x16xf32>, vector<16x16xf32> -> vector<16x16xf32>
    %cst_190 = arith.constant dense<0.000000e+00> : vector<16x16xf32>
    %363 = tpu.matmul %361, %355, %cst_190 {dimension_numbers = #tpu.dot_dimension_numbers<[1], [0], [0], [1], [0, 0, 1, 1], [], []>} : vector<16x16xf32>, vector<16x16xf32>, vector<16x16xf32> -> vector<16x16xf32>
    %cst_191 = arith.constant 3.000000e+00 : f32
    %364 = vector.broadcast %cst_191 : f32 to vector<16x16xf32>
    %365 = arith.mulf %364, %99 : vector<16x16xf32>
    %cst_192 = arith.constant dense<0.000000e+00> : vector<16x16xf32>
    %366 = tpu.matmul %363, %362, %cst_192 {dimension_numbers = #tpu.dot_dimension_numbers<[1], [0], [0], [1], [0, 0, 1, 1], [], []>} : vector<16x16xf32>, vector<16x16xf32>, vector<16x16xf32> -> vector<16x16xf32>
    %367 = arith.subf %365, %366 : vector<16x16xf32>
    %cst_193 = arith.constant 5.000000e-01 : f32
    %368 = vector.broadcast %cst_193 : f32 to vector<16x16xf32>
    %369 = arith.mulf %368, %367 : vector<16x16xf32>
    %cst_194 = arith.constant dense<0.000000e+00> : vector<16x16xf32>
    %370 = tpu.matmul %362, %369, %cst_194 {dimension_numbers = #tpu.dot_dimension_numbers<[1], [0], [0], [1], [0, 0, 1, 1], [], []>} : vector<16x16xf32>, vector<16x16xf32>, vector<16x16xf32> -> vector<16x16xf32>
    %cst_195 = arith.constant dense<0.000000e+00> : vector<16x16xf32>
    %371 = tpu.matmul %369, %363, %cst_195 {dimension_numbers = #tpu.dot_dimension_numbers<[1], [0], [0], [1], [0, 0, 1, 1], [], []>} : vector<16x16xf32>, vector<16x16xf32>, vector<16x16xf32> -> vector<16x16xf32>
    %cst_196 = arith.constant 3.000000e+00 : f32
    %372 = vector.broadcast %cst_196 : f32 to vector<16x16xf32>
    %373 = arith.mulf %372, %99 : vector<16x16xf32>
    %cst_197 = arith.constant dense<0.000000e+00> : vector<16x16xf32>
    %374 = tpu.matmul %371, %370, %cst_197 {dimension_numbers = #tpu.dot_dimension_numbers<[1], [0], [0], [1], [0, 0, 1, 1], [], []>} : vector<16x16xf32>, vector<16x16xf32>, vector<16x16xf32> -> vector<16x16xf32>
    %375 = arith.subf %373, %374 : vector<16x16xf32>
    %cst_198 = arith.constant 5.000000e-01 : f32
    %376 = vector.broadcast %cst_198 : f32 to vector<16x16xf32>
    %377 = arith.mulf %376, %375 : vector<16x16xf32>
    %cst_199 = arith.constant dense<0.000000e+00> : vector<16x16xf32>
    %378 = tpu.matmul %370, %377, %cst_199 {dimension_numbers = #tpu.dot_dimension_numbers<[1], [0], [0], [1], [0, 0, 1, 1], [], []>} : vector<16x16xf32>, vector<16x16xf32>, vector<16x16xf32> -> vector<16x16xf32>
    %cst_200 = arith.constant dense<0.000000e+00> : vector<16x16xf32>
    %379 = tpu.matmul %377, %371, %cst_200 {dimension_numbers = #tpu.dot_dimension_numbers<[1], [0], [0], [1], [0, 0, 1, 1], [], []>} : vector<16x16xf32>, vector<16x16xf32>, vector<16x16xf32> -> vector<16x16xf32>
    %cst_201 = arith.constant 3.000000e+00 : f32
    %380 = vector.broadcast %cst_201 : f32 to vector<16x16xf32>
    %381 = arith.mulf %380, %99 : vector<16x16xf32>
    %cst_202 = arith.constant dense<0.000000e+00> : vector<16x16xf32>
    %382 = tpu.matmul %379, %378, %cst_202 {dimension_numbers = #tpu.dot_dimension_numbers<[1], [0], [0], [1], [0, 0, 1, 1], [], []>} : vector<16x16xf32>, vector<16x16xf32>, vector<16x16xf32> -> vector<16x16xf32>
    %383 = arith.subf %381, %382 : vector<16x16xf32>
    %cst_203 = arith.constant 5.000000e-01 : f32
    %384 = vector.broadcast %cst_203 : f32 to vector<16x16xf32>
    %385 = arith.mulf %384, %383 : vector<16x16xf32>
    %cst_204 = arith.constant dense<0.000000e+00> : vector<16x16xf32>
    %386 = tpu.matmul %378, %385, %cst_204 {dimension_numbers = #tpu.dot_dimension_numbers<[1], [0], [0], [1], [0, 0, 1, 1], [], []>} : vector<16x16xf32>, vector<16x16xf32>, vector<16x16xf32> -> vector<16x16xf32>
    %cst_205 = arith.constant dense<0.000000e+00> : vector<16x16xf32>
    %387 = tpu.matmul %385, %379, %cst_205 {dimension_numbers = #tpu.dot_dimension_numbers<[1], [0], [0], [1], [0, 0, 1, 1], [], []>} : vector<16x16xf32>, vector<16x16xf32>, vector<16x16xf32> -> vector<16x16xf32>
    %cst_206 = arith.constant 3.000000e+00 : f32
    %388 = vector.broadcast %cst_206 : f32 to vector<16x16xf32>
    %389 = arith.mulf %388, %99 : vector<16x16xf32>
    %cst_207 = arith.constant dense<0.000000e+00> : vector<16x16xf32>
    %390 = tpu.matmul %387, %386, %cst_207 {dimension_numbers = #tpu.dot_dimension_numbers<[1], [0], [0], [1], [0, 0, 1, 1], [], []>} : vector<16x16xf32>, vector<16x16xf32>, vector<16x16xf32> -> vector<16x16xf32>
    %391 = arith.subf %389, %390 : vector<16x16xf32>
    %cst_208 = arith.constant 5.000000e-01 : f32
    %392 = vector.broadcast %cst_208 : f32 to vector<16x16xf32>
    %393 = arith.mulf %392, %391 : vector<16x16xf32>
    %cst_209 = arith.constant dense<0.000000e+00> : vector<16x16xf32>
    %394 = tpu.matmul %386, %393, %cst_209 {dimension_numbers = #tpu.dot_dimension_numbers<[1], [0], [0], [1], [0, 0, 1, 1], [], []>} : vector<16x16xf32>, vector<16x16xf32>, vector<16x16xf32> -> vector<16x16xf32>
    %cst_210 = arith.constant dense<0.000000e+00> : vector<16x16xf32>
    %395 = tpu.matmul %393, %387, %cst_210 {dimension_numbers = #tpu.dot_dimension_numbers<[1], [0], [0], [1], [0, 0, 1, 1], [], []>} : vector<16x16xf32>, vector<16x16xf32>, vector<16x16xf32> -> vector<16x16xf32>
    %cst_211 = arith.constant 3.000000e+00 : f32
    %396 = vector.broadcast %cst_211 : f32 to vector<16x16xf32>
    %397 = arith.mulf %396, %99 : vector<16x16xf32>
    %cst_212 = arith.constant dense<0.000000e+00> : vector<16x16xf32>
    %398 = tpu.matmul %395, %394, %cst_212 {dimension_numbers = #tpu.dot_dimension_numbers<[1], [0], [0], [1], [0, 0, 1, 1], [], []>} : vector<16x16xf32>, vector<16x16xf32>, vector<16x16xf32> -> vector<16x16xf32>
    %399 = arith.subf %397, %398 : vector<16x16xf32>
    %cst_213 = arith.constant 5.000000e-01 : f32
    %400 = vector.broadcast %cst_213 : f32 to vector<16x16xf32>
    %401 = arith.mulf %400, %399 : vector<16x16xf32>
    %cst_214 = arith.constant dense<0.000000e+00> : vector<16x16xf32>
    %402 = tpu.matmul %394, %401, %cst_214 {dimension_numbers = #tpu.dot_dimension_numbers<[1], [0], [0], [1], [0, 0, 1, 1], [], []>} : vector<16x16xf32>, vector<16x16xf32>, vector<16x16xf32> -> vector<16x16xf32>
    %cst_215 = arith.constant dense<0.000000e+00> : vector<16x16xf32>
    %403 = tpu.matmul %401, %395, %cst_215 {dimension_numbers = #tpu.dot_dimension_numbers<[1], [0], [0], [1], [0, 0, 1, 1], [], []>} : vector<16x16xf32>, vector<16x16xf32>, vector<16x16xf32> -> vector<16x16xf32>
    %cst_216 = arith.constant 3.000000e+00 : f32
    %404 = vector.broadcast %cst_216 : f32 to vector<16x16xf32>
    %405 = arith.mulf %404, %99 : vector<16x16xf32>
    %cst_217 = arith.constant dense<0.000000e+00> : vector<16x16xf32>
    %406 = tpu.matmul %403, %402, %cst_217 {dimension_numbers = #tpu.dot_dimension_numbers<[1], [0], [0], [1], [0, 0, 1, 1], [], []>} : vector<16x16xf32>, vector<16x16xf32>, vector<16x16xf32> -> vector<16x16xf32>
    %407 = arith.subf %405, %406 : vector<16x16xf32>
    %cst_218 = arith.constant 5.000000e-01 : f32
    %408 = vector.broadcast %cst_218 : f32 to vector<16x16xf32>
    %409 = arith.mulf %408, %407 : vector<16x16xf32>
    %cst_219 = arith.constant dense<0.000000e+00> : vector<16x16xf32>
    %410 = tpu.matmul %402, %409, %cst_219 {dimension_numbers = #tpu.dot_dimension_numbers<[1], [0], [0], [1], [0, 0, 1, 1], [], []>} : vector<16x16xf32>, vector<16x16xf32>, vector<16x16xf32> -> vector<16x16xf32>
    %cst_220 = arith.constant dense<0.000000e+00> : vector<16x16xf32>
    %411 = tpu.matmul %409, %403, %cst_220 {dimension_numbers = #tpu.dot_dimension_numbers<[1], [0], [0], [1], [0, 0, 1, 1], [], []>} : vector<16x16xf32>, vector<16x16xf32>, vector<16x16xf32> -> vector<16x16xf32>
    %cst_221 = arith.constant 3.000000e+00 : f32
    %412 = vector.broadcast %cst_221 : f32 to vector<16x16xf32>
    %413 = arith.mulf %412, %99 : vector<16x16xf32>
    %cst_222 = arith.constant dense<0.000000e+00> : vector<16x16xf32>
    %414 = tpu.matmul %411, %410, %cst_222 {dimension_numbers = #tpu.dot_dimension_numbers<[1], [0], [0], [1], [0, 0, 1, 1], [], []>} : vector<16x16xf32>, vector<16x16xf32>, vector<16x16xf32> -> vector<16x16xf32>
    %415 = arith.subf %413, %414 : vector<16x16xf32>
    %cst_223 = arith.constant 5.000000e-01 : f32
    %416 = vector.broadcast %cst_223 : f32 to vector<16x16xf32>
    %417 = arith.mulf %416, %415 : vector<16x16xf32>
    %cst_224 = arith.constant dense<0.000000e+00> : vector<16x16xf32>
    %418 = tpu.matmul %410, %417, %cst_224 {dimension_numbers = #tpu.dot_dimension_numbers<[1], [0], [0], [1], [0, 0, 1, 1], [], []>} : vector<16x16xf32>, vector<16x16xf32>, vector<16x16xf32> -> vector<16x16xf32>
    %cst_225 = arith.constant dense<0.000000e+00> : vector<16x16xf32>
    %419 = tpu.matmul %417, %411, %cst_225 {dimension_numbers = #tpu.dot_dimension_numbers<[1], [0], [0], [1], [0, 0, 1, 1], [], []>} : vector<16x16xf32>, vector<16x16xf32>, vector<16x16xf32> -> vector<16x16xf32>
    %cst_226 = arith.constant 3.000000e+00 : f32
    %420 = vector.broadcast %cst_226 : f32 to vector<16x16xf32>
    %421 = arith.mulf %420, %99 : vector<16x16xf32>
    %cst_227 = arith.constant dense<0.000000e+00> : vector<16x16xf32>
    %422 = tpu.matmul %419, %418, %cst_227 {dimension_numbers = #tpu.dot_dimension_numbers<[1], [0], [0], [1], [0, 0, 1, 1], [], []>} : vector<16x16xf32>, vector<16x16xf32>, vector<16x16xf32> -> vector<16x16xf32>
    %423 = arith.subf %421, %422 : vector<16x16xf32>
    %cst_228 = arith.constant 5.000000e-01 : f32
    %424 = vector.broadcast %cst_228 : f32 to vector<16x16xf32>
    %425 = arith.mulf %424, %423 : vector<16x16xf32>
    %cst_229 = arith.constant dense<0.000000e+00> : vector<16x16xf32>
    %426 = tpu.matmul %418, %425, %cst_229 {dimension_numbers = #tpu.dot_dimension_numbers<[1], [0], [0], [1], [0, 0, 1, 1], [], []>} : vector<16x16xf32>, vector<16x16xf32>, vector<16x16xf32> -> vector<16x16xf32>
    %cst_230 = arith.constant dense<0.000000e+00> : vector<16x16xf32>
    %427 = tpu.matmul %425, %419, %cst_230 {dimension_numbers = #tpu.dot_dimension_numbers<[1], [0], [0], [1], [0, 0, 1, 1], [], []>} : vector<16x16xf32>, vector<16x16xf32>, vector<16x16xf32> -> vector<16x16xf32>
    %cst_231 = arith.constant 3.000000e+00 : f32
    %428 = vector.broadcast %cst_231 : f32 to vector<16x16xf32>
    %429 = arith.mulf %428, %99 : vector<16x16xf32>
    %cst_232 = arith.constant dense<0.000000e+00> : vector<16x16xf32>
    %430 = tpu.matmul %427, %426, %cst_232 {dimension_numbers = #tpu.dot_dimension_numbers<[1], [0], [0], [1], [0, 0, 1, 1], [], []>} : vector<16x16xf32>, vector<16x16xf32>, vector<16x16xf32> -> vector<16x16xf32>
    %431 = arith.subf %429, %430 : vector<16x16xf32>
    %cst_233 = arith.constant 5.000000e-01 : f32
    %432 = vector.broadcast %cst_233 : f32 to vector<16x16xf32>
    %433 = arith.mulf %432, %431 : vector<16x16xf32>
    %cst_234 = arith.constant dense<0.000000e+00> : vector<16x16xf32>
    %434 = tpu.matmul %426, %433, %cst_234 {dimension_numbers = #tpu.dot_dimension_numbers<[1], [0], [0], [1], [0, 0, 1, 1], [], []>} : vector<16x16xf32>, vector<16x16xf32>, vector<16x16xf32> -> vector<16x16xf32>
    %cst_235 = arith.constant dense<0.000000e+00> : vector<16x16xf32>
    %435 = tpu.matmul %433, %427, %cst_235 {dimension_numbers = #tpu.dot_dimension_numbers<[1], [0], [0], [1], [0, 0, 1, 1], [], []>} : vector<16x16xf32>, vector<16x16xf32>, vector<16x16xf32> -> vector<16x16xf32>
    %cst_236 = arith.constant 3.000000e+00 : f32
    %436 = vector.broadcast %cst_236 : f32 to vector<16x16xf32>
    %437 = arith.mulf %436, %99 : vector<16x16xf32>
    %cst_237 = arith.constant dense<0.000000e+00> : vector<16x16xf32>
    %438 = tpu.matmul %435, %434, %cst_237 {dimension_numbers = #tpu.dot_dimension_numbers<[1], [0], [0], [1], [0, 0, 1, 1], [], []>} : vector<16x16xf32>, vector<16x16xf32>, vector<16x16xf32> -> vector<16x16xf32>
    %439 = arith.subf %437, %438 : vector<16x16xf32>
    %cst_238 = arith.constant 5.000000e-01 : f32
    %440 = vector.broadcast %cst_238 : f32 to vector<16x16xf32>
    %441 = arith.mulf %440, %439 : vector<16x16xf32>
    %cst_239 = arith.constant dense<0.000000e+00> : vector<16x16xf32>
    %442 = tpu.matmul %434, %441, %cst_239 {dimension_numbers = #tpu.dot_dimension_numbers<[1], [0], [0], [1], [0, 0, 1, 1], [], []>} : vector<16x16xf32>, vector<16x16xf32>, vector<16x16xf32> -> vector<16x16xf32>
    %443 = math.sqrt %281 : f32
    %444 = arith.mulf %442, %99 : vector<16x16xf32>
    %445 = vector.shape_cast %444 : vector<16x16xf32> to vector<1x16x16xf32>
    %cst_240 = arith.constant dense<0.000000e+00> : vector<1xf32>
    %446 = vector.multi_reduction <add>, %445, %cst_240 [1, 2] : vector<1x16x16xf32> to vector<1xf32>
    %447 = vector.shape_cast %446 : vector<1xf32> to vector<1x1x1xf32>
    %448 = vector.extract %447[0, 0, 0] : f32 from vector<1x1x1xf32>
    %449 = arith.mulf %443, %448 : f32
    %450 = arith.subf %275, %449 : f32
    %cst_241 = arith.constant 1.250000e-01 : f32
    %451 = arith.mulf %450, %cst_241 : f32
    %452 = arith.subf %54, %451 : f32
    %c0_242 = arith.constant 0 : index
    %453 = memref.load %arg5[%c0_242] : memref<1xf32, #tpu.memory_space<smem>>
    memref.store %452, %arg5[%c0_242] : memref<1xf32, #tpu.memory_space<smem>>
    return
  }
}

</mosaic_0001>

<bundles_post_ra>
// kernel: tpu_custom_call.1
= control target key start
LH: loop header
LB: loop body
LE: loop exit
PB: predicated region body
PF: predicated region fallthrough
CT: control target
= control target key end

     0   :  { %vm27_vm0 = vcmask 130048   ;;  %s13258_s0 = inlined_call_operand.vmem [shape: f32[16,16], index: 0, kind: input, shape index: {}]   ;;  %s13259_s1 = inlined_call_operand.vmem [shape: f32[16,1], index: 1, kind: input, shape index: {}]   ;;  %s13260_s2 = inlined_call_operand.vmem [shape: f32[16,32], index: 2, kind: input, shape index: {}]   ;;  %s13261_s3 = inlined_call_operand.vmem [shape: f32[33,32], index: 3, kind: input, shape index: {}]   ;;  %s13262_s4 = inlined_call_operand.vmem [shape: f32[33,16], index: 4, kind: input, shape index: {}]   ;;  %s13263_s5 = inlined_call_operand.hbm [shape: f32[1], index: 5, kind: output, shape index: {}]  }
   0x1   :  { %v23_v0 = vld [vmem:[%s13258_s0] sm:$0xff]  ;;  %v24_v1 = vld [vmem:[%s13258_s0 + $0x8] sm:$0xff] }
   0x2   :  { %10 = vsyncpa [#allocation3], 0  ;;  %v25_v2 = vmul.f32 0.4, %v23_v0  ;;  %v26_v3 = vmul.f32 0.4, %v24_v1 }
   0x3   :  { %v12754_v43 = vld [vmem:[%s13259_s1] sm:$0xff]  ;;  %v12759_v45 = vld [vmem:[%s13259_s1 + $0x8] sm:$0xff]  ;;  %vm76_vm1 = vcmask 7168   ;;  %v265_v55 = vld [vmem:[%s13261_s3 + $0x10] sm:$0xff]  ;;  %vm272_vm2 = vcmask 261120   ;;  %v12694_v61 = vmov 0  }
   0x4   :  { %v28_v4 = vsel %vm27_vm0, %v25_v2, -inf  ;;  %v31_v5 = vsel %vm27_vm0, %v26_v3, -inf  ;;  %v263_v52 = vld [vmem:[%s13261_s3] sm:$0xff]  ;;  %v264_v53 = vld [vmem:[%s13261_s3 + $0x8] sm:$0xff]  ;;  %v266_v56 = vld [vmem:[%s13261_s3 + $0x18] sm:$0xff]  ;;  %12641 = vset.pattern.permute.xlu0 %v12694_v61  ;;  %12640 = vset.pattern.permute.xlu1 %v12694_v61 }
   0x5   :  { %29 = vmax.xlane.f32.xlu0 %v28_v4  ;;  %v12117_v54 = vpack.c.bf16 %v264_v53, %v263_v52  ;;  %v12121_v57 = vpack.c.bf16 %v266_v56, %v265_v55  ;;  %v261_v59 = vld [vmem:[%s13260_s2] sm:$0xff]  ;;  %v262_v62 = vld [vmem:[%s13260_s2 + $0x8] sm:$0xff]  ;;  %vm12843_vm5 = vmpackc.low %vm27_vm0, %vm27_vm0  ;;  %s12696_s24 = smov 1e-12   ;;  %s12682_s2 = scalar_lea.hbm %s13263_s5, 16 }
   0x6   :  { %11259 = vmatprep.mubr.msk.f32.mxu1 %vm272_vm2, %v261_v59  ;;  %v10497_v52 = vld [vmem:[%s13262_s4 + $0x20] ss:$0 sm:$0xff]  ;;  %p12683_p0 = scmp.ne.s32.totalorder %s13263_s5, %s12682_s2  ;;  %p12686_p1 = scmp.lt.u32.totalorder %s12682_s2, %s13263_s5 }
   0x7   :  { %12118 = vmatprep.subr.bf16.mxu1 %v12117_v54 }
   0x8   :  { %12120 = vmatpush3.bf16.msra.mxu1 %v12117_v54  ;;  %v233_v54 = vlaneseq  ;;  %p12688_p2 = pnand %p12686_p1, %p12683_p0 }
   0x9   :  { %32 = vmax.xlane.f32.xlu0 %v31_v5  ;;  %12122 = vmatprep.subr.bf16.mxu1 %v12121_v57 }
   0xc   :  { %12124 = vmatpush3.bf16.msra.mxu1 %v12121_v57 }
   0xf   :  { %11260 = vmatmul.mubr.msk.f32.vlgmr.msra.gmra.mrb[0].mxu1 %vm272_vm2, %v262_v62  ;;  %v12810_v62 = vshrl.u32 %v233_v54, 7 }
  0x92   :  { %v30_v6 = vpop.xlane.xlu0 %29 }
  0x93   :  { %v34_v7 = vsub.f32 %v25_v2, %v30_v6 }
  0x95   :  { %v36_v8 = vmul.f32 1.442695, %v34_v7 }
  0x96   :  { %v33_v9 = vpop.xlane.xlu0 %32 }
  0x97   :  { %12642 = vpow2.f32 %v36_v8  ;;  %v35_v10 = vsub.f32 %v26_v3, %v33_v9 }
  0x99   :  { %v38_v11 = vmul.f32 1.442695, %v35_v10 }
  0x9b   :  { %12644 = vpow2.f32 %v38_v11 }
  0xa1   :  { %v12643_v12 = vpop.eup %12642 }
  0xa2   :  { %v40_v13 = vsel %vm27_vm0, %v12643_v12, 0.0 }
  0xa3   :  { %41 = vadd.xlane.f32.xlu1 %v40_v13 }
  0xa5   :  { %v12645_v14 = vpop.eup %12644 }
  0xa6   :  { %v43_v15 = vsel %vm27_vm0, %v12645_v14, 0.0 }
  0xa7   :  { %44 = vadd.xlane.f32.xlu1 %v43_v15  ;;  %v373_v15 = vld [vmem:[%s13262_s4 + $0x8] sm:$0xff] }
  0xe2   :  { %v11261_v9 = vpop.f32.mrb[0].mxu1 }
  0xe3   :  { %v345_v10 = vpop.f32.mrb[1].mxu1 }
 0x130   :  { %v42_v16 = vpop.xlane.xlu1 %41 }
 0x131   :  { %12646 = vrcp.f32 %v42_v16 }
 0x134   :  { %v45_v17 = vpop.xlane.xlu1 %44 }
 0x135   :  { %12648 = vrcp.f32 %v45_v17 }
 0x13b   :  { %v12647_v18 = vpop.eup %12646 }
 0x13c   :  { %v12739_v19 = vmul.f32 %v12647_v18, %v12643_v12  ;;  %v10494_v18 = vld [vmem:[%s13261_s3 + $0x20] ss:$0 sm:$0xff] }
 0x13e   :  { %v52_v20 = vadd.f32 1e-05, %v12739_v19  ;;  %v50_v26 = vsub.f32 0.0, %v12739_v19 }
 0x13f   :  { %v12649_v21 = vpop.eup %12648 }
 0x140   :  { %v12742_v22 = vmul.f32 %v12649_v21, %v12645_v14  ;;  %12650 = vlog2.f32 %v52_v20  ;;  %v372_v14 = vld [vmem:[%s13262_s4] sm:$0xff]  ;;  %v351_v21 = vadd.f32 %v11261_v9, %v10494_v18 }
 0x141   :  { %v12125_v17 = vpack.c.bf16 %v373_v15, %v372_v14 }
 0x142   :  { %v12113_v23 = vpack.c.bf16 %v12742_v22, %v12739_v19  ;;  %v53_v24 = vadd.f32 1e-05, %v12742_v22  ;;  %v51_v31 = vsub.f32 0.0, %v12742_v22 }
 0x144   :  { %12114 = vmatprep.subr.bf16.mxu0 %v12113_v23  ;;  %12652 = vlog2.f32 %v53_v24  ;;  %v355_v24 = vmul.f32 %v351_v21, %v351_v21 }
 0x145   :  { %12116 = vmatpush3.bf16.msra.mxu0 %v12113_v23 }
 0x146   :  { %12126 = vmatprep.subr.bf16.mxu0 %v12125_v17 }
 0x14a   :  { %v12651_v25 = vpop.eup %12650 }
 0x14b   :  { %v55_v27 = vmul.f32 0.6931472, %v12651_v25 }
 0x14d   :  { %v58_v28 = vmul.f32 %v55_v27, %v50_v26  ;;  %v357_v26 = vmul.f32 %v355_v24, %v351_v21 }
 0x14e   :  { %v12653_v29 = vpop.eup %12652 }
 0x14f   :  { %v60_v30 = vsel %vm27_vm0, %v58_v28, 0.0  ;;  %v57_v32 = vmul.f32 0.6931472, %v12653_v29  ;;  %v359_v28 = vmul.f32 0.044715, %v357_v26 }
 0x150   :  { %61 = vadd.xlane.f32.xlu0 %v60_v30 }
 0x151   :  { %v59_v33 = vmul.f32 %v57_v32, %v51_v31  ;;  %v361_v30 = vadd.f32 %v359_v28, %v351_v21 }
 0x153   :  { %v63_v34 = vsel %vm27_vm0, %v59_v33, 0.0 }
 0x154   :  { %64 = vadd.xlane.f32.xlu1 %v63_v34 }
 0x1dd   :  { %v62_v35 = vpop.xlane.xlu0 %61 }
 0x1de   :  { %v66_v36 = vsub.f32 0.0, %v62_v35 }
 0x1e0   :  { %v68_v37 = vmul.f32 1.442695, %v66_v36  ;;  %v374_v36 = vld [vmem:[%s13262_s4 + $0x10] sm:$0xff] }
 0x1e1   :  { %v65_v38 = vpop.xlane.xlu1 %64 }
 0x1e2   :  { %12654 = vpow2.f32 %v68_v37  ;;  %v67_v39 = vsub.f32 0.0, %v65_v38  ;;  %v375_v37 = vld [vmem:[%s13262_s4 + $0x18] sm:$0xff] }
 0x1e4   :  { %v70_v40 = vmul.f32 1.442695, %v67_v39  ;;  %v12129_v39 = vpack.c.bf16 %v375_v37, %v374_v36 }
 0x1e6   :  { %12656 = vpow2.f32 %v70_v40 }
 0x1ec   :  { %v12655_v41 = vpop.eup %12654 }
 0x1ed   :  { %v72_v42 = vadd.f32 1.0, %v12655_v41 }
 0x1ef   :  { %v74_v47 = vmul.f32 %v72_v42, %v12754_v43 }
 0x1f0   :  { %v12657_v44 = vpop.eup %12656 }
 0x1f1   :  { %v73_v46 = vadd.f32 1.0, %v12657_v44  ;;  %v77_v49 = vsel %vm76_vm1, %v74_v47, 0.0 }
 0x1f3   :  { %v75_v48 = vmul.f32 %v73_v46, %v12759_v45 }
 0x1f5   :  { %v78_v50 = vsel %vm76_vm1, %v75_v48, 0.0 }
 0x1f6   :  { %v79_v51 = vadd.f32 %v78_v50, %v77_v49 }
 0x1f8   :  { %80 = vadd.xlane.f32.xlu0 %v79_v51 }
 0x285   :  { %v81_v58 = vpop.xlane.xlu0 %80 }
 0x286   :  { %v82_v60 = vrot.slane %v81_v58, 4 }
 0x288   :  { %v83_v63 = vadd.f32 %v82_v60, %v81_v58 }
 0x28a   :  { %v84_v0 = vrot.slane %v83_v63, 2 }
 0x28c   :  { %v85_v1 = vadd.f32 %v84_v0, %v83_v63 }
 0x28e   :  { %v86_v2 = vrot.slane %v85_v1, 1 }
 0x290   :  { %v87_v3 = vadd.f32 %v86_v2, %v85_v1  ;;  %v12813_v2 = vand.u32 127, %v233_v54 }
 0x292   :  { %12617 = vpush %v87_v3  ;;  %v12816_v3 = vadd.s32 8, %v12810_v62  ;;  %vm238_vm3 = vcmp.eq.s32.totalorder %v12810_v62, %v12813_v2 }
 0x294   :  { %vm239_vm4 = vcmp.eq.s32.totalorder %v12816_v3, %v12813_v2 }
 0x295   :  { %vm12878_vm8 = vmpackc.low %vm239_vm4, %vm238_vm3 }
 0x2c3   :  { %s12618_s11 = spop %12617 }
 0x2c4   :  { %v89_v4 = vstv %s12618_s11 }
 0x2c5   :  { %12658 = vrcp.f32 %v89_v4  ;;  %v12695_v4 = vmov 0.0  }
 0x2cf   :  { %v12659_v5 = vpop.eup %12658 }
 0x2d0   :  { %12619 = vpush %v12659_v5  ;;  %v12825_v5 = vsel %vm238_vm3, 1.0, %v12695_v4 }
 0x301   :  { %s12620_s12 = spop %12619 }
 0x302   :  { %s92_s13 = smul.f32 8.0, %s12620_s12 }
 0x304   :  { %v93_v6 = vstv %s92_s13 }
 0x305   :  { %v94_v7 = vmul.f32 %v93_v6, %v74_v47  ;;  %v95_v8 = vmul.f32 %v93_v6, %v75_v48  ;;  %v12830_v6 = vsel %vm239_vm4, 1.0, %v12695_v4 }
 0x306   :  { %v245_v9 = vsub.f32 1.0, %v12830_v6 }
 0x307   :  { %103 = vperm.xlu0 %12641, %v95_v8   ;;  %98 = vperm.xlu1 %12640, %v94_v7   ;;  %v497_v7 = vsub.f32 1.0, %v12759_v45  ;;  %v244_v8 = vsub.f32 1.0, %v12825_v5 }
 0x386   :  { %v99_v11 = vpop.permute.xlu1 %98  ;;  %v104_v13 = vpop.permute.xlu0 %103 }
 0x387   :  { %v106_v12 = vmul.f32 %v99_v11, %v12739_v19  ;;  %v107_v16 = vmul.f32 %v104_v13, %v12742_v22  ;;  %v346_v19 = vadd.f32 %v10494_v18, %v345_v10  ;;  %v363_v22 = vmul.f32 0.7978846, %v361_v30 }
 0x389   :  { %108 = vxpose.xlu1.b32.start [1/2] (short) (narrow) %v106_v12, 16  ;;  %v354_v20 = vmul.f32 %v346_v19, %v346_v19 }
 0x38b   :  { %v356_v23 = vmul.f32 %v354_v20, %v346_v19 }
 0x38d   :  { %109 = vxpose.xlu1.b32.end [2/2] (short) (narrow) %v107_v16, 16  ;;  %v358_v25 = vmul.f32 0.044715, %v356_v23 }
 0x38f   :  { %v360_v27 = vadd.f32 %v358_v25, %v346_v19 }
 0x391   :  { %v362_v29 = vmul.f32 0.7978846, %v360_v27 }
 0x393   :  { %12660 = vtanh.f32 %v362_v29  ;;  %v496_v29 = vsub.f32 1.0, %v12754_v43 }
 0x394   :  { %12662 = vtanh.f32 %v363_v22 }
 0x39d   :  { %v12661_v31 = vpop.eup %12660 }
 0x39e   :  { %v366_v32 = vadd.f32 1.0, %v12661_v31  ;;  %v12663_v33 = vpop.eup %12662 }
 0x39f   :  { %v367_v38 = vadd.f32 1.0, %v12663_v33 }
 0x3a0   :  { %v368_v35 = vmul.f32 0.5, %v366_v32 }
 0x3a1   :  { %v369_v42 = vmul.f32 0.5, %v367_v38 }
 0x3a2   :  { %v370_v41 = vmul.f32 %v368_v35, %v346_v19 }
 0x3a3   :  { %v371_v44 = vmul.f32 %v369_v42, %v351_v21 }
 0x409   :  { %v124_v34 = vpop.trf.xlu1 }
 0x40a   :  { %11248 = vmatprep.mubr.msk.f32.mxu0 %vm27_vm0, %v124_v34 }
 0x40d   :  { %v125_v40 = vpop.trf.xlu1 }
 0x40e   :  { %11249 = vmatmul.mubr.msk.f32.vlgmr.msra.gmra.mrb[0].mxu0 %vm27_vm0, %v125_v40 }
 0x40f   :  { %12128 = vmatpush3.bf16.msra.mxu0 %v12125_v17  ;;  %11270 = vmatprep.mubr.msk.f32.mxu0 %vm272_vm2, %v370_v41 }
 0x410   :  { %12130 = vmatprep.subr.bf16.mxu0 %v12129_v39 }
 0x413   :  { %12132 = vmatpush3.bf16.msra.mxu0 %v12129_v39 }
 0x416   :  { %11271 = vmatmul.mubr.msk.f32.vlgmr.msra.gmra.mrb[2].mxu0 %vm272_vm2, %v371_v44 }
 0x4e1   :  { %v11250_v46 = vpop.f32.mrb[0].mxu0 }
 0x4e2   :  { %v222_v47 = vsel %vm27_vm0, %v11250_v46, 0.0  ;;  %v212_v48 = vpop.f32.mrb[1].mxu0 }
 0x4e3   :  { %v221_v49 = vsel %vm27_vm0, %v212_v48, 0.0 }
 0x4e4   :  { %v223_v50 = vadd.f32 %v222_v47, %v221_v49 }
 0x4e6   :  { %v224_v51 = vrot.slane %v223_v50, 4 }
 0x4e8   :  { %v225_v53 = vadd.f32 %v224_v51, %v223_v50 }
 0x4e9   :  { %v11272_v55 = vpop.f32.mrb[2].mxu0 }
 0x4ea   :  { %v226_v56 = vrot.slane %v225_v53, 2  ;;  %v459_v57 = vadd.f32 %v11272_v55, %v10497_v52  ;;  %v453_v58 = vpop.f32.mrb[3].mxu0 }
 0x4eb   :  { %v454_v59 = vadd.f32 %v10497_v52, %v453_v58 }
 0x4ec   :  { %v227_v60 = vadd.f32 %v226_v56, %v225_v53  ;;  %v465_v61 = vsel %vm27_vm0, %v459_v57, -inf }
 0x4ed   :  { %466 = vmax.xlane.f32.xlu1 %v465_v61  ;;  %v462_v63 = vsel %vm27_vm0, %v454_v59, -inf }
 0x4ee   :  { %v228_v0 = vrot.slane %v227_v60, 1  ;;  %463 = vmax.xlane.f32.xlu0 %v462_v63 }
 0x4f0   :  { %v229_v1 = vadd.f32 %v228_v0, %v227_v60 }
 0x4f2   :  { %12664 = vrcp.f32 %v229_v1 }
 0x4fc   :  { %v12665_v10 = vpop.eup %12664 }
 0x4fd   :  { %v231_v11 = vmul.f32 %v12665_v10, %v212_v48  ;;  %v232_v12 = vmul.f32 %v12665_v10, %v11250_v46 }
 0x4fe   :  { %505 = vperm.xlu1 %12640, %v497_v7  }
 0x4ff   :  { %v246_v13 = vmul.f32 %v244_v8, %v231_v11  ;;  %v247_v14 = vmul.f32 %v245_v9, %v232_v12 }
 0x501   :  { %v248_v15 = vsel %vm27_vm0, %v246_v13, 0.0  ;;  %v249_v16 = vsel %vm27_vm0, %v247_v14, 0.0 }
 0x502   :  { %v250_v17 = vadd.f32 %v249_v16, %v248_v15 }
 0x57a   :  { %v467_v18 = vpop.xlane.xlu1 %466 }
 0x57b   :  { %v469_v19 = vsub.f32 %v459_v57, %v467_v18  ;;  %v464_v20 = vpop.xlane.xlu0 %463 }
 0x57c   :  { %v468_v21 = vsub.f32 %v454_v59, %v464_v20 }
 0x57d   :  { %v472_v23 = vmul.f32 1.442695, %v469_v19  ;;  %v12697_v19 = vmov 1.0|1.0  }
 0x57e   :  { %v470_v24 = vmul.f32 1.442695, %v468_v21  ;;  %v506_v35 = vpop.permute.xlu1 %505 }
 0x57f   :  { %12666 = vpow2.f32 %v472_v23 }
 0x580   :  { %12668 = vpow2.f32 %v470_v24 }
 0x589   :  { %v12667_v25 = vpop.eup %12666 }
 0x58a   :  { %v477_v26 = vsel %vm27_vm0, %v12667_v25, 0.0  ;;  %v12669_v27 = vpop.eup %12668 }
 0x58b   :  { %478 = vadd.xlane.f32.xlu0 %v477_v26  ;;  %v474_v28 = vsel %vm27_vm0, %v12669_v27, 0.0  ;;  %v12902_v26 = vmul.f32 3.0, %v12825_v5 }
 0x58f   :  { %475 = vadd.xlane.f32.xlu0 %v474_v28 }
 0x5a5   :  { %500 = vperm.xlu0 %12641, %v496_v29  }
 0x5c4   :  { %251 = vadd.xlane.f32.xlu0 %v250_v17 }
 0x5da   :  { %486 = vperm.xlu0 %12641, %v12754_v43  }
 0x618   :  { %v479_v30 = vpop.xlane.xlu0 %478 }
 0x619   :  { %12670 = vrcp.f32 %v479_v30 }
 0x61c   :  { %v476_v22 = vpop.xlane.xlu0 %475 }
 0x61d   :  { %12672 = vrcp.f32 %v476_v22 }
 0x623   :  { %v12671_v31 = vpop.eup %12670 }
 0x624   :  { %v483_v32 = vmul.f32 %v12671_v31, %v12667_v25  ;;  %v501_v36 = vpop.permute.xlu0 %500  ;;  %v12899_v25 = vmul.f32 3.0, %v12830_v6 }
 0x626   :  { %v509_v37 = vmul.f32 %v506_v35, %v483_v32 }
 0x627   :  { %v12673_v33 = vpop.eup %12672 }
 0x628   :  { %v482_v34 = vmul.f32 %v12673_v33, %v12669_v27 }
 0x62a   :  { %v508_v38 = vmul.f32 %v501_v36, %v482_v34 }
 0x62c   :  { %v12133_v40 = vpack.c.bf16 %v509_v37, %v508_v38  ;;  %11277 = vmatprep.mubr.msk.f32.mxu1 %vm27_vm0, %v508_v38 }
 0x62e   :  { %12135 = vmatprep.subr.msk.bf16.mxu1 %vm12843_vm5, %v12133_v40 }
 0x62f   :  { %12138 = vmatpush3.bf16.xpose.msk.msra.mxu1 %vm12843_vm5, %v12133_v40 }
 0x636   :  { %11278 = vmatmul.mubr.msk.f32.vlgmr.msra.gmra.mrb[2].mxu1 %vm27_vm0, %v509_v37 }
 0x637   :  { %11291 = vmatprep.mubr.msk.f32.mxu1 %vm27_vm0, %v12825_v5 }
 0x651   :  { %v252_v43 = vpop.xlane.xlu0 %251 }
 0x652   :  { %v253_v41 = vrot.slane %v252_v43, 4 }
 0x654   :  { %v254_v42 = vadd.f32 %v253_v41, %v252_v43 }
 0x656   :  { %v255_v44 = vrot.slane %v254_v42, 2 }
 0x658   :  { %v256_v46 = vadd.f32 %v255_v44, %v254_v42 }
 0x659   :  { %v487_v47 = vpop.permute.xlu0 %486 }
 0x65a   :  { %v494_v48 = vmul.f32 %v487_v47, %v482_v34  ;;  %v257_v49 = vrot.slane %v256_v46, 1 }
 0x65c   :  { %11284 = vmatprep.mubr.msk.f32.mxu0 %vm27_vm0, %v494_v48  ;;  %v258_v50 = vadd.f32 %v257_v49, %v256_v46 }
 0x65e   :  { %12621 = vpush %v258_v50 }
 0x68f   :  { %s12866_s4 = spop %12621 }
 0x690   :  { %s260_s9 = smul.f32 0.0625, %s12866_s4 }
 0x709   :  { %v11279_v51 = vpop.f32.mrb[2].mxu1 }
 0x70a   :  { %v673_v52 = vmul.f32 %v11279_v51, %v12830_v6  ;;  %v582_v53 = vpop.f32.mrb[3].mxu1 }
 0x70b   :  { %v672_v54 = vmul.f32 %v12825_v5, %v582_v53 }
 0x70c   :  { %v675_v55 = vsel %vm27_vm0, %v673_v52, 0.0 }
 0x70d   :  { %v674_v56 = vsel %vm27_vm0, %v672_v54, 0.0 }
 0x70e   :  { %v676_v57 = vadd.f32 %v675_v55, %v674_v56 }
 0x710   :  { %677 = vadd.xlane.f32.xlu1 %v676_v57 }
 0x721   :  { %491 = vperm.xlu1 %12640, %v12759_v45  }
 0x79d   :  { %v678_v58 = vpop.xlane.xlu1 %677 }
 0x79e   :  { %v679_v59 = vrot.slane %v678_v58, 4 }
 0x7a0   :  { %v680_v60 = vadd.f32 %v679_v59, %v678_v58 }
 0x7a1   :  { %v492_v61 = vpop.permute.xlu1 %491 }
 0x7a2   :  { %v681_v63 = vrot.slane %v680_v60, 2  ;;  %v495_v0 = vmul.f32 %v492_v61, %v483_v32 }
 0x7a4   :  { %v12139_v1 = vpack.c.bf16 %v495_v0, %v494_v48  ;;  %v682_v4 = vadd.f32 %v681_v63, %v680_v60 }
 0x7a6   :  { %12141 = vmatprep.subr.msk.bf16.mxu0 %vm12843_vm5, %v12139_v1  ;;  %v683_v7 = vrot.slane %v682_v4, 1 }
 0x7a7   :  { %12144 = vmatpush3.bf16.xpose.msk.msra.mxu0 %vm12843_vm5, %v12139_v1 }
 0x7a8   :  { %v684_v8 = vadd.f32 %v683_v7, %v682_v4 }
 0x7aa   :  { %12623 = vpush %v684_v8 }
 0x7ae   :  { %11285 = vmatmul.mubr.msk.f32.vlgmr.msra.gmra.mrb[4].mxu0 %vm27_vm0, %v495_v0 }
 0x7db   :  { %s12624_s23 = spop %12623 }
 0x7dc   :  { %s686_s25 = smax.f32 %s12696_s24, %s12624_s23 }
 0x7dd   :  { %v687_v45 = vstv %s686_s25 }
 0x7de   :  { %12674 = vrcp.f32 %v687_v45  ;;  %vm5555_vm6 = vcmp.eq.f32.partialorder %v687_v45, inf  ;;  %v5558_v15 = vand.u32 2147483648, %v687_v45  ;;  %vm5557_vm7 = vcmp.eq.f32.partialorder %v687_v45, 0.0 }
 0x7df   :  { %12676 = vrsqrt.f32 %v687_v45 }
 0x7e8   :  { %v12675_v9 = vpop.eup %12674 }
 0x7e9   :  { %v12677_v10 = vpop.eup %12676  ;;  %v689_v11 = vmul.f32 %v12675_v9, %v582_v53  ;;  %v690_v12 = vmul.f32 %v12675_v9, %v11279_v51 }
 0x7ea   :  { %v5554_v13 = vmul.f32 %v12677_v10, %v687_v45 }
 0x7eb   :  { %11298 = vmatprep.mubr.msk.f32.mxu0 %vm27_vm0, %v689_v11  ;;  %v12145_v14 = vpack.c.bf16 %v690_v12, %v689_v11 }
 0x7ec   :  { %v5556_v16 = vsel %vm5555_vm6, %v687_v45, %v5554_v13 }
 0x7ed   :  { %12146 = vmatprep.subr.bf16.mxu1 %v12145_v14  ;;  %v5559_v17 = vsel %vm5557_vm7, %v5558_v15, %v5556_v16 }
 0x7ee   :  { %12625 = vpush %v5559_v17  ;;  %12148 = vmatpush3.bf16.msra.mxu1 %v12145_v14 }
 0x7ef   :  { %12154 = vmatprep.subr.msk.bf16.mxu1 %vm12878_vm8, %v12697_v19 }
 0x7f1   :  { %11292 = vmatmul.mubr.msk.f32.vlgmr.msra.gmra.mrb[4].mxu1 %vm27_vm0, %v12830_v6 }
 0x7f2   :  { %12156 = vmatpush3.bf16.msk.msra.mxu1 %vm12878_vm8, %v12697_v19 }
 0x81f   :  { %s13065_s26 = spop %12625 }
 0x881   :  { %v12888_v20 = vpop.f32.mrb[4].mxu0 }
 0x882   :  { %v5577_v62 = vmul.f32 %v12888_v20, %v12830_v6  ;;  %v12892_v21 = vpop.f32.mrb[5].mxu0 }
 0x883   :  { %v5576_v2 = vmul.f32 %v12825_v5, %v12892_v21 }
 0x884   :  { %v5579_v3 = vsel %vm27_vm0, %v5577_v62, 0.0 }
 0x885   :  { %v5578_v23 = vsel %vm27_vm0, %v5576_v2, 0.0 }
 0x886   :  { %v5580_v24 = vadd.f32 %v5579_v3, %v5578_v23 }
 0x888   :  { %5581 = vadd.xlane.f32.xlu1 %v5580_v24 }
 0x8c4   :  { %v11293_v27 = vpop.f32.mrb[4].mxu1 }
 0x8c5   :  { %v775_v28 = vsub.f32 %v12899_v25, %v11293_v27  ;;  %v765_v29 = vpop.f32.mrb[5].mxu1 }
 0x8c6   :  { %v774_v30 = vsub.f32 %v12902_v26, %v765_v29 }
 0x8c7   :  { %v777_v22 = vmul.f32 0.5, %v775_v28 }
 0x8c8   :  { %v776_v31 = vmul.f32 0.5, %v774_v30 }
 0x8ca   :  { %v12149_v32 = vpack.c.bf16 %v777_v22, %v776_v31  ;;  %11305 = vmatprep.mubr.msk.f32.mxu1 %vm27_vm0, %v776_v31 }
 0x8cb   :  { %11306 = vmatmul.mubr.msk.f32.vlgmr.msra.gmra.mrb[6].mxu1 %vm27_vm0, %v777_v22 }
 0x8cc   :  { %12150 = vmatprep.subr.bf16.mxu0 %v12149_v32 }
 0x8cd   :  { %12152 = vmatpush3.bf16.msra.mxu0 %v12149_v32 }
 0x8d0   :  { %11299 = vmatmul.mubr.msk.f32.vlgmr.msra.gmra.mrb[6].mxu0 %vm27_vm0, %v690_v12 }
 0x99e   :  { %v11307_v33 = vpop.f32.mrb[6].mxu1 }
 0x99f   :  { %v931_v34 = vpop.f32.mrb[7].mxu1 }
 0x9a0   :  { %v12165_v35 = vpack.c.bf16 %v11307_v33, %v931_v34  ;;  %11312 = vmatprep.mubr.msk.f32.mxu0 %vm27_vm0, %v931_v34 }
 0x9a3   :  { %v11300_v36 = vpop.f32.mrb[6].mxu0 }
 0x9a4   :  { %v850_v37 = vpop.f32.mrb[7].mxu0 }
 0x9a5   :  { %v12157_v38 = vpack.c.bf16 %v11300_v36, %v850_v37  ;;  %11319 = vmatprep.mubr.msk.f32.mxu1 %vm27_vm0, %v850_v37 }
 0x9a7   :  { %12158 = vmatprep.subr.bf16.mxu0 %v12157_v38 }
 0x9a8   :  { %12160 = vmatpush3.bf16.msra.mxu0 %v12157_v38 }
 0x9a9   :  { %12166 = vmatprep.subr.bf16.mxu0 %v12165_v35 }
 0x9ab   :  { %11313 = vmatmul.mubr.msk.f32.vlgmr.msra.gmra.mrb[8].mxu0 %vm27_vm0, %v11307_v33 }
 0x9ac   :  { %12168 = vmatpush3.bf16.msra.mxu0 %v12165_v35 }
 0xa7e   :  { %v11314_v39 = vpop.f32.mrb[8].mxu0 }
 0xa7f   :  { %v1022_v40 = vsub.f32 %v12899_v25, %v11314_v39  ;;  %v1012_v43 = vpop.f32.mrb[9].mxu0 }
 0xa80   :  { %v1021_v41 = vsub.f32 %v12902_v26, %v1012_v43 }
 0xa81   :  { %v1024_v42 = vmul.f32 0.5, %v1022_v40 }
 0xa82   :  { %v1023_v44 = vmul.f32 0.5, %v1021_v41 }
 0xa84   :  { %v12161_v46 = vpack.c.bf16 %v1024_v42, %v1023_v44  ;;  %11326 = vmatprep.mubr.msk.f32.mxu0 %vm27_vm0, %v1023_v44 }
 0xa85   :  { %11327 = vmatmul.mubr.msk.f32.vlgmr.msra.gmra.mrb[10].mxu0 %vm27_vm0, %v1024_v42 }
 0xa86   :  { %12162 = vmatprep.subr.bf16.mxu1 %v12161_v46 }
 0xa87   :  { %12164 = vmatpush3.bf16.msra.mxu1 %v12161_v46 }
 0xa8a   :  { %11320 = vmatmul.mubr.msk.f32.vlgmr.msra.gmra.mrb[8].mxu1 %vm27_vm0, %v11300_v36 }
 0xb58   :  { %v11328_v47 = vpop.f32.mrb[10].mxu0 }
 0xb59   :  { %v1178_v48 = vpop.f32.mrb[11].mxu0 }
 0xb5a   :  { %v12177_v49 = vpack.c.bf16 %v11328_v47, %v1178_v48  ;;  %11333 = vmatprep.mubr.msk.f32.mxu1 %vm27_vm0, %v1178_v48 }
 0xb5d   :  { %v11321_v50 = vpop.f32.mrb[8].mxu1 }
 0xb5e   :  { %v1097_v51 = vpop.f32.mrb[9].mxu1 }
 0xb5f   :  { %v12169_v52 = vpack.c.bf16 %v11321_v50, %v1097_v51  ;;  %11340 = vmatprep.mubr.msk.f32.mxu0 %vm27_vm0, %v1097_v51 }
 0xb61   :  { %12170 = vmatprep.subr.bf16.mxu1 %v12169_v52 }
 0xb62   :  { %12172 = vmatpush3.bf16.msra.mxu1 %v12169_v52 }
 0xb63   :  { %12178 = vmatprep.subr.bf16.mxu1 %v12177_v49 }
 0xb65   :  { %11334 = vmatmul.mubr.msk.f32.vlgmr.msra.gmra.mrb[10].mxu1 %vm27_vm0, %v11328_v47 }
 0xb66   :  { %12180 = vmatpush3.bf16.msra.mxu1 %v12177_v49 }
 0xc38   :  { %v11335_v53 = vpop.f32.mrb[10].mxu1 }
 0xc39   :  { %v1269_v54 = vsub.f32 %v12899_v25, %v11335_v53  ;;  %v1259_v55 = vpop.f32.mrb[11].mxu1 }
 0xc3a   :  { %v1268_v56 = vsub.f32 %v12902_v26, %v1259_v55 }
 0xc3b   :  { %v1271_v57 = vmul.f32 0.5, %v1269_v54 }
 0xc3c   :  { %v1270_v58 = vmul.f32 0.5, %v1268_v56 }
 0xc3e   :  { %v12173_v59 = vpack.c.bf16 %v1271_v57, %v1270_v58  ;;  %11347 = vmatprep.mubr.msk.f32.mxu1 %vm27_vm0, %v1270_v58 }
 0xc3f   :  { %11348 = vmatmul.mubr.msk.f32.vlgmr.msra.gmra.mrb[12].mxu1 %vm27_vm0, %v1271_v57 }
 0xc40   :  { %12174 = vmatprep.subr.bf16.mxu0 %v12173_v59 }
 0xc41   :  { %12176 = vmatpush3.bf16.msra.mxu0 %v12173_v59 }
 0xc44   :  { %11341 = vmatmul.mubr.msk.f32.vlgmr.msra.gmra.mrb[12].mxu0 %vm27_vm0, %v11321_v50 }
 0xd12   :  { %v11349_v60 = vpop.f32.mrb[12].mxu1 }
 0xd13   :  { %v1425_v61 = vpop.f32.mrb[13].mxu1 }
 0xd14   :  { %v12189_v63 = vpack.c.bf16 %v11349_v60, %v1425_v61  ;;  %11354 = vmatprep.mubr.msk.f32.mxu0 %vm27_vm0, %v1425_v61 }
 0xd17   :  { %v11342_v0 = vpop.f32.mrb[12].mxu0 }
 0xd18   :  { %v1344_v1 = vpop.f32.mrb[13].mxu0 }
 0xd19   :  { %v12181_v4 = vpack.c.bf16 %v11342_v0, %v1344_v1  ;;  %11361 = vmatprep.mubr.msk.f32.mxu1 %vm27_vm0, %v1344_v1 }
 0xd1b   :  { %12182 = vmatprep.subr.bf16.mxu0 %v12181_v4 }
 0xd1c   :  { %12184 = vmatpush3.bf16.msra.mxu0 %v12181_v4 }
 0xd1d   :  { %12190 = vmatprep.subr.bf16.mxu0 %v12189_v63 }
 0xd1f   :  { %11355 = vmatmul.mubr.msk.f32.vlgmr.msra.gmra.mrb[14].mxu0 %vm27_vm0, %v11349_v60 }
 0xd20   :  { %12192 = vmatpush3.bf16.msra.mxu0 %v12189_v63 }
 0xdf2   :  { %v11356_v7 = vpop.f32.mrb[14].mxu0 }
 0xdf3   :  { %v1516_v8 = vsub.f32 %v12899_v25, %v11356_v7  ;;  %v1506_v45 = vpop.f32.mrb[15].mxu0 }
 0xdf4   :  { %v1515_v9 = vsub.f32 %v12902_v26, %v1506_v45 }
 0xdf5   :  { %v1518_v10 = vmul.f32 0.5, %v1516_v8 }
 0xdf6   :  { %v1517_v11 = vmul.f32 0.5, %v1515_v9 }
 0xdf8   :  { %v12185_v12 = vpack.c.bf16 %v1518_v10, %v1517_v11  ;;  %11368 = vmatprep.mubr.msk.f32.mxu0 %vm27_vm0, %v1517_v11 }
 0xdf9   :  { %11369 = vmatmul.mubr.msk.f32.vlgmr.msra.gmra.mrb[16].mxu0 %vm27_vm0, %v1518_v10 }
 0xdfa   :  { %12186 = vmatprep.subr.bf16.mxu1 %v12185_v12 }
 0xdfb   :  { %12188 = vmatpush3.bf16.msra.mxu1 %v12185_v12 }
 0xdfe   :  { %11362 = vmatmul.mubr.msk.f32.vlgmr.msra.gmra.mrb[14].mxu1 %vm27_vm0, %v11342_v0 }
 0xecc   :  { %v11370_v13 = vpop.f32.mrb[16].mxu0 }
 0xecd   :  { %v1672_v14 = vpop.f32.mrb[17].mxu0 }
 0xece   :  { %v12201_v15 = vpack.c.bf16 %v11370_v13, %v1672_v14  ;;  %11375 = vmatprep.mubr.msk.f32.mxu1 %vm27_vm0, %v1672_v14 }
 0xed1   :  { %v11363_v16 = vpop.f32.mrb[14].mxu1 }
 0xed2   :  { %v1591_v17 = vpop.f32.mrb[15].mxu1 }
 0xed3   :  { %v12193_v62 = vpack.c.bf16 %v11363_v16, %v1591_v17  ;;  %11382 = vmatprep.mubr.msk.f32.mxu0 %vm27_vm0, %v1591_v17 }
 0xed5   :  { %12194 = vmatprep.subr.bf16.mxu1 %v12193_v62 }
 0xed6   :  { %12196 = vmatpush3.bf16.msra.mxu1 %v12193_v62 }
 0xed7   :  { %12202 = vmatprep.subr.bf16.mxu1 %v12201_v15 }
 0xed9   :  { %11376 = vmatmul.mubr.msk.f32.vlgmr.msra.gmra.mrb[16].mxu1 %vm27_vm0, %v11370_v13 }
 0xeda   :  { %12204 = vmatpush3.bf16.msra.mxu1 %v12201_v15 }
 0xfac   :  { %v11377_v2 = vpop.f32.mrb[16].mxu1 }
 0xfad   :  { %v1763_v3 = vsub.f32 %v12899_v25, %v11377_v2  ;;  %v1753_v23 = vpop.f32.mrb[17].mxu1 }
 0xfae   :  { %v1762_v24 = vsub.f32 %v12902_v26, %v1753_v23 }
 0xfaf   :  { %v1765_v27 = vmul.f32 0.5, %v1763_v3 }
 0xfb0   :  { %v1764_v28 = vmul.f32 0.5, %v1762_v24 }
 0xfb2   :  { %v12197_v29 = vpack.c.bf16 %v1765_v27, %v1764_v28  ;;  %11389 = vmatprep.mubr.msk.f32.mxu1 %vm27_vm0, %v1764_v28 }
 0xfb3   :  { %11390 = vmatmul.mubr.msk.f32.vlgmr.msra.gmra.mrb[18].mxu1 %vm27_vm0, %v1765_v27 }
 0xfb4   :  { %12198 = vmatprep.subr.bf16.mxu0 %v12197_v29 }
 0xfb5   :  { %12200 = vmatpush3.bf16.msra.mxu0 %v12197_v29 }
 0xfb8   :  { %11383 = vmatmul.mubr.msk.f32.vlgmr.msra.gmra.mrb[18].mxu0 %vm27_vm0, %v11363_v16 }
0x1086   :  { %v11391_v30 = vpop.f32.mrb[18].mxu1 }
0x1087   :  { %v1919_v22 = vpop.f32.mrb[19].mxu1 }
0x1088   :  { %v12213_v31 = vpack.c.bf16 %v11391_v30, %v1919_v22  ;;  %11396 = vmatprep.mubr.msk.f32.mxu0 %vm27_vm0, %v1919_v22 }
0x108b   :  { %v11384_v32 = vpop.f32.mrb[18].mxu0 }
0x108c   :  { %v1838_v33 = vpop.f32.mrb[19].mxu0 }
0x108d   :  { %v12205_v34 = vpack.c.bf16 %v11384_v32, %v1838_v33  ;;  %11403 = vmatprep.mubr.msk.f32.mxu1 %vm27_vm0, %v1838_v33 }
0x108f   :  { %12206 = vmatprep.subr.bf16.mxu0 %v12205_v34 }
0x1090   :  { %12208 = vmatpush3.bf16.msra.mxu0 %v12205_v34 }
0x1091   :  { %12214 = vmatprep.subr.bf16.mxu0 %v12213_v31 }
0x1093   :  { %11397 = vmatmul.mubr.msk.f32.vlgmr.msra.gmra.mrb[20].mxu0 %vm27_vm0, %v11391_v30 }
0x1094   :  { %12216 = vmatpush3.bf16.msra.mxu0 %v12213_v31 }
0x1166   :  { %v11398_v35 = vpop.f32.mrb[20].mxu0 }
0x1167   :  { %v2010_v36 = vsub.f32 %v12899_v25, %v11398_v35  ;;  %v2000_v37 = vpop.f32.mrb[21].mxu0 }
0x1168   :  { %v2009_v38 = vsub.f32 %v12902_v26, %v2000_v37 }
0x1169   :  { %v2012_v39 = vmul.f32 0.5, %v2010_v36 }
0x116a   :  { %v2011_v40 = vmul.f32 0.5, %v2009_v38 }
0x116c   :  { %v12209_v43 = vpack.c.bf16 %v2012_v39, %v2011_v40  ;;  %11410 = vmatprep.mubr.msk.f32.mxu0 %vm27_vm0, %v2011_v40 }
0x116d   :  { %11411 = vmatmul.mubr.msk.f32.vlgmr.msra.gmra.mrb[22].mxu0 %vm27_vm0, %v2012_v39 }
0x116e   :  { %12210 = vmatprep.subr.bf16.mxu1 %v12209_v43 }
0x116f   :  { %12212 = vmatpush3.bf16.msra.mxu1 %v12209_v43 }
0x1172   :  { %11404 = vmatmul.mubr.msk.f32.vlgmr.msra.gmra.mrb[20].mxu1 %vm27_vm0, %v11384_v32 }
0x1240   :  { %v11412_v41 = vpop.f32.mrb[22].mxu0 }
0x1241   :  { %v2166_v42 = vpop.f32.mrb[23].mxu0 }
0x1242   :  { %v12225_v44 = vpack.c.bf16 %v11412_v41, %v2166_v42  ;;  %11417 = vmatprep.mubr.msk.f32.mxu1 %vm27_vm0, %v2166_v42 }
0x1245   :  { %v11405_v46 = vpop.f32.mrb[20].mxu1 }
0x1246   :  { %v2085_v47 = vpop.f32.mrb[21].mxu1 }
0x1247   :  { %v12217_v48 = vpack.c.bf16 %v11405_v46, %v2085_v47  ;;  %11424 = vmatprep.mubr.msk.f32.mxu0 %vm27_vm0, %v2085_v47 }
0x1249   :  { %12218 = vmatprep.subr.bf16.mxu1 %v12217_v48 }
0x124a   :  { %12220 = vmatpush3.bf16.msra.mxu1 %v12217_v48 }
0x124b   :  { %12226 = vmatprep.subr.bf16.mxu1 %v12225_v44 }
0x124d   :  { %11418 = vmatmul.mubr.msk.f32.vlgmr.msra.gmra.mrb[22].mxu1 %vm27_vm0, %v11412_v41 }
0x124e   :  { %12228 = vmatpush3.bf16.msra.mxu1 %v12225_v44 }
0x1320   :  { %v11419_v49 = vpop.f32.mrb[22].mxu1 }
0x1321   :  { %v2257_v50 = vsub.f32 %v12899_v25, %v11419_v49  ;;  %v2247_v51 = vpop.f32.mrb[23].mxu1 }
0x1322   :  { %v2256_v52 = vsub.f32 %v12902_v26, %v2247_v51 }
0x1323   :  { %v2259_v53 = vmul.f32 0.5, %v2257_v50 }
0x1324   :  { %v2258_v54 = vmul.f32 0.5, %v2256_v52 }
0x1326   :  { %v12221_v55 = vpack.c.bf16 %v2259_v53, %v2258_v54  ;;  %11431 = vmatprep.mubr.msk.f32.mxu1 %vm27_vm0, %v2258_v54 }
0x1327   :  { %11432 = vmatmul.mubr.msk.f32.vlgmr.msra.gmra.mrb[24].mxu1 %vm27_vm0, %v2259_v53 }
0x1328   :  { %12222 = vmatprep.subr.bf16.mxu0 %v12221_v55 }
0x1329   :  { %12224 = vmatpush3.bf16.msra.mxu0 %v12221_v55 }
0x132c   :  { %11425 = vmatmul.mubr.msk.f32.vlgmr.msra.gmra.mrb[24].mxu0 %vm27_vm0, %v11405_v46 }
0x13fa   :  { %v11433_v56 = vpop.f32.mrb[24].mxu1 }
0x13fb   :  { %v2413_v57 = vpop.f32.mrb[25].mxu1 }
0x13fc   :  { %v12237_v58 = vpack.c.bf16 %v11433_v56, %v2413_v57  ;;  %11438 = vmatprep.mubr.msk.f32.mxu0 %vm27_vm0, %v2413_v57 }
0x13ff   :  { %v11426_v59 = vpop.f32.mrb[24].mxu0 }
0x1400   :  { %v2332_v60 = vpop.f32.mrb[25].mxu0 }
0x1401   :  { %v12229_v61 = vpack.c.bf16 %v11426_v59, %v2332_v60  ;;  %11445 = vmatprep.mubr.msk.f32.mxu1 %vm27_vm0, %v2332_v60 }
0x1403   :  { %12230 = vmatprep.subr.bf16.mxu0 %v12229_v61 }
0x1404   :  { %12232 = vmatpush3.bf16.msra.mxu0 %v12229_v61 }
0x1405   :  { %12238 = vmatprep.subr.bf16.mxu0 %v12237_v58 }
0x1407   :  { %11439 = vmatmul.mubr.msk.f32.vlgmr.msra.gmra.mrb[26].mxu0 %vm27_vm0, %v11433_v56 }
0x1408   :  { %12240 = vmatpush3.bf16.msra.mxu0 %v12237_v58 }
0x14da   :  { %v11440_v63 = vpop.f32.mrb[26].mxu0 }
0x14db   :  { %v2504_v0 = vsub.f32 %v12899_v25, %v11440_v63  ;;  %v2494_v1 = vpop.f32.mrb[27].mxu0 }
0x14dc   :  { %v2503_v4 = vsub.f32 %v12902_v26, %v2494_v1 }
0x14dd   :  { %v2506_v7 = vmul.f32 0.5, %v2504_v0 }
0x14de   :  { %v2505_v8 = vmul.f32 0.5, %v2503_v4 }
0x14e0   :  { %v12233_v45 = vpack.c.bf16 %v2506_v7, %v2505_v8  ;;  %11452 = vmatprep.mubr.msk.f32.mxu0 %vm27_vm0, %v2505_v8 }
0x14e1   :  { %11453 = vmatmul.mubr.msk.f32.vlgmr.msra.gmra.mrb[28].mxu0 %vm27_vm0, %v2506_v7 }
0x14e2   :  { %12234 = vmatprep.subr.bf16.mxu1 %v12233_v45 }
0x14e3   :  { %12236 = vmatpush3.bf16.msra.mxu1 %v12233_v45 }
0x14e6   :  { %11446 = vmatmul.mubr.msk.f32.vlgmr.msra.gmra.mrb[26].mxu1 %vm27_vm0, %v11426_v59 }
0x15b4   :  { %v11454_v9 = vpop.f32.mrb[28].mxu0 }
0x15b5   :  { %v2660_v10 = vpop.f32.mrb[29].mxu0 }
0x15b6   :  { %v12249_v11 = vpack.c.bf16 %v11454_v9, %v2660_v10  ;;  %11459 = vmatprep.mubr.msk.f32.mxu1 %vm27_vm0, %v2660_v10 }
0x15b9   :  { %v11447_v12 = vpop.f32.mrb[26].mxu1 }
0x15ba   :  { %v2579_v13 = vpop.f32.mrb[27].mxu1 }
0x15bb   :  { %v12241_v14 = vpack.c.bf16 %v11447_v12, %v2579_v13  ;;  %11466 = vmatprep.mubr.msk.f32.mxu0 %vm27_vm0, %v2579_v13 }
0x15bd   :  { %12242 = vmatprep.subr.bf16.mxu1 %v12241_v14 }
0x15be   :  { %12244 = vmatpush3.bf16.msra.mxu1 %v12241_v14 }
0x15bf   :  { %12250 = vmatprep.subr.bf16.mxu1 %v12249_v11 }
0x15c1   :  { %11460 = vmatmul.mubr.msk.f32.vlgmr.msra.gmra.mrb[28].mxu1 %vm27_vm0, %v11454_v9 }
0x15c2   :  { %12252 = vmatpush3.bf16.msra.mxu1 %v12249_v11 }
0x1694   :  { %v11461_v15 = vpop.f32.mrb[28].mxu1 }
0x1695   :  { %v2751_v16 = vsub.f32 %v12899_v25, %v11461_v15  ;;  %v2741_v17 = vpop.f32.mrb[29].mxu1 }
0x1696   :  { %v2750_v62 = vsub.f32 %v12902_v26, %v2741_v17 }
0x1697   :  { %v2753_v2 = vmul.f32 0.5, %v2751_v16 }
0x1698   :  { %v2752_v3 = vmul.f32 0.5, %v2750_v62 }
0x169a   :  { %v12245_v23 = vpack.c.bf16 %v2753_v2, %v2752_v3  ;;  %11473 = vmatprep.mubr.msk.f32.mxu1 %vm27_vm0, %v2752_v3 }
0x169b   :  { %11474 = vmatmul.mubr.msk.f32.vlgmr.msra.gmra.mrb[30].mxu1 %vm27_vm0, %v2753_v2 }
0x169c   :  { %12246 = vmatprep.subr.bf16.mxu0 %v12245_v23 }
0x169d   :  { %12248 = vmatpush3.bf16.msra.mxu0 %v12245_v23 }
0x16a0   :  { %11467 = vmatmul.mubr.msk.f32.vlgmr.msra.gmra.mrb[30].mxu0 %vm27_vm0, %v11447_v12 }
0x176e   :  { %v11475_v24 = vpop.f32.mrb[30].mxu1 }
0x176f   :  { %v2907_v27 = vpop.f32.mrb[31].mxu1 }
0x1770   :  { %v12261_v28 = vpack.c.bf16 %v11475_v24, %v2907_v27  ;;  %11480 = vmatprep.mubr.msk.f32.mxu0 %vm27_vm0, %v2907_v27 }
0x1773   :  { %v11468_v29 = vpop.f32.mrb[30].mxu0 }
0x1774   :  { %v2826_v30 = vpop.f32.mrb[31].mxu0 }
0x1775   :  { %v12253_v22 = vpack.c.bf16 %v11468_v29, %v2826_v30  ;;  %11487 = vmatprep.mubr.msk.f32.mxu1 %vm27_vm0, %v2826_v30 }
0x1777   :  { %12254 = vmatprep.subr.bf16.mxu0 %v12253_v22 }
0x1778   :  { %12256 = vmatpush3.bf16.msra.mxu0 %v12253_v22 }
0x1779   :  { %12262 = vmatprep.subr.bf16.mxu0 %v12261_v28 }
0x177b   :  { %11481 = vmatmul.mubr.msk.f32.vlgmr.msra.gmra.mrb[32].mxu0 %vm27_vm0, %v11475_v24 }
0x177c   :  { %12264 = vmatpush3.bf16.msra.mxu0 %v12261_v28 }
0x184e   :  { %v11482_v31 = vpop.f32.mrb[32].mxu0 }
0x184f   :  { %v2998_v32 = vsub.f32 %v12899_v25, %v11482_v31  ;;  %v2988_v33 = vpop.f32.mrb[33].mxu0 }
0x1850   :  { %v2997_v34 = vsub.f32 %v12902_v26, %v2988_v33 }
0x1851   :  { %v3000_v35 = vmul.f32 0.5, %v2998_v32 }
0x1852   :  { %v2999_v36 = vmul.f32 0.5, %v2997_v34 }
0x1854   :  { %v12257_v37 = vpack.c.bf16 %v3000_v35, %v2999_v36  ;;  %11494 = vmatprep.mubr.msk.f32.mxu0 %vm27_vm0, %v2999_v36 }
0x1855   :  { %11495 = vmatmul.mubr.msk.f32.vlgmr.msra.gmra.mrb[34].mxu0 %vm27_vm0, %v3000_v35 }
0x1856   :  { %12258 = vmatprep.subr.bf16.mxu1 %v12257_v37 }
0x1857   :  { %12260 = vmatpush3.bf16.msra.mxu1 %v12257_v37 }
0x185a   :  { %11488 = vmatmul.mubr.msk.f32.vlgmr.msra.gmra.mrb[32].mxu1 %vm27_vm0, %v11468_v29 }
0x1928   :  { %v11496_v38 = vpop.f32.mrb[34].mxu0 }
0x1929   :  { %v3154_v39 = vpop.f32.mrb[35].mxu0 }
0x192a   :  { %v12273_v40 = vpack.c.bf16 %v11496_v38, %v3154_v39  ;;  %11501 = vmatprep.mubr.msk.f32.mxu1 %vm27_vm0, %v3154_v39 }
0x192d   :  { %v11489_v43 = vpop.f32.mrb[32].mxu1 }
0x192e   :  { %v3073_v41 = vpop.f32.mrb[33].mxu1 }
0x192f   :  { %v12265_v42 = vpack.c.bf16 %v11489_v43, %v3073_v41  ;;  %11508 = vmatprep.mubr.msk.f32.mxu0 %vm27_vm0, %v3073_v41 }
0x1931   :  { %12266 = vmatprep.subr.bf16.mxu1 %v12265_v42 }
0x1932   :  { %12268 = vmatpush3.bf16.msra.mxu1 %v12265_v42 }
0x1933   :  { %12274 = vmatprep.subr.bf16.mxu1 %v12273_v40 }
0x1935   :  { %11502 = vmatmul.mubr.msk.f32.vlgmr.msra.gmra.mrb[34].mxu1 %vm27_vm0, %v11496_v38 }
0x1936   :  { %12276 = vmatpush3.bf16.msra.mxu1 %v12273_v40 }
0x1a08   :  { %v11503_v44 = vpop.f32.mrb[34].mxu1 }
0x1a09   :  { %v3245_v46 = vsub.f32 %v12899_v25, %v11503_v44  ;;  %v3235_v47 = vpop.f32.mrb[35].mxu1 }
0x1a0a   :  { %v3244_v48 = vsub.f32 %v12902_v26, %v3235_v47 }
0x1a0b   :  { %v3247_v49 = vmul.f32 0.5, %v3245_v46 }
0x1a0c   :  { %v3246_v50 = vmul.f32 0.5, %v3244_v48 }
0x1a0e   :  { %v12269_v51 = vpack.c.bf16 %v3247_v49, %v3246_v50  ;;  %11515 = vmatprep.mubr.msk.f32.mxu1 %vm27_vm0, %v3246_v50 }
0x1a0f   :  { %11516 = vmatmul.mubr.msk.f32.vlgmr.msra.gmra.mrb[36].mxu1 %vm27_vm0, %v3247_v49 }
0x1a10   :  { %12270 = vmatprep.subr.bf16.mxu0 %v12269_v51 }
0x1a11   :  { %12272 = vmatpush3.bf16.msra.mxu0 %v12269_v51 }
0x1a14   :  { %11509 = vmatmul.mubr.msk.f32.vlgmr.msra.gmra.mrb[36].mxu0 %vm27_vm0, %v11489_v43 }
0x1ae2   :  { %v11517_v52 = vpop.f32.mrb[36].mxu1 }
0x1ae3   :  { %v3401_v53 = vpop.f32.mrb[37].mxu1 }
0x1ae4   :  { %v12285_v54 = vpack.c.bf16 %v11517_v52, %v3401_v53  ;;  %11522 = vmatprep.mubr.msk.f32.mxu0 %vm27_vm0, %v3401_v53 }
0x1ae7   :  { %v11510_v55 = vpop.f32.mrb[36].mxu0 }
0x1ae8   :  { %v3320_v56 = vpop.f32.mrb[37].mxu0 }
0x1ae9   :  { %v12277_v57 = vpack.c.bf16 %v11510_v55, %v3320_v56  ;;  %11529 = vmatprep.mubr.msk.f32.mxu1 %vm27_vm0, %v3320_v56 }
0x1aeb   :  { %12278 = vmatprep.subr.bf16.mxu0 %v12277_v57 }
0x1aec   :  { %12280 = vmatpush3.bf16.msra.mxu0 %v12277_v57 }
0x1aed   :  { %12286 = vmatprep.subr.bf16.mxu0 %v12285_v54 }
0x1aef   :  { %11523 = vmatmul.mubr.msk.f32.vlgmr.msra.gmra.mrb[38].mxu0 %vm27_vm0, %v11517_v52 }
0x1af0   :  { %12288 = vmatpush3.bf16.msra.mxu0 %v12285_v54 }
0x1bc2   :  { %v11524_v58 = vpop.f32.mrb[38].mxu0 }
0x1bc3   :  { %v3492_v59 = vsub.f32 %v12899_v25, %v11524_v58  ;;  %v3482_v60 = vpop.f32.mrb[39].mxu0 }
0x1bc4   :  { %v3491_v61 = vsub.f32 %v12902_v26, %v3482_v60 }
0x1bc5   :  { %v3494_v63 = vmul.f32 0.5, %v3492_v59 }
0x1bc6   :  { %v3493_v0 = vmul.f32 0.5, %v3491_v61 }
0x1bc8   :  { %v12281_v1 = vpack.c.bf16 %v3494_v63, %v3493_v0  ;;  %11536 = vmatprep.mubr.msk.f32.mxu0 %vm27_vm0, %v3493_v0 }
0x1bc9   :  { %11537 = vmatmul.mubr.msk.f32.vlgmr.msra.gmra.mrb[40].mxu0 %vm27_vm0, %v3494_v63 }
0x1bca   :  { %12282 = vmatprep.subr.bf16.mxu1 %v12281_v1 }
0x1bcb   :  { %12284 = vmatpush3.bf16.msra.mxu1 %v12281_v1 }
0x1bce   :  { %11530 = vmatmul.mubr.msk.f32.vlgmr.msra.gmra.mrb[38].mxu1 %vm27_vm0, %v11510_v55 }
0x1c9c   :  { %v11538_v4 = vpop.f32.mrb[40].mxu0 }
0x1c9d   :  { %v3648_v7 = vpop.f32.mrb[41].mxu0 }
0x1c9e   :  { %v12297_v8 = vpack.c.bf16 %v11538_v4, %v3648_v7  ;;  %11543 = vmatprep.mubr.msk.f32.mxu1 %vm27_vm0, %v3648_v7 }
0x1ca1   :  { %v11531_v45 = vpop.f32.mrb[38].mxu1 }
0x1ca2   :  { %v3567_v9 = vpop.f32.mrb[39].mxu1 }
0x1ca3   :  { %v12289_v10 = vpack.c.bf16 %v11531_v45, %v3567_v9  ;;  %11550 = vmatprep.mubr.msk.f32.mxu0 %vm27_vm0, %v3567_v9 }
0x1ca5   :  { %12290 = vmatprep.subr.bf16.mxu1 %v12289_v10 }
0x1ca6   :  { %12292 = vmatpush3.bf16.msra.mxu1 %v12289_v10 }
0x1ca7   :  { %12298 = vmatprep.subr.bf16.mxu1 %v12297_v8 }
0x1ca9   :  { %11544 = vmatmul.mubr.msk.f32.vlgmr.msra.gmra.mrb[40].mxu1 %vm27_vm0, %v11538_v4 }
0x1caa   :  { %12300 = vmatpush3.bf16.msra.mxu1 %v12297_v8 }
0x1d7c   :  { %v11545_v11 = vpop.f32.mrb[40].mxu1 }
0x1d7d   :  { %v3739_v12 = vsub.f32 %v12899_v25, %v11545_v11  ;;  %v3729_v13 = vpop.f32.mrb[41].mxu1 }
0x1d7e   :  { %v3738_v14 = vsub.f32 %v12902_v26, %v3729_v13 }
0x1d7f   :  { %v3741_v15 = vmul.f32 0.5, %v3739_v12 }
0x1d80   :  { %v3740_v16 = vmul.f32 0.5, %v3738_v14 }
0x1d82   :  { %v12293_v17 = vpack.c.bf16 %v3741_v15, %v3740_v16  ;;  %11557 = vmatprep.mubr.msk.f32.mxu1 %vm27_vm0, %v3740_v16 }
0x1d83   :  { %11558 = vmatmul.mubr.msk.f32.vlgmr.msra.gmra.mrb[42].mxu1 %vm27_vm0, %v3741_v15 }
0x1d84   :  { %12294 = vmatprep.subr.bf16.mxu0 %v12293_v17 }
0x1d85   :  { %12296 = vmatpush3.bf16.msra.mxu0 %v12293_v17 }
0x1d88   :  { %11551 = vmatmul.mubr.msk.f32.vlgmr.msra.gmra.mrb[42].mxu0 %vm27_vm0, %v11531_v45 }
0x1e56   :  { %v11559_v62 = vpop.f32.mrb[42].mxu1 }
0x1e57   :  { %v3895_v2 = vpop.f32.mrb[43].mxu1 }
0x1e58   :  { %v12309_v3 = vpack.c.bf16 %v11559_v62, %v3895_v2  ;;  %11564 = vmatprep.mubr.msk.f32.mxu0 %vm27_vm0, %v3895_v2 }
0x1e5b   :  { %v11552_v23 = vpop.f32.mrb[42].mxu0 }
0x1e5c   :  { %v3814_v24 = vpop.f32.mrb[43].mxu0 }
0x1e5d   :  { %v12301_v27 = vpack.c.bf16 %v11552_v23, %v3814_v24  ;;  %11571 = vmatprep.mubr.msk.f32.mxu1 %vm27_vm0, %v3814_v24 }
0x1e5f   :  { %12302 = vmatprep.subr.bf16.mxu0 %v12301_v27 }
0x1e60   :  { %12304 = vmatpush3.bf16.msra.mxu0 %v12301_v27 }
0x1e61   :  { %12310 = vmatprep.subr.bf16.mxu0 %v12309_v3 }
0x1e63   :  { %11565 = vmatmul.mubr.msk.f32.vlgmr.msra.gmra.mrb[44].mxu0 %vm27_vm0, %v11559_v62 }
0x1e64   :  { %12312 = vmatpush3.bf16.msra.mxu0 %v12309_v3 }
0x1f36   :  { %v11566_v28 = vpop.f32.mrb[44].mxu0 }
0x1f37   :  { %v3986_v29 = vsub.f32 %v12899_v25, %v11566_v28  ;;  %v3976_v30 = vpop.f32.mrb[45].mxu0 }
0x1f38   :  { %v3985_v22 = vsub.f32 %v12902_v26, %v3976_v30 }
0x1f39   :  { %v3988_v31 = vmul.f32 0.5, %v3986_v29 }
0x1f3a   :  { %v3987_v32 = vmul.f32 0.5, %v3985_v22 }
0x1f3c   :  { %v12305_v33 = vpack.c.bf16 %v3988_v31, %v3987_v32  ;;  %11578 = vmatprep.mubr.msk.f32.mxu0 %vm27_vm0, %v3987_v32 }
0x1f3d   :  { %11579 = vmatmul.mubr.msk.f32.vlgmr.msra.gmra.mrb[46].mxu0 %vm27_vm0, %v3988_v31 }
0x1f3e   :  { %12306 = vmatprep.subr.bf16.mxu1 %v12305_v33 }
0x1f3f   :  { %12308 = vmatpush3.bf16.msra.mxu1 %v12305_v33 }
0x1f42   :  { %11572 = vmatmul.mubr.msk.f32.vlgmr.msra.gmra.mrb[44].mxu1 %vm27_vm0, %v11552_v23 }
0x2010   :  { %v11580_v34 = vpop.f32.mrb[46].mxu0 }
0x2011   :  { %v4142_v35 = vpop.f32.mrb[47].mxu0 }
0x2012   :  { %v12321_v36 = vpack.c.bf16 %v11580_v34, %v4142_v35  ;;  %11585 = vmatprep.mubr.msk.f32.mxu1 %vm27_vm0, %v4142_v35 }
0x2015   :  { %v11573_v37 = vpop.f32.mrb[44].mxu1 }
0x2016   :  { %v4061_v38 = vpop.f32.mrb[45].mxu1 }
0x2017   :  { %v12313_v39 = vpack.c.bf16 %v11573_v37, %v4061_v38  ;;  %11592 = vmatprep.mubr.msk.f32.mxu0 %vm27_vm0, %v4061_v38 }
0x2019   :  { %12314 = vmatprep.subr.bf16.mxu1 %v12313_v39 }
0x201a   :  { %12316 = vmatpush3.bf16.msra.mxu1 %v12313_v39 }
0x201b   :  { %12322 = vmatprep.subr.bf16.mxu1 %v12321_v36 }
0x201d   :  { %11586 = vmatmul.mubr.msk.f32.vlgmr.msra.gmra.mrb[46].mxu1 %vm27_vm0, %v11580_v34 }
0x201e   :  { %12324 = vmatpush3.bf16.msra.mxu1 %v12321_v36 }
0x20f0   :  { %v11587_v40 = vpop.f32.mrb[46].mxu1 }
0x20f1   :  { %v4233_v43 = vsub.f32 %v12899_v25, %v11587_v40  ;;  %v4223_v41 = vpop.f32.mrb[47].mxu1 }
0x20f2   :  { %v4232_v42 = vsub.f32 %v12902_v26, %v4223_v41 }
0x20f3   :  { %v4235_v44 = vmul.f32 0.5, %v4233_v43 }
0x20f4   :  { %v4234_v46 = vmul.f32 0.5, %v4232_v42 }
0x20f6   :  { %v12317_v47 = vpack.c.bf16 %v4235_v44, %v4234_v46  ;;  %11599 = vmatprep.mubr.msk.f32.mxu1 %vm27_vm0, %v4234_v46 }
0x20f7   :  { %11600 = vmatmul.mubr.msk.f32.vlgmr.msra.gmra.mrb[48].mxu1 %vm27_vm0, %v4235_v44 }
0x20f8   :  { %12318 = vmatprep.subr.bf16.mxu0 %v12317_v47 }
0x20f9   :  { %12320 = vmatpush3.bf16.msra.mxu0 %v12317_v47 }
0x20fc   :  { %11593 = vmatmul.mubr.msk.f32.vlgmr.msra.gmra.mrb[48].mxu0 %vm27_vm0, %v11573_v37 }
0x21ca   :  { %v11601_v48 = vpop.f32.mrb[48].mxu1 }
0x21cb   :  { %v4389_v49 = vpop.f32.mrb[49].mxu1 }
0x21cc   :  { %v12333_v50 = vpack.c.bf16 %v11601_v48, %v4389_v49  ;;  %11606 = vmatprep.mubr.msk.f32.mxu0 %vm27_vm0, %v4389_v49 }
0x21cf   :  { %v11594_v51 = vpop.f32.mrb[48].mxu0 }
0x21d0   :  { %v4308_v52 = vpop.f32.mrb[49].mxu0 }
0x21d1   :  { %v12325_v53 = vpack.c.bf16 %v11594_v51, %v4308_v52  ;;  %11613 = vmatprep.mubr.msk.f32.mxu1 %vm27_vm0, %v4308_v52 }
0x21d3   :  { %12326 = vmatprep.subr.bf16.mxu0 %v12325_v53 }
0x21d4   :  { %12328 = vmatpush3.bf16.msra.mxu0 %v12325_v53 }
0x21d5   :  { %12334 = vmatprep.subr.bf16.mxu0 %v12333_v50 }
0x21d7   :  { %11607 = vmatmul.mubr.msk.f32.vlgmr.msra.gmra.mrb[50].mxu0 %vm27_vm0, %v11601_v48 }
0x21d8   :  { %12336 = vmatpush3.bf16.msra.mxu0 %v12333_v50 }
0x22aa   :  { %v11608_v54 = vpop.f32.mrb[50].mxu0 }
0x22ab   :  { %v4480_v55 = vsub.f32 %v12899_v25, %v11608_v54  ;;  %v4470_v56 = vpop.f32.mrb[51].mxu0 }
0x22ac   :  { %v4479_v57 = vsub.f32 %v12902_v26, %v4470_v56 }
0x22ad   :  { %v4482_v58 = vmul.f32 0.5, %v4480_v55 }
0x22ae   :  { %v4481_v59 = vmul.f32 0.5, %v4479_v57 }
0x22b0   :  { %v12329_v60 = vpack.c.bf16 %v4482_v58, %v4481_v59  ;;  %11620 = vmatprep.mubr.msk.f32.mxu0 %vm27_vm0, %v4481_v59 }
0x22b1   :  { %11621 = vmatmul.mubr.msk.f32.vlgmr.msra.gmra.mrb[52].mxu0 %vm27_vm0, %v4482_v58 }
0x22b2   :  { %12330 = vmatprep.subr.bf16.mxu1 %v12329_v60 }
0x22b3   :  { %12332 = vmatpush3.bf16.msra.mxu1 %v12329_v60 }
0x22b6   :  { %11614 = vmatmul.mubr.msk.f32.vlgmr.msra.gmra.mrb[50].mxu1 %vm27_vm0, %v11594_v51 }
0x2384   :  { %v11622_v61 = vpop.f32.mrb[52].mxu0 }
0x2385   :  { %v4636_v63 = vpop.f32.mrb[53].mxu0 }
0x2386   :  { %v12345_v0 = vpack.c.bf16 %v11622_v61, %v4636_v63  ;;  %11627 = vmatprep.mubr.msk.f32.mxu1 %vm27_vm0, %v4636_v63 }
0x2389   :  { %v11615_v1 = vpop.f32.mrb[50].mxu1 }
0x238a   :  { %v4555_v4 = vpop.f32.mrb[51].mxu1 }
0x238b   :  { %v12337_v7 = vpack.c.bf16 %v11615_v1, %v4555_v4  ;;  %11634 = vmatprep.mubr.msk.f32.mxu0 %vm27_vm0, %v4555_v4 }
0x238d   :  { %12338 = vmatprep.subr.bf16.mxu1 %v12337_v7 }
0x238e   :  { %12340 = vmatpush3.bf16.msra.mxu1 %v12337_v7 }
0x238f   :  { %12346 = vmatprep.subr.bf16.mxu1 %v12345_v0 }
0x2391   :  { %11628 = vmatmul.mubr.msk.f32.vlgmr.msra.gmra.mrb[52].mxu1 %vm27_vm0, %v11622_v61 }
0x2392   :  { %12348 = vmatpush3.bf16.msra.mxu1 %v12345_v0  ;;  %v5582_v0 = vpop.xlane.xlu1 %5581 }
0x2464   :  { %v11629_v8 = vpop.f32.mrb[52].mxu1 }
0x2465   :  { %v4727_v45 = vsub.f32 %v12899_v25, %v11629_v8  ;;  %v4717_v9 = vpop.f32.mrb[53].mxu1 }
0x2466   :  { %v4726_v10 = vsub.f32 %v12902_v26, %v4717_v9 }
0x2467   :  { %v4729_v11 = vmul.f32 0.5, %v4727_v45 }
0x2468   :  { %v4728_v12 = vmul.f32 0.5, %v4726_v10 }
0x246a   :  { %v12341_v13 = vpack.c.bf16 %v4729_v11, %v4728_v12  ;;  %11641 = vmatprep.mubr.msk.f32.mxu1 %vm27_vm0, %v4728_v12 }
0x246b   :  { %11642 = vmatmul.mubr.msk.f32.vlgmr.msra.gmra.mrb[54].mxu1 %vm27_vm0, %v4729_v11 }
0x246c   :  { %12342 = vmatprep.subr.bf16.mxu0 %v12341_v13 }
0x246d   :  { %12344 = vmatpush3.bf16.msra.mxu0 %v12341_v13 }
0x2470   :  { %11635 = vmatmul.mubr.msk.f32.vlgmr.msra.gmra.mrb[54].mxu0 %vm27_vm0, %v11615_v1  ;;  %v5583_v1 = vrot.slane %v5582_v0, 4 }
0x2472   :  { %v5584_v4 = vadd.f32 %v5583_v1, %v5582_v0 }
0x2474   :  { %v5585_v7 = vrot.slane %v5584_v4, 2 }
0x2476   :  { %v5586_v10 = vadd.f32 %v5585_v7, %v5584_v4 }
0x2478   :  { %v5587_v13 = vrot.slane %v5586_v10, 1 }
0x253e   :  { %v11643_v14 = vpop.f32.mrb[54].mxu1 }
0x253f   :  { %v4883_v15 = vpop.f32.mrb[55].mxu1 }
0x2540   :  { %v12357_v16 = vpack.c.bf16 %v11643_v14, %v4883_v15  ;;  %11648 = vmatprep.mubr.msk.f32.mxu0 %vm27_vm0, %v4883_v15 }
0x2543   :  { %v11636_v17 = vpop.f32.mrb[54].mxu0 }
0x2544   :  { %v4802_v62 = vpop.f32.mrb[55].mxu0 }
0x2545   :  { %v12349_v2 = vpack.c.bf16 %v11636_v17, %v4802_v62  ;;  %11655 = vmatprep.mubr.msk.f32.mxu1 %vm27_vm0, %v4802_v62 }
0x2547   :  { %12350 = vmatprep.subr.bf16.mxu0 %v12349_v2 }
0x2548   :  { %12352 = vmatpush3.bf16.msra.mxu0 %v12349_v2 }
0x2549   :  { %12358 = vmatprep.subr.bf16.mxu0 %v12357_v16 }
0x254b   :  { %11649 = vmatmul.mubr.msk.f32.vlgmr.msra.gmra.mrb[56].mxu0 %vm27_vm0, %v11643_v14 }
0x254c   :  { %12360 = vmatpush3.bf16.msra.mxu0 %v12357_v16  ;;  %v5588_v16 = vadd.f32 %v5587_v13, %v5586_v10 }
0x261e   :  { %v11650_v3 = vpop.f32.mrb[56].mxu0 }
0x261f   :  { %v4974_v23 = vsub.f32 %v12899_v25, %v11650_v3  ;;  %v4964_v24 = vpop.f32.mrb[57].mxu0 }
0x2620   :  { %v4973_v27 = vsub.f32 %v12902_v26, %v4964_v24 }
0x2621   :  { %v4976_v28 = vmul.f32 0.5, %v4974_v23 }
0x2622   :  { %v4975_v29 = vmul.f32 0.5, %v4973_v27 }
0x2624   :  { %v12353_v30 = vpack.c.bf16 %v4976_v28, %v4975_v29  ;;  %11662 = vmatprep.mubr.msk.f32.mxu0 %vm27_vm0, %v4975_v29 }
0x2625   :  { %11663 = vmatmul.mubr.msk.f32.vlgmr.msra.gmra.mrb[58].mxu0 %vm27_vm0, %v4976_v28 }
0x2626   :  { %12354 = vmatprep.subr.bf16.mxu1 %v12353_v30 }
0x2627   :  { %12356 = vmatpush3.bf16.msra.mxu1 %v12353_v30 }
0x262a   :  { %11656 = vmatmul.mubr.msk.f32.vlgmr.msra.gmra.mrb[56].mxu1 %vm27_vm0, %v11636_v17 }
0x26f8   :  { %v11664_v22 = vpop.f32.mrb[58].mxu0 }
0x26f9   :  { %v5130_v31 = vpop.f32.mrb[59].mxu0 }
0x26fa   :  { %v12369_v32 = vpack.c.bf16 %v11664_v22, %v5130_v31  ;;  %11669 = vmatprep.mubr.msk.f32.mxu1 %vm27_vm0, %v5130_v31 }
0x26fd   :  { %v11657_v33 = vpop.f32.mrb[56].mxu1 }
0x26fe   :  { %v5049_v34 = vpop.f32.mrb[57].mxu1 }
0x26ff   :  { %v12361_v35 = vpack.c.bf16 %v11657_v33, %v5049_v34  ;;  %11676 = vmatprep.mubr.msk.f32.mxu0 %vm27_vm0, %v5049_v34 }
0x2701   :  { %12362 = vmatprep.subr.bf16.mxu1 %v12361_v35 }
0x2702   :  { %12364 = vmatpush3.bf16.msra.mxu1 %v12361_v35 }
0x2703   :  { %12370 = vmatprep.subr.bf16.mxu1 %v12369_v32 }
0x2705   :  { %11670 = vmatmul.mubr.msk.f32.vlgmr.msra.gmra.mrb[58].mxu1 %vm27_vm0, %v11664_v22 }
0x2706   :  { %12372 = vmatpush3.bf16.msra.mxu1 %v12369_v32 }
0x27d8   :  { %v11671_v36 = vpop.f32.mrb[58].mxu1 }
0x27d9   :  { %v5221_v37 = vsub.f32 %v12899_v25, %v11671_v36  ;;  %v5211_v38 = vpop.f32.mrb[59].mxu1 }
0x27da   :  { %v5220_v39 = vsub.f32 %v12902_v26, %v5211_v38 }
0x27db   :  { %v5223_v40 = vmul.f32 0.5, %v5221_v37 }
0x27dc   :  { %v5222_v43 = vmul.f32 0.5, %v5220_v39 }
0x27de   :  { %v12365_v41 = vpack.c.bf16 %v5223_v40, %v5222_v43  ;;  %11683 = vmatprep.mubr.msk.f32.mxu1 %vm27_vm0, %v5222_v43 }
0x27df   :  { %11684 = vmatmul.mubr.msk.f32.vlgmr.msra.gmra.mrb[60].mxu1 %vm27_vm0, %v5223_v40 }
0x27e0   :  { %12366 = vmatprep.subr.bf16.mxu0 %v12365_v41 }
0x27e1   :  { %12368 = vmatpush3.bf16.msra.mxu0 %v12365_v41 }
0x27e4   :  { %11677 = vmatmul.mubr.msk.f32.vlgmr.msra.gmra.mrb[60].mxu0 %vm27_vm0, %v11657_v33 }
0x28b2   :  { %v11685_v42 = vpop.f32.mrb[60].mxu1 }
0x28b3   :  { %v5377_v44 = vpop.f32.mrb[61].mxu1 }
0x28b4   :  { %11690 = vmatprep.mubr.msk.f32.mxu0 %vm27_vm0, %v5377_v44 }
0x28b7   :  { %v11678_v46 = vpop.f32.mrb[60].mxu0 }
0x28b8   :  { %v5296_v47 = vpop.f32.mrb[61].mxu0 }
0x28b9   :  { %v12373_v48 = vpack.c.bf16 %v11678_v46, %v5296_v47  ;;  %11697 = vmatprep.mubr.msk.f32.mxu1 %vm27_vm0, %v5296_v47 }
0x28bb   :  { %12374 = vmatprep.subr.bf16.mxu0 %v12373_v48 }
0x28bc   :  { %12376 = vmatpush3.bf16.msra.mxu0 %v12373_v48 }
0x28bf   :  { %11691 = vmatmul.mubr.msk.f32.vlgmr.msra.gmra.mrb[62].mxu0 %vm27_vm0, %v11685_v42 }
0x28c0   :  { %11704 = vmatprep.mubr.msk.f32.mxu0 %vm27_vm0, %v12825_v5 }
0x2992   :  { %v11692_v49 = vpop.f32.mrb[62].mxu0 }
0x2993   :  { %v5468_v50 = vsub.f32 %v12899_v25, %v11692_v49  ;;  %v5458_v51 = vpop.f32.mrb[63].mxu0 }
0x2994   :  { %v5467_v52 = vsub.f32 %v12902_v26, %v5458_v51 }
0x2995   :  { %v5470_v53 = vmul.f32 0.5, %v5468_v50 }
0x2996   :  { %v5469_v54 = vmul.f32 0.5, %v5467_v52 }
0x2998   :  { %v12377_v55 = vpack.c.bf16 %v5470_v53, %v5469_v54 }
0x299a   :  { %12378 = vmatprep.subr.bf16.mxu1 %v12377_v55 }
0x299b   :  { %12380 = vmatpush3.bf16.msra.mxu1 %v12377_v55 }
0x299e   :  { %11698 = vmatmul.mubr.msk.f32.vlgmr.msra.gmra.mrb[62].mxu1 %vm27_vm0, %v11678_v46 }
0x2a71   :  { %v11699_v56 = vpop.f32.mrb[62].mxu1 }
0x2a72   :  { %v5562_v57 = vmul.f32 %v11699_v56, %v12830_v6  ;;  %v5543_v58 = vpop.f32.mrb[63].mxu1 }
0x2a73   :  { %v5561_v59 = vmul.f32 %v12825_v5, %v5543_v58 }
0x2a74   :  { %v5564_v60 = vsel %vm27_vm0, %v5562_v57, 0.0 }
0x2a75   :  { %v5563_v61 = vsel %vm27_vm0, %v5561_v59, 0.0 }
0x2a76   :  { %v5565_v63 = vadd.f32 %v5564_v60, %v5563_v61 }
0x2a78   :  { %5566 = vadd.xlane.f32.xlu0 %v5565_v63 }
0x2b05   :  { %v5567_v8 = vpop.xlane.xlu0 %5566 }
0x2b06   :  { %v5568_v45 = vrot.slane %v5567_v8, 4 }
0x2b08   :  { %v5569_v9 = vadd.f32 %v5568_v45, %v5567_v8 }
0x2b0a   :  { %v5570_v11 = vrot.slane %v5569_v9, 2 }
0x2b0c   :  { %v5571_v12 = vadd.f32 %v5570_v11, %v5569_v9 }
0x2b0e   :  { %v5572_v14 = vrot.slane %v5571_v12, 1 }
0x2b10   :  { %v5573_v15 = vadd.f32 %v5572_v14, %v5571_v12 }
0x2b12   :  { %12627 = vpush %v5573_v15 }
0x2b13   :  { %12629 = vpush %v5588_v16 }
0x2b43   :  { %s13067_s27 = spop %12627 }
0x2b44   :  { %s5575_s28 = smul.f32 %s13067_s27, %s13065_s26  ;;  %s12630_s1 = spop %12629 }
0x2b45   :  { %s5590_s29 = smax.f32 %s12696_s24, %s12630_s1 }
0x2b46   :  { %v5591_v17 = vstv %s5590_s29 }
0x2b47   :  { %12678 = vrcp.f32 %v5591_v17  ;;  %vm10451_vm9 = vcmp.eq.f32.partialorder %v5591_v17, inf  ;;  %v10454_v28 = vand.u32 2147483648, %v5591_v17  ;;  %vm10453_vm10 = vcmp.eq.f32.partialorder %v5591_v17, 0.0 }
0x2b48   :  { %12680 = vrsqrt.f32 %v5591_v17 }
0x2b51   :  { %v12679_v62 = vpop.eup %12678 }
0x2b52   :  { %v12681_v2 = vpop.eup %12680  ;;  %v5593_v3 = vmul.f32 %v12679_v62, %v12892_v21  ;;  %v5594_v23 = vmul.f32 %v12679_v62, %v12888_v20 }
0x2b53   :  { %v10450_v24 = vmul.f32 %v12681_v2, %v5591_v17 }
0x2b54   :  { %11711 = vmatprep.mubr.msk.f32.mxu1 %vm27_vm0, %v5593_v3  ;;  %v12381_v27 = vpack.c.bf16 %v5594_v23, %v5593_v3 }
0x2b55   :  { %v10452_v29 = vsel %vm10451_vm9, %v5591_v17, %v10450_v24 }
0x2b56   :  { %12382 = vmatprep.subr.bf16.mxu0 %v12381_v27  ;;  %v10455_v30 = vsel %vm10453_vm10, %v10454_v28, %v10452_v29 }
0x2b57   :  { %12631 = vpush %v10455_v30  ;;  %12384 = vmatpush3.bf16.msra.mxu0 %v12381_v27 }
0x2b58   :  { %12390 = vmatprep.subr.msk.bf16.mxu0 %vm12878_vm8, %v12697_v19 }
0x2b5a   :  { %11705 = vmatmul.mubr.msk.f32.vlgmr.msra.gmra.mrb[64].mxu0 %vm27_vm0, %v12830_v6 }
0x2b5b   :  { %12392 = vmatpush3.bf16.msk.msra.mxu0 %vm12878_vm8, %v12697_v19 }
0x2b88   :  { %s12632_s30 = spop %12631 }
0x2c2d   :  { %v11706_v20 = vpop.f32.mrb[64].mxu0 }
0x2c2e   :  { %v5671_v21 = vsub.f32 %v12899_v25, %v11706_v20  ;;  %v5661_v22 = vpop.f32.mrb[65].mxu0 }
0x2c2f   :  { %v5670_v31 = vsub.f32 %v12902_v26, %v5661_v22 }
0x2c30   :  { %v5673_v32 = vmul.f32 0.5, %v5671_v21 }
0x2c31   :  { %v5672_v33 = vmul.f32 0.5, %v5670_v31 }
0x2c33   :  { %v12385_v34 = vpack.c.bf16 %v5673_v32, %v5672_v33  ;;  %11718 = vmatprep.mubr.msk.f32.mxu0 %vm27_vm0, %v5672_v33 }
0x2c34   :  { %11719 = vmatmul.mubr.msk.f32.vlgmr.msra.gmra.mrb[66].mxu0 %vm27_vm0, %v5673_v32 }
0x2c35   :  { %12386 = vmatprep.subr.bf16.mxu1 %v12385_v34 }
0x2c36   :  { %12388 = vmatpush3.bf16.msra.mxu1 %v12385_v34 }
0x2c39   :  { %11712 = vmatmul.mubr.msk.f32.vlgmr.msra.gmra.mrb[64].mxu1 %vm27_vm0, %v5594_v23 }
0x2d07   :  { %v11720_v35 = vpop.f32.mrb[66].mxu0 }
0x2d08   :  { %v5827_v18 = vpop.f32.mrb[67].mxu0 }
0x2d09   :  { %v12401_v19 = vpack.c.bf16 %v11720_v35, %v5827_v18  ;;  %11725 = vmatprep.mubr.msk.f32.mxu1 %vm27_vm0, %v5827_v18 }
0x2d0c   :  { %v11713_v36 = vpop.f32.mrb[64].mxu1 }
0x2d0d   :  { %v5746_v37 = vpop.f32.mrb[65].mxu1 }
0x2d0e   :  { %v12393_v38 = vpack.c.bf16 %v11713_v36, %v5746_v37  ;;  %11732 = vmatprep.mubr.msk.f32.mxu0 %vm27_vm0, %v5746_v37 }
0x2d10   :  { %12394 = vmatprep.subr.bf16.mxu1 %v12393_v38 }
0x2d11   :  { %12396 = vmatpush3.bf16.msra.mxu1 %v12393_v38 }
0x2d12   :  { %12402 = vmatprep.subr.bf16.mxu1 %v12401_v19 }
0x2d14   :  { %11726 = vmatmul.mubr.msk.f32.vlgmr.msra.gmra.mrb[66].mxu1 %vm27_vm0, %v11720_v35 }
0x2d15   :  { %12404 = vmatpush3.bf16.msra.mxu1 %v12401_v19 }
0x2de7   :  { %v11727_v39 = vpop.f32.mrb[66].mxu1 }
0x2de8   :  { %v5918_v40 = vsub.f32 %v12899_v25, %v11727_v39  ;;  %v5908_v43 = vpop.f32.mrb[67].mxu1 }
0x2de9   :  { %v5917_v41 = vsub.f32 %v12902_v26, %v5908_v43 }
0x2dea   :  { %v5920_v42 = vmul.f32 0.5, %v5918_v40 }
0x2deb   :  { %v5919_v44 = vmul.f32 0.5, %v5917_v41 }
0x2ded   :  { %v12397_v46 = vpack.c.bf16 %v5920_v42, %v5919_v44  ;;  %11739 = vmatprep.mubr.msk.f32.mxu1 %vm27_vm0, %v5919_v44 }
0x2dee   :  { %11740 = vmatmul.mubr.msk.f32.vlgmr.msra.gmra.mrb[68].mxu1 %vm27_vm0, %v5920_v42 }
0x2def   :  { %12398 = vmatprep.subr.bf16.mxu0 %v12397_v46 }
0x2df0   :  { %12400 = vmatpush3.bf16.msra.mxu0 %v12397_v46 }
0x2df3   :  { %11733 = vmatmul.mubr.msk.f32.vlgmr.msra.gmra.mrb[68].mxu0 %vm27_vm0, %v11713_v36 }
0x2ec1   :  { %v11741_v47 = vpop.f32.mrb[68].mxu1 }
0x2ec2   :  { %v6074_v48 = vpop.f32.mrb[69].mxu1 }
0x2ec3   :  { %v12413_v49 = vpack.c.bf16 %v11741_v47, %v6074_v48  ;;  %11746 = vmatprep.mubr.msk.f32.mxu0 %vm27_vm0, %v6074_v48 }
0x2ec6   :  { %v11734_v50 = vpop.f32.mrb[68].mxu0 }
0x2ec7   :  { %v5993_v51 = vpop.f32.mrb[69].mxu0 }
0x2ec8   :  { %v12405_v52 = vpack.c.bf16 %v11734_v50, %v5993_v51  ;;  %11753 = vmatprep.mubr.msk.f32.mxu1 %vm27_vm0, %v5993_v51 }
0x2eca   :  { %12406 = vmatprep.subr.bf16.mxu0 %v12405_v52 }
0x2ecb   :  { %12408 = vmatpush3.bf16.msra.mxu0 %v12405_v52 }
0x2ecc   :  { %12414 = vmatprep.subr.bf16.mxu0 %v12413_v49 }
0x2ece   :  { %11747 = vmatmul.mubr.msk.f32.vlgmr.msra.gmra.mrb[70].mxu0 %vm27_vm0, %v11741_v47 }
0x2ecf   :  { %12416 = vmatpush3.bf16.msra.mxu0 %v12413_v49 }
0x2fa1   :  { %v11748_v53 = vpop.f32.mrb[70].mxu0 }
0x2fa2   :  { %v6165_v54 = vsub.f32 %v12899_v25, %v11748_v53  ;;  %v6155_v55 = vpop.f32.mrb[71].mxu0 }
0x2fa3   :  { %v6164_v56 = vsub.f32 %v12902_v26, %v6155_v55 }
0x2fa4   :  { %v6167_v57 = vmul.f32 0.5, %v6165_v54 }
0x2fa5   :  { %v6166_v58 = vmul.f32 0.5, %v6164_v56 }
0x2fa7   :  { %v12409_v59 = vpack.c.bf16 %v6167_v57, %v6166_v58  ;;  %11760 = vmatprep.mubr.msk.f32.mxu0 %vm27_vm0, %v6166_v58 }
0x2fa8   :  { %11761 = vmatmul.mubr.msk.f32.vlgmr.msra.gmra.mrb[72].mxu0 %vm27_vm0, %v6167_v57 }
0x2fa9   :  { %12410 = vmatprep.subr.bf16.mxu1 %v12409_v59 }
0x2faa   :  { %12412 = vmatpush3.bf16.msra.mxu1 %v12409_v59 }
0x2fad   :  { %11754 = vmatmul.mubr.msk.f32.vlgmr.msra.gmra.mrb[70].mxu1 %vm27_vm0, %v11734_v50 }
0x307b   :  { %v11762_v60 = vpop.f32.mrb[72].mxu0 }
0x307c   :  { %v6321_v61 = vpop.f32.mrb[73].mxu0 }
0x307d   :  { %v12425_v63 = vpack.c.bf16 %v11762_v60, %v6321_v61  ;;  %11767 = vmatprep.mubr.msk.f32.mxu1 %vm27_vm0, %v6321_v61 }
0x3080   :  { %v11755_v0 = vpop.f32.mrb[70].mxu1 }
0x3081   :  { %v6240_v1 = vpop.f32.mrb[71].mxu1 }
0x3082   :  { %v12417_v4 = vpack.c.bf16 %v11755_v0, %v6240_v1  ;;  %11774 = vmatprep.mubr.msk.f32.mxu0 %vm27_vm0, %v6240_v1 }
0x3084   :  { %12418 = vmatprep.subr.bf16.mxu1 %v12417_v4 }
0x3085   :  { %12420 = vmatpush3.bf16.msra.mxu1 %v12417_v4 }
0x3086   :  { %12426 = vmatprep.subr.bf16.mxu1 %v12425_v63 }
0x3088   :  { %11768 = vmatmul.mubr.msk.f32.vlgmr.msra.gmra.mrb[72].mxu1 %vm27_vm0, %v11762_v60 }
0x3089   :  { %12428 = vmatpush3.bf16.msra.mxu1 %v12425_v63 }
0x315b   :  { %v11769_v7 = vpop.f32.mrb[72].mxu1 }
0x315c   :  { %v6412_v8 = vsub.f32 %v12899_v25, %v11769_v7  ;;  %v6402_v45 = vpop.f32.mrb[73].mxu1 }
0x315d   :  { %v6411_v9 = vsub.f32 %v12902_v26, %v6402_v45 }
0x315e   :  { %v6414_v10 = vmul.f32 0.5, %v6412_v8 }
0x315f   :  { %v6413_v11 = vmul.f32 0.5, %v6411_v9 }
0x3161   :  { %v12421_v12 = vpack.c.bf16 %v6414_v10, %v6413_v11  ;;  %11781 = vmatprep.mubr.msk.f32.mxu1 %vm27_vm0, %v6413_v11 }
0x3162   :  { %11782 = vmatmul.mubr.msk.f32.vlgmr.msra.gmra.mrb[74].mxu1 %vm27_vm0, %v6414_v10 }
0x3163   :  { %12422 = vmatprep.subr.bf16.mxu0 %v12421_v12 }
0x3164   :  { %12424 = vmatpush3.bf16.msra.mxu0 %v12421_v12 }
0x3167   :  { %11775 = vmatmul.mubr.msk.f32.vlgmr.msra.gmra.mrb[74].mxu0 %vm27_vm0, %v11755_v0 }
0x3235   :  { %v11783_v13 = vpop.f32.mrb[74].mxu1 }
0x3236   :  { %v6568_v14 = vpop.f32.mrb[75].mxu1 }
0x3237   :  { %v12437_v15 = vpack.c.bf16 %v11783_v13, %v6568_v14  ;;  %11788 = vmatprep.mubr.msk.f32.mxu0 %vm27_vm0, %v6568_v14 }
0x323a   :  { %v11776_v16 = vpop.f32.mrb[74].mxu0 }
0x323b   :  { %v6487_v17 = vpop.f32.mrb[75].mxu0 }
0x323c   :  { %v12429_v62 = vpack.c.bf16 %v11776_v16, %v6487_v17  ;;  %11795 = vmatprep.mubr.msk.f32.mxu1 %vm27_vm0, %v6487_v17 }
0x323e   :  { %12430 = vmatprep.subr.bf16.mxu0 %v12429_v62 }
0x323f   :  { %12432 = vmatpush3.bf16.msra.mxu0 %v12429_v62 }
0x3240   :  { %12438 = vmatprep.subr.bf16.mxu0 %v12437_v15 }
0x3242   :  { %11789 = vmatmul.mubr.msk.f32.vlgmr.msra.gmra.mrb[76].mxu0 %vm27_vm0, %v11783_v13 }
0x3243   :  { %12440 = vmatpush3.bf16.msra.mxu0 %v12437_v15 }
0x3315   :  { %v11790_v2 = vpop.f32.mrb[76].mxu0 }
0x3316   :  { %v6659_v3 = vsub.f32 %v12899_v25, %v11790_v2  ;;  %v6649_v23 = vpop.f32.mrb[77].mxu0 }
0x3317   :  { %v6658_v24 = vsub.f32 %v12902_v26, %v6649_v23 }
0x3318   :  { %v6661_v27 = vmul.f32 0.5, %v6659_v3 }
0x3319   :  { %v6660_v28 = vmul.f32 0.5, %v6658_v24 }
0x331b   :  { %v12433_v29 = vpack.c.bf16 %v6661_v27, %v6660_v28  ;;  %11802 = vmatprep.mubr.msk.f32.mxu0 %vm27_vm0, %v6660_v28 }
0x331c   :  { %11803 = vmatmul.mubr.msk.f32.vlgmr.msra.gmra.mrb[78].mxu0 %vm27_vm0, %v6661_v27 }
0x331d   :  { %12434 = vmatprep.subr.bf16.mxu1 %v12433_v29 }
0x331e   :  { %12436 = vmatpush3.bf16.msra.mxu1 %v12433_v29 }
0x3321   :  { %11796 = vmatmul.mubr.msk.f32.vlgmr.msra.gmra.mrb[76].mxu1 %vm27_vm0, %v11776_v16 }
0x33ef   :  { %v11804_v30 = vpop.f32.mrb[78].mxu0 }
0x33f0   :  { %v6815_v20 = vpop.f32.mrb[79].mxu0 }
0x33f1   :  { %v12449_v21 = vpack.c.bf16 %v11804_v30, %v6815_v20  ;;  %11809 = vmatprep.mubr.msk.f32.mxu1 %vm27_vm0, %v6815_v20 }
0x33f4   :  { %v11797_v22 = vpop.f32.mrb[76].mxu1 }
0x33f5   :  { %v6734_v31 = vpop.f32.mrb[77].mxu1 }
0x33f6   :  { %v12441_v32 = vpack.c.bf16 %v11797_v22, %v6734_v31  ;;  %11816 = vmatprep.mubr.msk.f32.mxu0 %vm27_vm0, %v6734_v31 }
0x33f8   :  { %12442 = vmatprep.subr.bf16.mxu1 %v12441_v32 }
0x33f9   :  { %12444 = vmatpush3.bf16.msra.mxu1 %v12441_v32 }
0x33fa   :  { %12450 = vmatprep.subr.bf16.mxu1 %v12449_v21 }
0x33fc   :  { %11810 = vmatmul.mubr.msk.f32.vlgmr.msra.gmra.mrb[78].mxu1 %vm27_vm0, %v11804_v30 }
0x33fd   :  { %12452 = vmatpush3.bf16.msra.mxu1 %v12449_v21 }
0x34cf   :  { %v11811_v33 = vpop.f32.mrb[78].mxu1 }
0x34d0   :  { %v6906_v34 = vsub.f32 %v12899_v25, %v11811_v33  ;;  %v6896_v35 = vpop.f32.mrb[79].mxu1 }
0x34d1   :  { %v6905_v18 = vsub.f32 %v12902_v26, %v6896_v35 }
0x34d2   :  { %v6908_v19 = vmul.f32 0.5, %v6906_v34 }
0x34d3   :  { %v6907_v36 = vmul.f32 0.5, %v6905_v18 }
0x34d5   :  { %v12445_v37 = vpack.c.bf16 %v6908_v19, %v6907_v36  ;;  %11823 = vmatprep.mubr.msk.f32.mxu1 %vm27_vm0, %v6907_v36 }
0x34d6   :  { %11824 = vmatmul.mubr.msk.f32.vlgmr.msra.gmra.mrb[80].mxu1 %vm27_vm0, %v6908_v19 }
0x34d7   :  { %12446 = vmatprep.subr.bf16.mxu0 %v12445_v37 }
0x34d8   :  { %12448 = vmatpush3.bf16.msra.mxu0 %v12445_v37 }
0x34db   :  { %11817 = vmatmul.mubr.msk.f32.vlgmr.msra.gmra.mrb[80].mxu0 %vm27_vm0, %v11797_v22 }
0x35a9   :  { %v11825_v38 = vpop.f32.mrb[80].mxu1 }
0x35aa   :  { %v7062_v39 = vpop.f32.mrb[81].mxu1 }
0x35ab   :  { %v12461_v40 = vpack.c.bf16 %v11825_v38, %v7062_v39  ;;  %11830 = vmatprep.mubr.msk.f32.mxu0 %vm27_vm0, %v7062_v39 }
0x35ae   :  { %v11818_v43 = vpop.f32.mrb[80].mxu0 }
0x35af   :  { %v6981_v41 = vpop.f32.mrb[81].mxu0 }
0x35b0   :  { %v12453_v42 = vpack.c.bf16 %v11818_v43, %v6981_v41  ;;  %11837 = vmatprep.mubr.msk.f32.mxu1 %vm27_vm0, %v6981_v41 }
0x35b2   :  { %12454 = vmatprep.subr.bf16.mxu0 %v12453_v42 }
0x35b3   :  { %12456 = vmatpush3.bf16.msra.mxu0 %v12453_v42 }
0x35b4   :  { %12462 = vmatprep.subr.bf16.mxu0 %v12461_v40 }
0x35b6   :  { %11831 = vmatmul.mubr.msk.f32.vlgmr.msra.gmra.mrb[82].mxu0 %vm27_vm0, %v11825_v38 }
0x35b7   :  { %12464 = vmatpush3.bf16.msra.mxu0 %v12461_v40 }
0x3689   :  { %v11832_v44 = vpop.f32.mrb[82].mxu0 }
0x368a   :  { %v7153_v46 = vsub.f32 %v12899_v25, %v11832_v44  ;;  %v7143_v47 = vpop.f32.mrb[83].mxu0 }
0x368b   :  { %v7152_v48 = vsub.f32 %v12902_v26, %v7143_v47 }
0x368c   :  { %v7155_v49 = vmul.f32 0.5, %v7153_v46 }
0x368d   :  { %v7154_v50 = vmul.f32 0.5, %v7152_v48 }
0x368f   :  { %v12457_v51 = vpack.c.bf16 %v7155_v49, %v7154_v50  ;;  %11844 = vmatprep.mubr.msk.f32.mxu0 %vm27_vm0, %v7154_v50 }
0x3690   :  { %11845 = vmatmul.mubr.msk.f32.vlgmr.msra.gmra.mrb[84].mxu0 %vm27_vm0, %v7155_v49 }
0x3691   :  { %12458 = vmatprep.subr.bf16.mxu1 %v12457_v51 }
0x3692   :  { %12460 = vmatpush3.bf16.msra.mxu1 %v12457_v51 }
0x3695   :  { %11838 = vmatmul.mubr.msk.f32.vlgmr.msra.gmra.mrb[82].mxu1 %vm27_vm0, %v11818_v43 }
0x3763   :  { %v11846_v52 = vpop.f32.mrb[84].mxu0 }
0x3764   :  { %v7309_v53 = vpop.f32.mrb[85].mxu0 }
0x3765   :  { %v12473_v54 = vpack.c.bf16 %v11846_v52, %v7309_v53  ;;  %11851 = vmatprep.mubr.msk.f32.mxu1 %vm27_vm0, %v7309_v53 }
0x3768   :  { %v11839_v55 = vpop.f32.mrb[82].mxu1 }
0x3769   :  { %v7228_v56 = vpop.f32.mrb[83].mxu1 }
0x376a   :  { %v12465_v57 = vpack.c.bf16 %v11839_v55, %v7228_v56  ;;  %11858 = vmatprep.mubr.msk.f32.mxu0 %vm27_vm0, %v7228_v56 }
0x376c   :  { %12466 = vmatprep.subr.bf16.mxu1 %v12465_v57 }
0x376d   :  { %12468 = vmatpush3.bf16.msra.mxu1 %v12465_v57 }
0x376e   :  { %12474 = vmatprep.subr.bf16.mxu1 %v12473_v54 }
0x3770   :  { %11852 = vmatmul.mubr.msk.f32.vlgmr.msra.gmra.mrb[84].mxu1 %vm27_vm0, %v11846_v52 }
0x3771   :  { %12476 = vmatpush3.bf16.msra.mxu1 %v12473_v54 }
0x3843   :  { %v11853_v58 = vpop.f32.mrb[84].mxu1 }
0x3844   :  { %v7400_v59 = vsub.f32 %v12899_v25, %v11853_v58  ;;  %v7390_v60 = vpop.f32.mrb[85].mxu1 }
0x3845   :  { %v7399_v61 = vsub.f32 %v12902_v26, %v7390_v60 }
0x3846   :  { %v7402_v63 = vmul.f32 0.5, %v7400_v59 }
0x3847   :  { %v7401_v0 = vmul.f32 0.5, %v7399_v61 }
0x3849   :  { %v12469_v1 = vpack.c.bf16 %v7402_v63, %v7401_v0  ;;  %11865 = vmatprep.mubr.msk.f32.mxu1 %vm27_vm0, %v7401_v0 }
0x384a   :  { %11866 = vmatmul.mubr.msk.f32.vlgmr.msra.gmra.mrb[86].mxu1 %vm27_vm0, %v7402_v63 }
0x384b   :  { %12470 = vmatprep.subr.bf16.mxu0 %v12469_v1 }
0x384c   :  { %12472 = vmatpush3.bf16.msra.mxu0 %v12469_v1 }
0x384f   :  { %11859 = vmatmul.mubr.msk.f32.vlgmr.msra.gmra.mrb[86].mxu0 %vm27_vm0, %v11839_v55 }
0x391d   :  { %v11867_v4 = vpop.f32.mrb[86].mxu1 }
0x391e   :  { %v7556_v7 = vpop.f32.mrb[87].mxu1 }
0x391f   :  { %v12485_v8 = vpack.c.bf16 %v11867_v4, %v7556_v7  ;;  %11872 = vmatprep.mubr.msk.f32.mxu0 %vm27_vm0, %v7556_v7 }
0x3922   :  { %v11860_v45 = vpop.f32.mrb[86].mxu0 }
0x3923   :  { %v7475_v9 = vpop.f32.mrb[87].mxu0 }
0x3924   :  { %v12477_v10 = vpack.c.bf16 %v11860_v45, %v7475_v9  ;;  %11879 = vmatprep.mubr.msk.f32.mxu1 %vm27_vm0, %v7475_v9 }
0x3926   :  { %12478 = vmatprep.subr.bf16.mxu0 %v12477_v10 }
0x3927   :  { %12480 = vmatpush3.bf16.msra.mxu0 %v12477_v10 }
0x3928   :  { %12486 = vmatprep.subr.bf16.mxu0 %v12485_v8 }
0x392a   :  { %11873 = vmatmul.mubr.msk.f32.vlgmr.msra.gmra.mrb[88].mxu0 %vm27_vm0, %v11867_v4 }
0x392b   :  { %12488 = vmatpush3.bf16.msra.mxu0 %v12485_v8 }
0x39fd   :  { %v11874_v11 = vpop.f32.mrb[88].mxu0 }
0x39fe   :  { %v7647_v12 = vsub.f32 %v12899_v25, %v11874_v11  ;;  %v7637_v13 = vpop.f32.mrb[89].mxu0 }
0x39ff   :  { %v7646_v14 = vsub.f32 %v12902_v26, %v7637_v13 }
0x3a00   :  { %v7649_v15 = vmul.f32 0.5, %v7647_v12 }
0x3a01   :  { %v7648_v16 = vmul.f32 0.5, %v7646_v14 }
0x3a03   :  { %v12481_v17 = vpack.c.bf16 %v7649_v15, %v7648_v16  ;;  %11886 = vmatprep.mubr.msk.f32.mxu0 %vm27_vm0, %v7648_v16 }
0x3a04   :  { %11887 = vmatmul.mubr.msk.f32.vlgmr.msra.gmra.mrb[90].mxu0 %vm27_vm0, %v7649_v15 }
0x3a05   :  { %12482 = vmatprep.subr.bf16.mxu1 %v12481_v17 }
0x3a06   :  { %12484 = vmatpush3.bf16.msra.mxu1 %v12481_v17 }
0x3a09   :  { %11880 = vmatmul.mubr.msk.f32.vlgmr.msra.gmra.mrb[88].mxu1 %vm27_vm0, %v11860_v45 }
0x3ad7   :  { %v11888_v62 = vpop.f32.mrb[90].mxu0 }
0x3ad8   :  { %v7803_v2 = vpop.f32.mrb[91].mxu0 }
0x3ad9   :  { %v12497_v3 = vpack.c.bf16 %v11888_v62, %v7803_v2  ;;  %11893 = vmatprep.mubr.msk.f32.mxu1 %vm27_vm0, %v7803_v2 }
0x3adc   :  { %v11881_v23 = vpop.f32.mrb[88].mxu1 }
0x3add   :  { %v7722_v24 = vpop.f32.mrb[89].mxu1 }
0x3ade   :  { %v12489_v27 = vpack.c.bf16 %v11881_v23, %v7722_v24  ;;  %11900 = vmatprep.mubr.msk.f32.mxu0 %vm27_vm0, %v7722_v24 }
0x3ae0   :  { %12490 = vmatprep.subr.bf16.mxu1 %v12489_v27 }
0x3ae1   :  { %12492 = vmatpush3.bf16.msra.mxu1 %v12489_v27 }
0x3ae2   :  { %12498 = vmatprep.subr.bf16.mxu1 %v12497_v3 }
0x3ae4   :  { %11894 = vmatmul.mubr.msk.f32.vlgmr.msra.gmra.mrb[90].mxu1 %vm27_vm0, %v11888_v62 }
0x3ae5   :  { %12500 = vmatpush3.bf16.msra.mxu1 %v12497_v3 }
0x3bb7   :  { %v11895_v28 = vpop.f32.mrb[90].mxu1 }
0x3bb8   :  { %v7894_v29 = vsub.f32 %v12899_v25, %v11895_v28  ;;  %v7884_v30 = vpop.f32.mrb[91].mxu1 }
0x3bb9   :  { %v7893_v20 = vsub.f32 %v12902_v26, %v7884_v30 }
0x3bba   :  { %v7896_v21 = vmul.f32 0.5, %v7894_v29 }
0x3bbb   :  { %v7895_v22 = vmul.f32 0.5, %v7893_v20 }
0x3bbd   :  { %v12493_v31 = vpack.c.bf16 %v7896_v21, %v7895_v22  ;;  %11907 = vmatprep.mubr.msk.f32.mxu1 %vm27_vm0, %v7895_v22 }
0x3bbe   :  { %11908 = vmatmul.mubr.msk.f32.vlgmr.msra.gmra.mrb[92].mxu1 %vm27_vm0, %v7896_v21 }
0x3bbf   :  { %12494 = vmatprep.subr.bf16.mxu0 %v12493_v31 }
0x3bc0   :  { %12496 = vmatpush3.bf16.msra.mxu0 %v12493_v31 }
0x3bc3   :  { %11901 = vmatmul.mubr.msk.f32.vlgmr.msra.gmra.mrb[92].mxu0 %vm27_vm0, %v11881_v23 }
0x3c91   :  { %v11909_v32 = vpop.f32.mrb[92].mxu1 }
0x3c92   :  { %v8050_v33 = vpop.f32.mrb[93].mxu1 }
0x3c93   :  { %v12509_v34 = vpack.c.bf16 %v11909_v32, %v8050_v33  ;;  %11914 = vmatprep.mubr.msk.f32.mxu0 %vm27_vm0, %v8050_v33 }
0x3c96   :  { %v11902_v35 = vpop.f32.mrb[92].mxu0 }
0x3c97   :  { %v7969_v18 = vpop.f32.mrb[93].mxu0 }
0x3c98   :  { %v12501_v19 = vpack.c.bf16 %v11902_v35, %v7969_v18  ;;  %11921 = vmatprep.mubr.msk.f32.mxu1 %vm27_vm0, %v7969_v18 }
0x3c9a   :  { %12502 = vmatprep.subr.bf16.mxu0 %v12501_v19 }
0x3c9b   :  { %12504 = vmatpush3.bf16.msra.mxu0 %v12501_v19 }
0x3c9c   :  { %12510 = vmatprep.subr.bf16.mxu0 %v12509_v34 }
0x3c9e   :  { %11915 = vmatmul.mubr.msk.f32.vlgmr.msra.gmra.mrb[94].mxu0 %vm27_vm0, %v11909_v32 }
0x3c9f   :  { %12512 = vmatpush3.bf16.msra.mxu0 %v12509_v34 }
0x3d71   :  { %v11916_v36 = vpop.f32.mrb[94].mxu0 }
0x3d72   :  { %v8141_v37 = vsub.f32 %v12899_v25, %v11916_v36  ;;  %v8131_v38 = vpop.f32.mrb[95].mxu0 }
0x3d73   :  { %v8140_v39 = vsub.f32 %v12902_v26, %v8131_v38 }
0x3d74   :  { %v8143_v40 = vmul.f32 0.5, %v8141_v37 }
0x3d75   :  { %v8142_v43 = vmul.f32 0.5, %v8140_v39 }
0x3d77   :  { %v12505_v41 = vpack.c.bf16 %v8143_v40, %v8142_v43  ;;  %11928 = vmatprep.mubr.msk.f32.mxu0 %vm27_vm0, %v8142_v43 }
0x3d78   :  { %11929 = vmatmul.mubr.msk.f32.vlgmr.msra.gmra.mrb[96].mxu0 %vm27_vm0, %v8143_v40 }
0x3d79   :  { %12506 = vmatprep.subr.bf16.mxu1 %v12505_v41 }
0x3d7a   :  { %12508 = vmatpush3.bf16.msra.mxu1 %v12505_v41 }
0x3d7d   :  { %11922 = vmatmul.mubr.msk.f32.vlgmr.msra.gmra.mrb[94].mxu1 %vm27_vm0, %v11902_v35 }
0x3e4b   :  { %v11930_v42 = vpop.f32.mrb[96].mxu0 }
0x3e4c   :  { %v8297_v44 = vpop.f32.mrb[97].mxu0 }
0x3e4d   :  { %v12521_v46 = vpack.c.bf16 %v11930_v42, %v8297_v44  ;;  %11935 = vmatprep.mubr.msk.f32.mxu1 %vm27_vm0, %v8297_v44 }
0x3e50   :  { %v11923_v47 = vpop.f32.mrb[94].mxu1 }
0x3e51   :  { %v8216_v48 = vpop.f32.mrb[95].mxu1 }
0x3e52   :  { %v12513_v49 = vpack.c.bf16 %v11923_v47, %v8216_v48  ;;  %11942 = vmatprep.mubr.msk.f32.mxu0 %vm27_vm0, %v8216_v48 }
0x3e54   :  { %12514 = vmatprep.subr.bf16.mxu1 %v12513_v49 }
0x3e55   :  { %12516 = vmatpush3.bf16.msra.mxu1 %v12513_v49 }
0x3e56   :  { %12522 = vmatprep.subr.bf16.mxu1 %v12521_v46 }
0x3e58   :  { %11936 = vmatmul.mubr.msk.f32.vlgmr.msra.gmra.mrb[96].mxu1 %vm27_vm0, %v11930_v42 }
0x3e59   :  { %12524 = vmatpush3.bf16.msra.mxu1 %v12521_v46 }
0x3f2b   :  { %v11937_v50 = vpop.f32.mrb[96].mxu1 }
0x3f2c   :  { %v8388_v51 = vsub.f32 %v12899_v25, %v11937_v50  ;;  %v8378_v52 = vpop.f32.mrb[97].mxu1 }
0x3f2d   :  { %v8387_v53 = vsub.f32 %v12902_v26, %v8378_v52 }
0x3f2e   :  { %v8390_v54 = vmul.f32 0.5, %v8388_v51 }
0x3f2f   :  { %v8389_v55 = vmul.f32 0.5, %v8387_v53 }
0x3f31   :  { %v12517_v56 = vpack.c.bf16 %v8390_v54, %v8389_v55  ;;  %11949 = vmatprep.mubr.msk.f32.mxu1 %vm27_vm0, %v8389_v55 }
0x3f32   :  { %11950 = vmatmul.mubr.msk.f32.vlgmr.msra.gmra.mrb[98].mxu1 %vm27_vm0, %v8390_v54 }
0x3f33   :  { %12518 = vmatprep.subr.bf16.mxu0 %v12517_v56 }
0x3f34   :  { %12520 = vmatpush3.bf16.msra.mxu0 %v12517_v56 }
0x3f37   :  { %11943 = vmatmul.mubr.msk.f32.vlgmr.msra.gmra.mrb[98].mxu0 %vm27_vm0, %v11923_v47 }
0x4005   :  { %v11951_v57 = vpop.f32.mrb[98].mxu1 }
0x4006   :  { %v8544_v58 = vpop.f32.mrb[99].mxu1 }
0x4007   :  { %v12533_v59 = vpack.c.bf16 %v11951_v57, %v8544_v58  ;;  %11956 = vmatprep.mubr.msk.f32.mxu0 %vm27_vm0, %v8544_v58 }
0x400a   :  { %v11944_v60 = vpop.f32.mrb[98].mxu0 }
0x400b   :  { %v8463_v61 = vpop.f32.mrb[99].mxu0 }
0x400c   :  { %v12525_v63 = vpack.c.bf16 %v11944_v60, %v8463_v61  ;;  %11963 = vmatprep.mubr.msk.f32.mxu1 %vm27_vm0, %v8463_v61 }
0x400e   :  { %12526 = vmatprep.subr.bf16.mxu0 %v12525_v63 }
0x400f   :  { %12528 = vmatpush3.bf16.msra.mxu0 %v12525_v63 }
0x4010   :  { %12534 = vmatprep.subr.bf16.mxu0 %v12533_v59 }
0x4012   :  { %11957 = vmatmul.mubr.msk.f32.vlgmr.msra.gmra.mrb[100].mxu0 %vm27_vm0, %v11951_v57 }
0x4013   :  { %12536 = vmatpush3.bf16.msra.mxu0 %v12533_v59 }
0x40e5   :  { %v11958_v0 = vpop.f32.mrb[100].mxu0 }
0x40e6   :  { %v8635_v1 = vsub.f32 %v12899_v25, %v11958_v0  ;;  %v8625_v4 = vpop.f32.mrb[101].mxu0 }
0x40e7   :  { %v8634_v7 = vsub.f32 %v12902_v26, %v8625_v4 }
0x40e8   :  { %v8637_v8 = vmul.f32 0.5, %v8635_v1 }
0x40e9   :  { %v8636_v45 = vmul.f32 0.5, %v8634_v7 }
0x40eb   :  { %v12529_v9 = vpack.c.bf16 %v8637_v8, %v8636_v45  ;;  %11970 = vmatprep.mubr.msk.f32.mxu0 %vm27_vm0, %v8636_v45 }
0x40ec   :  { %11971 = vmatmul.mubr.msk.f32.vlgmr.msra.gmra.mrb[102].mxu0 %vm27_vm0, %v8637_v8 }
0x40ed   :  { %12530 = vmatprep.subr.bf16.mxu1 %v12529_v9 }
0x40ee   :  { %12532 = vmatpush3.bf16.msra.mxu1 %v12529_v9 }
0x40f1   :  { %11964 = vmatmul.mubr.msk.f32.vlgmr.msra.gmra.mrb[100].mxu1 %vm27_vm0, %v11944_v60 }
0x41bf   :  { %v11972_v10 = vpop.f32.mrb[102].mxu0 }
0x41c0   :  { %v8791_v11 = vpop.f32.mrb[103].mxu0 }
0x41c1   :  { %v12545_v12 = vpack.c.bf16 %v11972_v10, %v8791_v11  ;;  %11977 = vmatprep.mubr.msk.f32.mxu1 %vm27_vm0, %v8791_v11 }
0x41c4   :  { %v11965_v13 = vpop.f32.mrb[100].mxu1 }
0x41c5   :  { %v8710_v14 = vpop.f32.mrb[101].mxu1 }
0x41c6   :  { %v12537_v15 = vpack.c.bf16 %v11965_v13, %v8710_v14  ;;  %11984 = vmatprep.mubr.msk.f32.mxu0 %vm27_vm0, %v8710_v14 }
0x41c8   :  { %12538 = vmatprep.subr.bf16.mxu1 %v12537_v15 }
0x41c9   :  { %12540 = vmatpush3.bf16.msra.mxu1 %v12537_v15 }
0x41ca   :  { %12546 = vmatprep.subr.bf16.mxu1 %v12545_v12 }
0x41cc   :  { %11978 = vmatmul.mubr.msk.f32.vlgmr.msra.gmra.mrb[102].mxu1 %vm27_vm0, %v11972_v10 }
0x41cd   :  { %12548 = vmatpush3.bf16.msra.mxu1 %v12545_v12 }
0x429f   :  { %v11979_v16 = vpop.f32.mrb[102].mxu1 }
0x42a0   :  { %v8882_v17 = vsub.f32 %v12899_v25, %v11979_v16  ;;  %v8872_v62 = vpop.f32.mrb[103].mxu1 }
0x42a1   :  { %v8881_v2 = vsub.f32 %v12902_v26, %v8872_v62 }
0x42a2   :  { %v8884_v3 = vmul.f32 0.5, %v8882_v17 }
0x42a3   :  { %v8883_v23 = vmul.f32 0.5, %v8881_v2 }
0x42a5   :  { %v12541_v24 = vpack.c.bf16 %v8884_v3, %v8883_v23  ;;  %11991 = vmatprep.mubr.msk.f32.mxu1 %vm27_vm0, %v8883_v23 }
0x42a6   :  { %11992 = vmatmul.mubr.msk.f32.vlgmr.msra.gmra.mrb[104].mxu1 %vm27_vm0, %v8884_v3 }
0x42a7   :  { %12542 = vmatprep.subr.bf16.mxu0 %v12541_v24 }
0x42a8   :  { %12544 = vmatpush3.bf16.msra.mxu0 %v12541_v24 }
0x42ab   :  { %11985 = vmatmul.mubr.msk.f32.vlgmr.msra.gmra.mrb[104].mxu0 %vm27_vm0, %v11965_v13 }
0x4379   :  { %v11993_v27 = vpop.f32.mrb[104].mxu1 }
0x437a   :  { %v9038_v28 = vpop.f32.mrb[105].mxu1 }
0x437b   :  { %v12557_v29 = vpack.c.bf16 %v11993_v27, %v9038_v28  ;;  %11998 = vmatprep.mubr.msk.f32.mxu0 %vm27_vm0, %v9038_v28 }
0x437e   :  { %v11986_v30 = vpop.f32.mrb[104].mxu0 }
0x437f   :  { %v8957_v20 = vpop.f32.mrb[105].mxu0 }
0x4380   :  { %v12549_v21 = vpack.c.bf16 %v11986_v30, %v8957_v20  ;;  %12005 = vmatprep.mubr.msk.f32.mxu1 %vm27_vm0, %v8957_v20 }
0x4382   :  { %12550 = vmatprep.subr.bf16.mxu0 %v12549_v21 }
0x4383   :  { %12552 = vmatpush3.bf16.msra.mxu0 %v12549_v21 }
0x4384   :  { %12558 = vmatprep.subr.bf16.mxu0 %v12557_v29 }
0x4386   :  { %11999 = vmatmul.mubr.msk.f32.vlgmr.msra.gmra.mrb[106].mxu0 %vm27_vm0, %v11993_v27 }
0x4387   :  { %12560 = vmatpush3.bf16.msra.mxu0 %v12557_v29 }
0x4459   :  { %v12000_v22 = vpop.f32.mrb[106].mxu0 }
0x445a   :  { %v9129_v31 = vsub.f32 %v12899_v25, %v12000_v22  ;;  %v9119_v32 = vpop.f32.mrb[107].mxu0 }
0x445b   :  { %v9128_v33 = vsub.f32 %v12902_v26, %v9119_v32 }
0x445c   :  { %v9131_v34 = vmul.f32 0.5, %v9129_v31 }
0x445d   :  { %v9130_v35 = vmul.f32 0.5, %v9128_v33 }
0x445f   :  { %v12553_v18 = vpack.c.bf16 %v9131_v34, %v9130_v35  ;;  %12012 = vmatprep.mubr.msk.f32.mxu0 %vm27_vm0, %v9130_v35 }
0x4460   :  { %12013 = vmatmul.mubr.msk.f32.vlgmr.msra.gmra.mrb[108].mxu0 %vm27_vm0, %v9131_v34 }
0x4461   :  { %12554 = vmatprep.subr.bf16.mxu1 %v12553_v18 }
0x4462   :  { %12556 = vmatpush3.bf16.msra.mxu1 %v12553_v18 }
0x4465   :  { %12006 = vmatmul.mubr.msk.f32.vlgmr.msra.gmra.mrb[106].mxu1 %vm27_vm0, %v11986_v30 }
0x4533   :  { %v12014_v19 = vpop.f32.mrb[108].mxu0 }
0x4534   :  { %v9285_v36 = vpop.f32.mrb[109].mxu0 }
0x4535   :  { %v12569_v37 = vpack.c.bf16 %v12014_v19, %v9285_v36  ;;  %12019 = vmatprep.mubr.msk.f32.mxu1 %vm27_vm0, %v9285_v36 }
0x4538   :  { %v12007_v38 = vpop.f32.mrb[106].mxu1 }
0x4539   :  { %v9204_v39 = vpop.f32.mrb[107].mxu1 }
0x453a   :  { %v12561_v40 = vpack.c.bf16 %v12007_v38, %v9204_v39  ;;  %12026 = vmatprep.mubr.msk.f32.mxu0 %vm27_vm0, %v9204_v39 }
0x453c   :  { %12562 = vmatprep.subr.bf16.mxu1 %v12561_v40 }
0x453d   :  { %12564 = vmatpush3.bf16.msra.mxu1 %v12561_v40 }
0x453e   :  { %12570 = vmatprep.subr.bf16.mxu1 %v12569_v37 }
0x4540   :  { %12020 = vmatmul.mubr.msk.f32.vlgmr.msra.gmra.mrb[108].mxu1 %vm27_vm0, %v12014_v19 }
0x4541   :  { %12572 = vmatpush3.bf16.msra.mxu1 %v12569_v37 }
0x4613   :  { %v12021_v43 = vpop.f32.mrb[108].mxu1 }
0x4614   :  { %v9376_v41 = vsub.f32 %v12899_v25, %v12021_v43  ;;  %v9366_v42 = vpop.f32.mrb[109].mxu1 }
0x4615   :  { %v9375_v44 = vsub.f32 %v12902_v26, %v9366_v42 }
0x4616   :  { %v9378_v46 = vmul.f32 0.5, %v9376_v41 }
0x4617   :  { %v9377_v47 = vmul.f32 0.5, %v9375_v44 }
0x4619   :  { %v12565_v48 = vpack.c.bf16 %v9378_v46, %v9377_v47  ;;  %12033 = vmatprep.mubr.msk.f32.mxu1 %vm27_vm0, %v9377_v47 }
0x461a   :  { %12034 = vmatmul.mubr.msk.f32.vlgmr.msra.gmra.mrb[110].mxu1 %vm27_vm0, %v9378_v46 }
0x461b   :  { %12566 = vmatprep.subr.bf16.mxu0 %v12565_v48 }
0x461c   :  { %12568 = vmatpush3.bf16.msra.mxu0 %v12565_v48 }
0x461f   :  { %12027 = vmatmul.mubr.msk.f32.vlgmr.msra.gmra.mrb[110].mxu0 %vm27_vm0, %v12007_v38 }
0x46ed   :  { %v12035_v49 = vpop.f32.mrb[110].mxu1 }
0x46ee   :  { %v9532_v50 = vpop.f32.mrb[111].mxu1 }
0x46ef   :  { %v12581_v51 = vpack.c.bf16 %v12035_v49, %v9532_v50  ;;  %12040 = vmatprep.mubr.msk.f32.mxu0 %vm27_vm0, %v9532_v50 }
0x46f2   :  { %v12028_v52 = vpop.f32.mrb[110].mxu0 }
0x46f3   :  { %v9451_v53 = vpop.f32.mrb[111].mxu0 }
0x46f4   :  { %v12573_v54 = vpack.c.bf16 %v12028_v52, %v9451_v53  ;;  %12047 = vmatprep.mubr.msk.f32.mxu1 %vm27_vm0, %v9451_v53 }
0x46f6   :  { %12574 = vmatprep.subr.bf16.mxu0 %v12573_v54 }
0x46f7   :  { %12576 = vmatpush3.bf16.msra.mxu0 %v12573_v54 }
0x46f8   :  { %12582 = vmatprep.subr.bf16.mxu0 %v12581_v51 }
0x46fa   :  { %12041 = vmatmul.mubr.msk.f32.vlgmr.msra.gmra.mrb[112].mxu0 %vm27_vm0, %v12035_v49 }
0x46fb   :  { %12584 = vmatpush3.bf16.msra.mxu0 %v12581_v51 }
0x47cd   :  { %v12042_v55 = vpop.f32.mrb[112].mxu0 }
0x47ce   :  { %v9623_v56 = vsub.f32 %v12899_v25, %v12042_v55  ;;  %v9613_v57 = vpop.f32.mrb[113].mxu0 }
0x47cf   :  { %v9622_v58 = vsub.f32 %v12902_v26, %v9613_v57 }
0x47d0   :  { %v9625_v59 = vmul.f32 0.5, %v9623_v56 }
0x47d1   :  { %v9624_v60 = vmul.f32 0.5, %v9622_v58 }
0x47d3   :  { %v12577_v61 = vpack.c.bf16 %v9625_v59, %v9624_v60  ;;  %12054 = vmatprep.mubr.msk.f32.mxu0 %vm27_vm0, %v9624_v60 }
0x47d4   :  { %12055 = vmatmul.mubr.msk.f32.vlgmr.msra.gmra.mrb[114].mxu0 %vm27_vm0, %v9625_v59 }
0x47d5   :  { %12578 = vmatprep.subr.bf16.mxu1 %v12577_v61 }
0x47d6   :  { %12580 = vmatpush3.bf16.msra.mxu1 %v12577_v61 }
0x47d9   :  { %12048 = vmatmul.mubr.msk.f32.vlgmr.msra.gmra.mrb[112].mxu1 %vm27_vm0, %v12028_v52 }
0x48a7   :  { %v12056_v63 = vpop.f32.mrb[114].mxu0 }
0x48a8   :  { %v9779_v0 = vpop.f32.mrb[115].mxu0 }
0x48a9   :  { %v12593_v1 = vpack.c.bf16 %v12056_v63, %v9779_v0  ;;  %12061 = vmatprep.mubr.msk.f32.mxu1 %vm27_vm0, %v9779_v0 }
0x48ac   :  { %v12049_v4 = vpop.f32.mrb[112].mxu1 }
0x48ad   :  { %v9698_v7 = vpop.f32.mrb[113].mxu1 }
0x48ae   :  { %v12585_v8 = vpack.c.bf16 %v12049_v4, %v9698_v7  ;;  %12068 = vmatprep.mubr.msk.f32.mxu0 %vm27_vm0, %v9698_v7 }
0x48b0   :  { %12586 = vmatprep.subr.bf16.mxu1 %v12585_v8 }
0x48b1   :  { %12588 = vmatpush3.bf16.msra.mxu1 %v12585_v8 }
0x48b2   :  { %12594 = vmatprep.subr.bf16.mxu1 %v12593_v1 }
0x48b4   :  { %12062 = vmatmul.mubr.msk.f32.vlgmr.msra.gmra.mrb[114].mxu1 %vm27_vm0, %v12056_v63 }
0x48b5   :  { %12596 = vmatpush3.bf16.msra.mxu1 %v12593_v1 }
0x4987   :  { %v12063_v45 = vpop.f32.mrb[114].mxu1 }
0x4988   :  { %v9870_v9 = vsub.f32 %v12899_v25, %v12063_v45  ;;  %v9860_v10 = vpop.f32.mrb[115].mxu1 }
0x4989   :  { %v9869_v11 = vsub.f32 %v12902_v26, %v9860_v10 }
0x498a   :  { %v9872_v12 = vmul.f32 0.5, %v9870_v9 }
0x498b   :  { %v9871_v13 = vmul.f32 0.5, %v9869_v11 }
0x498d   :  { %v12589_v14 = vpack.c.bf16 %v9872_v12, %v9871_v13  ;;  %12075 = vmatprep.mubr.msk.f32.mxu1 %vm27_vm0, %v9871_v13 }
0x498e   :  { %12076 = vmatmul.mubr.msk.f32.vlgmr.msra.gmra.mrb[116].mxu1 %vm27_vm0, %v9872_v12 }
0x498f   :  { %12590 = vmatprep.subr.bf16.mxu0 %v12589_v14 }
0x4990   :  { %12592 = vmatpush3.bf16.msra.mxu0 %v12589_v14 }
0x4993   :  { %12069 = vmatmul.mubr.msk.f32.vlgmr.msra.gmra.mrb[116].mxu0 %vm27_vm0, %v12049_v4 }
0x4a61   :  { %v12077_v15 = vpop.f32.mrb[116].mxu1 }
0x4a62   :  { %v10026_v16 = vpop.f32.mrb[117].mxu1 }
0x4a63   :  { %v12605_v17 = vpack.c.bf16 %v12077_v15, %v10026_v16  ;;  %12082 = vmatprep.mubr.msk.f32.mxu0 %vm27_vm0, %v10026_v16 }
0x4a66   :  { %v12070_v62 = vpop.f32.mrb[116].mxu0 }
0x4a67   :  { %v9945_v2 = vpop.f32.mrb[117].mxu0 }
0x4a68   :  { %v12597_v3 = vpack.c.bf16 %v12070_v62, %v9945_v2  ;;  %12089 = vmatprep.mubr.msk.f32.mxu1 %vm27_vm0, %v9945_v2 }
0x4a6a   :  { %12598 = vmatprep.subr.bf16.mxu0 %v12597_v3 }
0x4a6b   :  { %12600 = vmatpush3.bf16.msra.mxu0 %v12597_v3 }
0x4a6c   :  { %12606 = vmatprep.subr.bf16.mxu0 %v12605_v17 }
0x4a6e   :  { %12083 = vmatmul.mubr.msk.f32.vlgmr.msra.gmra.mrb[118].mxu0 %vm27_vm0, %v12077_v15 }
0x4a6f   :  { %12608 = vmatpush3.bf16.msra.mxu0 %v12605_v17 }
0x4b41   :  { %v12084_v23 = vpop.f32.mrb[118].mxu0 }
0x4b42   :  { %v10117_v24 = vsub.f32 %v12899_v25, %v12084_v23  ;;  %v10107_v27 = vpop.f32.mrb[119].mxu0 }
0x4b43   :  { %v10116_v28 = vsub.f32 %v12902_v26, %v10107_v27 }
0x4b44   :  { %v10119_v29 = vmul.f32 0.5, %v10117_v24 }
0x4b45   :  { %v10118_v30 = vmul.f32 0.5, %v10116_v28 }
0x4b47   :  { %v12601_v20 = vpack.c.bf16 %v10119_v29, %v10118_v30  ;;  %12096 = vmatprep.mubr.msk.f32.mxu0 %vm27_vm0, %v10118_v30 }
0x4b48   :  { %12097 = vmatmul.mubr.msk.f32.vlgmr.msra.gmra.mrb[120].mxu0 %vm27_vm0, %v10119_v29 }
0x4b49   :  { %12602 = vmatprep.subr.bf16.mxu1 %v12601_v20 }
0x4b4a   :  { %12604 = vmatpush3.bf16.msra.mxu1 %v12601_v20 }
0x4b4d   :  { %12090 = vmatmul.mubr.msk.f32.vlgmr.msra.gmra.mrb[118].mxu1 %vm27_vm0, %v12070_v62 }
0x4c1b   :  { %v12098_v21 = vpop.f32.mrb[120].mxu0 }
0x4c1c   :  { %v10273_v22 = vpop.f32.mrb[121].mxu0 }
0x4c1d   :  { %12103 = vmatprep.mubr.msk.f32.mxu1 %vm27_vm0, %v10273_v22 }
0x4c20   :  { %v12091_v31 = vpop.f32.mrb[118].mxu1 }
0x4c21   :  { %v10192_v32 = vpop.f32.mrb[119].mxu1 }
0x4c22   :  { %v12609_v33 = vpack.c.bf16 %v12091_v31, %v10192_v32  ;;  %12110 = vmatprep.mubr.msk.f32.mxu0 %vm27_vm0, %v10192_v32 }
0x4c24   :  { %12610 = vmatprep.subr.bf16.mxu1 %v12609_v33 }
0x4c25   :  { %12612 = vmatpush3.bf16.msra.mxu1 %v12609_v33 }
0x4c28   :  { %12104 = vmatmul.mubr.msk.f32.vlgmr.msra.gmra.mrb[120].mxu1 %vm27_vm0, %v12098_v21 }
0x4cfb   :  { %v12105_v34 = vpop.f32.mrb[120].mxu1 }
0x4cfc   :  { %v10364_v35 = vsub.f32 %v12899_v25, %v12105_v34  ;;  %v10354_v18 = vpop.f32.mrb[121].mxu1 }
0x4cfd   :  { %v10363_v19 = vsub.f32 %v12902_v26, %v10354_v18 }
0x4cfe   :  { %v10366_v36 = vmul.f32 0.5, %v10364_v35 }
0x4cff   :  { %v10365_v37 = vmul.f32 0.5, %v10363_v19 }
0x4d01   :  { %v12613_v38 = vpack.c.bf16 %v10366_v36, %v10365_v37 }
0x4d03   :  { %12614 = vmatprep.subr.bf16.mxu0 %v12613_v38 }
0x4d04   :  { %12616 = vmatpush3.bf16.msra.mxu0 %v12613_v38 }
0x4d07   :  { %12111 = vmatmul.mubr.msk.f32.vlgmr.msra.gmra.mrb[122].mxu0 %vm27_vm0, %v12091_v31 }
0x4dda   :  { %v12112_v39 = vpop.f32.mrb[122].mxu0 }
0x4ddb   :  { %v10458_v40 = vmul.f32 %v12112_v39, %v12830_v6  ;;  %v10439_v43 = vpop.f32.mrb[123].mxu0 }
0x4ddc   :  { %v10457_v41 = vmul.f32 %v12825_v5, %v10439_v43 }
0x4ddd   :  { %v10460_v25 = vsel %vm27_vm0, %v10458_v40, 0.0 }
0x4dde   :  { %v10459_v26 = vsel %vm27_vm0, %v10457_v41, 0.0 }
0x4ddf   :  { %v10461_v42 = vadd.f32 %v10460_v25, %v10459_v26 }
0x4de1   :  { %10462 = vadd.xlane.f32.xlu0 %v10461_v42 }
0x4e6e   :  { %v10463_v44 = vpop.xlane.xlu0 %10462 }
0x4e6f   :  { %v10464_v46 = vrot.slane %v10463_v44, 4 }
0x4e71   :  { %v10465_v47 = vadd.f32 %v10464_v46, %v10463_v44 }
0x4e73   :  { %v10466_v48 = vrot.slane %v10465_v47, 2 }
0x4e75   :  { %v10467_v49 = vadd.f32 %v10466_v48, %v10465_v47 }
0x4e77   :  { %v10468_v50 = vrot.slane %v10467_v49, 1 }
0x4e79   :  { %v10469_v51 = vadd.f32 %v10468_v50, %v10467_v49 }
0x4e7b   :  { %12633 = vpush %v10469_v51 }
0x4eac   :  { %s12634_s6 = spop %12633 }
0x4ead   :  { %s10471_s7 = smul.f32 %s12634_s6, %s12632_s30 }
0x4eaf   :  { %s10472_s8 = ssub.f32 %s5575_s28, %s10471_s7 }
0x4eb1   :  { %s10473_s10 = smul.f32 0.125, %s10472_s8 }
0x4eb3   :  { %s10474_s11 = ssub.f32 %s260_s9, %s10473_s10 }
0x4eb5   :  { %10476 = sst [smem:[#allocation2]] %s10474_s11 }
0x4eb6   :  { %12691 = shalt.err (!%p12688_p2)
}
0x4eb7   :  { %s12698_s18 = smov [#allocation2]  }
0x4eb8   :  { %10484 = dma.smem_to_hbm %s12698_s18, 16, %s13263_s5, [#allocation3]  }
0x4eb9   :  { %12692 = dma.done.wait [#allocation3], 16  }
0x4eba   :  { %12693 = vsyncadd [#allocation3], 4294967280 }
0x4ebb   :  { %10488 = sfence }
0x4ebc   :  { %10489 = vsyncpa [#allocation3], 1 }

</bundles_post_ra>
